<compile_context>
chip_gen: v7x
topology: tpu7x:2x2x1
jax: 0.10.0
libtpu: 0.0.40
codegen_flags: <defaults>
</compile_context>

<pallas_src>
import functools

import jax
import jax.numpy as jnp
from jax.experimental import pallas as pl
from jax.experimental.pallas import tpu as pltpu

_NEG_BIG = -1e30          # bias for padded class columns (keeps log_softmax exact)
_ROW_TILE_TARGET = 512    # measured pipeline sweet spot for the row tile
_LANE = 128
_ROW_ALIGN = 16           # bf16 min sublane tile


# ----------------------------------------------------------------------------
# Fused kernel: whole MLP for one row tile
# ----------------------------------------------------------------------------
def _fused_mlp_kernel(num_layers, *refs):
    # refs = (x_ref, w0_ref, b0_ref, ..., w_{L-1}_ref, b_{L-1}_ref, o_ref)
    x_ref = refs[0]
    o_ref = refs[-1]
    wb = refs[1:-1]

    h = x_ref[...]                                   # (tm, d0) f32
    y = None
    for i in range(num_layers):
        w_t = wb[2 * i][...]                         # (d_in, d_out) bf16, BN folded
        b = wb[2 * i + 1][...]                       # (1, d_out)    f32,  BN folded
        y = jnp.dot(h.astype(jnp.bfloat16), w_t,
                    preferred_element_type=jnp.float32) + b
        if i < num_layers - 1:
            h = jnp.maximum(y, 0.0)                  # ReLU
            # TODO(synk): dropout is a no-op in eval mode; training-mode masking
            # (pltpu.prng_random_bits) not implemented.

    # numerically-stable log_softmax along the (padded) class axis
    m = jnp.max(y, axis=-1, keepdims=True)
    z = y - m
    lse = jnp.log(jnp.sum(jnp.exp(z), axis=-1, keepdims=True))
    o_ref[...] = z - lse


# ----------------------------------------------------------------------------
# Generation-aware VMEM budget / tiling helpers
# ----------------------------------------------------------------------------
def _tpu_vmem_and_cores():
    """(usable VMEM budget bytes, TensorCores per chip), generation aware."""
    vmem_bytes = 64 << 20                            # conservative fallback (v7x/TC)
    try:
        info = pltpu.get_tpu_info()
        vmem_bytes = int(getattr(info, "vmem_capacity_bytes", vmem_bytes))
    except Exception:
        pass
    num_cores = 2 if vmem_bytes <= (64 << 20) else 1  # v7x-style 2-TC megacore
    budget = max(32 << 20, (vmem_bytes * 3) // 4)     # ~96 MiB v5e/v6e, ~48 MiB v7x
    return budget, num_cores


def _choose_tiling(n_rows, dims, num_layers, vmem_budget, num_cores):
    """Pick row tile and grid steps under the VMEM budget, with minimal padding."""
    in_dim, out_dim = dims[0], dims[-1]
    max_dim = max(dims)
    # resident params: single-buffered (bf16 weights + f32 biases, memory_space=VMEM)
    weight_bytes = sum(2 * dims[i] * dims[i + 1] + 4 * dims[i + 1]
                       for i in range(num_layers))
    # per-row VMEM: double-buffered x / out tiles + unrolled per-layer f32/bf16 temps
    per_row = (2 * 4 * in_dim + 2 * 4 * out_dim
               + num_layers * 10 * max_dim + 4 * max_dim)
    avail = max(vmem_budget - weight_bytes, 1 << 20)
    tm_cap = max(_ROW_ALIGN,
                 min(_ROW_TILE_TARGET,
                     (avail // per_row) // _ROW_ALIGN * _ROW_ALIGN))

    steps = max(1, -(-n_rows // tm_cap))
    if num_cores > 1 and n_rows > _ROW_ALIGN:
        steps = max(steps, num_cores)                 # keep both TCs busy on v7x
        if steps % num_cores:
            steps += num_cores - (steps % num_cores)  # even grid on 2-TC chips
    tm = -(-n_rows // steps)
    tm = -(-tm // _ROW_ALIGN) * _ROW_ALIGN
    return int(tm), int(steps), int(weight_bytes)


# ----------------------------------------------------------------------------
# pallas_call wrapper
# ----------------------------------------------------------------------------
def fused_class_mlp(x, fused_lins):
    """x: (N, in_dim) f32; fused_lins: list of (W^T bf16, b f32) with BN pre-folded."""
    n, in_dim = x.shape
    num_layers = len(fused_lins)
    out_dim = fused_lins[-1][0].shape[1]
    out_pad = pl.cdiv(out_dim, _LANE) * _LANE

    # lane-dense logits: zero-pad last-layer weight columns, -1e30 bias on the
    # padded columns so max / logsumexp are unaffected.
    lins = list(fused_lins[:-1])
    w_last, b_last = fused_lins[-1]
    if out_pad != out_dim:
        w_last = jnp.pad(w_last, ((0, 0), (0, out_pad - out_dim)))
        b_last = jnp.pad(b_last, ((0, 0), (0, out_pad - out_dim)),
                         constant_values=_NEG_BIG)
    lins.append((w_last, b_last))

    dims = [in_dim] + [w.shape[1] for w, _ in lins]
    vmem_budget, num_cores = _tpu_vmem_and_cores()
    tm, steps, weight_bytes = _choose_tiling(n, dims, num_layers,
                                             vmem_budget, num_cores)
    n_pad = tm * steps
    x_p = x if n_pad == n else jnp.pad(x, ((0, n_pad - n), (0, 0)))

    # grid-invariant weights/biases: whole-array VMEM residents (single copy,
    # no double-buffering).
    const_spec = pl.BlockSpec(memory_space=pltpu.MemorySpace.VMEM)
    in_specs = [pl.BlockSpec((tm, in_dim), lambda i: (i, 0))]
    flat_args = [x_p]
    for w_t, b in lins:
        in_specs.extend([const_spec, const_spec])
        flat_args.extend([w_t, b])
    out_spec = pl.BlockSpec((tm, out_pad), lambda i: (i, 0))

    # advisory cost hint for the XLA scheduler
    flops = 2 * n_pad * sum(dims[i] * dims[i + 1] for i in range(num_layers))
    bytes_accessed = 4 * n_pad * (in_dim + out_pad) + weight_bytes
    cost = pl.CostEstimate(flops=int(flops),
                           transcendentals=int(n_pad * (out_pad + 1)),
                           bytes_accessed=int(bytes_accessed))

    out = pl.pallas_call(
        functools.partial(_fused_mlp_kernel, num_layers),
        out_shape=jax.ShapeDtypeStruct((n_pad, out_pad), jnp.float32),
        grid=(steps,),
        in_specs=in_specs,
        out_specs=out_spec,
        compiler_params=pltpu.CompilerParams(
            dimension_semantics=("parallel",),
            vmem_limit_bytes=int(vmem_budget)),
        cost_estimate=cost,
    )(*flat_args)
    return out[:n, :out_dim]


class_mlp_forward = jax.jit(fused_class_mlp)


# ----------------------------------------------------------------------------
# Parameter construction (mirrors the PyTorch module) + BN folding
# ----------------------------------------------------------------------------
def init_class_mlp(key, in_channels, hidden_channels, out_channels, num_layers):
    dims = ([in_channels] + [hidden_channels] * (num_layers - 1)
            + [out_channels])
    params = {"lins": [], "bns": []}
    for li in range(num_layers):
        key, kw, kb = jax.random.split(key, 3)
        bound = float(1.0 / (dims[li] ** 0.5))
        # nn.Linear stores weight as (out, in); we keep W^T = (in, out)
        w_t = jax.random.uniform(kw, (dims[li], dims[li + 1]),
                                 jnp.float32, -bound, bound)
        b = jax.random.uniform(kb, (1, dims[li + 1]),
                               jnp.float32, -bound, bound)
        params["lins"].append((w_t, b))
    for _ in range(num_layers - 1):
        key, kg, kbt, km, kv = jax.random.split(key, 5)
        h = hidden_channels
        gamma = 1.0 + 0.1 * jax.random.normal(kg, (1, h), jnp.float32)
        beta = 0.1 * jax.random.normal(kbt, (1, h), jnp.float32)
        run_mean = 0.1 * jax.random.normal(km, (1, h), jnp.float32)
        run_var = 1.0 + 0.1 * jax.random.uniform(kv, (1, h), jnp.float32)
        params["bns"].append((gamma, beta, run_mean, run_var))
    return params


def fold_params(params, eps=1e-5):
    """Fold eval-mode BatchNorm1d into each hidden Linear; weights -> bf16."""
    num_layers = len(params["lins"])
    fused = []
    for i in range(num_layers - 1):
        w_t, b = params["lins"][i]
        gamma, beta, mean, var = params["bns"][i]
        scale = gamma / jnp.sqrt(var + eps)          # (1, H)
        shift = beta - mean * scale                  # (1, H)
        fused.append(((w_t * scale).astype(jnp.bfloat16),
                      (b * scale + shift).astype(jnp.float32)))
    w_t, b = params["lins"][-1]
    fused.append((w_t.astype(jnp.bfloat16), b.astype(jnp.float32)))
    return fused


# ----------------------------------------------------------------------------
# Pure-JAX references for correctness checking
# ----------------------------------------------------------------------------
def reference_forward(x, params, eps=1e-5):
    """Full-f32 reference with explicit (eval-mode) BatchNorm."""
    num_layers = len(params["lins"])
    h = x
    for i in range(num_layers - 1):
        w_t, b = params["lins"][i]
        gamma, beta, mean, var = params["bns"][i]
        h = h @ w_t + b
        h = (h - mean) / jnp.sqrt(var + eps) * gamma + beta
        h = jnp.maximum(h, 0.0)
    w_t, b = params["lins"][-1]
    y = h @ w_t + b
    return jax.nn.log_softmax(y, axis=-1)


def reference_forward_bf16(x, fused_lins):
    """Reference matching the kernel numerics (bf16 operands, f32 accumulation)."""
    h = x
    last = len(fused_lins) - 1
    for i, (w_t, b) in enumerate(fused_lins):
        y = jnp.dot(h.astype(jnp.bfloat16), w_t.astype(jnp.bfloat16),
                    preferred_element_type=jnp.float32) + b.astype(jnp.float32)
        h = jnp.maximum(y, 0.0) if i < last else y
    return jax.nn.log_softmax(h, axis=-1)


# ----------------------------------------------------------------------------
if __name__ == "__main__":
    # small shapes consistent with the module's forward: x is (num_nodes, C_in)
    num_nodes = 1024
    in_channels = 128
    hidden_channels = 256
    out_channels = 40
    num_layers = 4
    dropout = 0.5  # inference mode -> no-op

    key = jax.random.PRNGKey(0)
    key, kx = jax.random.split(key)
    x = jax.random.normal(kx, (num_nodes, in_channels), jnp.float32)

    params = init_class_mlp(key, in_channels, hidden_channels,
                            out_channels, num_layers)
    fused = fold_params(params)

    out = jax.block_until_ready(class_mlp_forward(x, fused))
    ref_bf16 = reference_forward_bf16(x, fused)
    ref_f32 = reference_forward(x, params)

    assert out.shape == (num_nodes, out_channels)
    # tight check against a reference using identical bf16 matmul numerics
    assert jnp.allclose(out, ref_bf16, atol=3e-3, rtol=3e-3), "mismatch vs bf16 ref"
    # loose check against the full-f32 module semantics
    assert jnp.allclose(out, ref_f32, atol=2e-2, rtol=2e-2), "mismatch vs f32 ref"
    # rows of log_softmax should exp-sum to 1
    assert jnp.allclose(jnp.sum(jnp.exp(out), axis=-1), 1.0, atol=1e-3)

    # exercise the row-padding path (N not a multiple of the tile)
    x_small = x[:100]
    out_small = jax.block_until_ready(class_mlp_forward(x_small, fused))
    assert out_small.shape == (100, out_channels)
    assert jnp.allclose(out_small, reference_forward_bf16(x_small, fused),
                        atol=3e-3, rtol=3e-3)

    print("KERNEL_OK")
</pallas_src>

<mosaic_0001>
module attributes {stable_mosaic.version = 11 : i64} {
  func.func @_fused_mlp_kernel(%arg0: i32, %arg1: memref<512x128xf32, #tpu.memory_space<vmem>>, %arg2: memref<128x256xbf16, #tpu.memory_space<vmem>>, %arg3: memref<1x256xf32, #tpu.memory_space<vmem>>, %arg4: memref<256x256xbf16, #tpu.memory_space<vmem>>, %arg5: memref<1x256xf32, #tpu.memory_space<vmem>>, %arg6: memref<256x256xbf16, #tpu.memory_space<vmem>>, %arg7: memref<1x256xf32, #tpu.memory_space<vmem>>, %arg8: memref<256x128xbf16, #tpu.memory_space<vmem>>, %arg9: memref<1x128xf32, #tpu.memory_space<vmem>>, %arg10: memref<512x128xf32, #tpu.memory_space<vmem>>) attributes {dimension_semantics = [#tpu.dimension_semantics<parallel>], iteration_bounds = array<i64: 2>, scalar_prefetch = 0 : i64, scratch_operands = 0 : i64, tpu.core_type = #tpu.core_type<tc>, window_params = [{transform_indices = @transform_0, window_bounds = array<i64: 512, 128>}, {pipeline_mode = #tpu.pipeline_mode<synchronous>, transform_indices = @transform_1, window_bounds = array<i64: 128, 256>}, {pipeline_mode = #tpu.pipeline_mode<synchronous>, transform_indices = @transform_2, window_bounds = array<i64: 1, 256>}, {pipeline_mode = #tpu.pipeline_mode<synchronous>, transform_indices = @transform_3, window_bounds = array<i64: 256, 256>}, {pipeline_mode = #tpu.pipeline_mode<synchronous>, transform_indices = @transform_4, window_bounds = array<i64: 1, 256>}, {pipeline_mode = #tpu.pipeline_mode<synchronous>, transform_indices = @transform_5, window_bounds = array<i64: 256, 256>}, {pipeline_mode = #tpu.pipeline_mode<synchronous>, transform_indices = @transform_6, window_bounds = array<i64: 1, 256>}, {pipeline_mode = #tpu.pipeline_mode<synchronous>, transform_indices = @transform_7, window_bounds = array<i64: 256, 128>}, {pipeline_mode = #tpu.pipeline_mode<synchronous>, transform_indices = @transform_8, window_bounds = array<i64: 1, 128>}, {transform_indices = @transform_9, window_bounds = array<i64: 512, 128>}]} {
    %c0 = arith.constant 0 : index
    %c0_0 = arith.constant 0 : index
    %0 = vector.load %arg1[%c0, %c0_0] : memref<512x128xf32, #tpu.memory_space<vmem>>, vector<512x128xf32>
    %c0_1 = arith.constant 0 : index
    %c0_2 = arith.constant 0 : index
    %1 = vector.load %arg2[%c0_1, %c0_2] : memref<128x256xbf16, #tpu.memory_space<vmem>>, vector<128x256xbf16>
    %c0_3 = arith.constant 0 : index
    %c0_4 = arith.constant 0 : index
    %2 = vector.load %arg3[%c0_3, %c0_4] : memref<1x256xf32, #tpu.memory_space<vmem>>, vector<1x256xf32>
    %3 = arith.truncf %0 : vector<512x128xf32> to vector<512x128xbf16>
    %cst = arith.constant dense<0.000000e+00> : vector<512x256xf32>
    %4 = tpu.matmul %3, %1, %cst {dimension_numbers = #tpu.dot_dimension_numbers<[1], [0], [0], [1], [0, 0, 1, 1], [], []>} : vector<512x128xbf16>, vector<128x256xbf16>, vector<512x256xf32> -> vector<512x256xf32>
    %5 = vector.broadcast %2 : vector<1x256xf32> to vector<512x256xf32>
    %6 = arith.addf %4, %5 : vector<512x256xf32>
    %cst_5 = arith.constant 0.000000e+00 : f32
    %7 = vector.broadcast %cst_5 : f32 to vector<512x256xf32>
    %8 = arith.maximumf %6, %7 : vector<512x256xf32>
    %c0_6 = arith.constant 0 : index
    %c0_7 = arith.constant 0 : index
    %9 = vector.load %arg4[%c0_6, %c0_7] : memref<256x256xbf16, #tpu.memory_space<vmem>>, vector<256x256xbf16>
    %c0_8 = arith.constant 0 : index
    %c0_9 = arith.constant 0 : index
    %10 = vector.load %arg5[%c0_8, %c0_9] : memref<1x256xf32, #tpu.memory_space<vmem>>, vector<1x256xf32>
    %11 = arith.truncf %8 : vector<512x256xf32> to vector<512x256xbf16>
    %cst_10 = arith.constant dense<0.000000e+00> : vector<512x256xf32>
    %12 = tpu.matmul %11, %9, %cst_10 {dimension_numbers = #tpu.dot_dimension_numbers<[1], [0], [0], [1], [0, 0, 1, 1], [], []>} : vector<512x256xbf16>, vector<256x256xbf16>, vector<512x256xf32> -> vector<512x256xf32>
    %13 = vector.broadcast %10 : vector<1x256xf32> to vector<512x256xf32>
    %14 = arith.addf %12, %13 : vector<512x256xf32>
    %cst_11 = arith.constant 0.000000e+00 : f32
    %15 = vector.broadcast %cst_11 : f32 to vector<512x256xf32>
    %16 = arith.maximumf %14, %15 : vector<512x256xf32>
    %c0_12 = arith.constant 0 : index
    %c0_13 = arith.constant 0 : index
    %17 = vector.load %arg6[%c0_12, %c0_13] : memref<256x256xbf16, #tpu.memory_space<vmem>>, vector<256x256xbf16>
    %c0_14 = arith.constant 0 : index
    %c0_15 = arith.constant 0 : index
    %18 = vector.load %arg7[%c0_14, %c0_15] : memref<1x256xf32, #tpu.memory_space<vmem>>, vector<1x256xf32>
    %19 = arith.truncf %16 : vector<512x256xf32> to vector<512x256xbf16>
    %cst_16 = arith.constant dense<0.000000e+00> : vector<512x256xf32>
    %20 = tpu.matmul %19, %17, %cst_16 {dimension_numbers = #tpu.dot_dimension_numbers<[1], [0], [0], [1], [0, 0, 1, 1], [], []>} : vector<512x256xbf16>, vector<256x256xbf16>, vector<512x256xf32> -> vector<512x256xf32>
    %21 = vector.broadcast %18 : vector<1x256xf32> to vector<512x256xf32>
    %22 = arith.addf %20, %21 : vector<512x256xf32>
    %cst_17 = arith.constant 0.000000e+00 : f32
    %23 = vector.broadcast %cst_17 : f32 to vector<512x256xf32>
    %24 = arith.maximumf %22, %23 : vector<512x256xf32>
    %c0_18 = arith.constant 0 : index
    %c0_19 = arith.constant 0 : index
    %25 = vector.load %arg8[%c0_18, %c0_19] : memref<256x128xbf16, #tpu.memory_space<vmem>>, vector<256x128xbf16>
    %c0_20 = arith.constant 0 : index
    %c0_21 = arith.constant 0 : index
    %26 = vector.load %arg9[%c0_20, %c0_21] : memref<1x128xf32, #tpu.memory_space<vmem>>, vector<1x128xf32>
    %27 = arith.truncf %24 : vector<512x256xf32> to vector<512x256xbf16>
    %cst_22 = arith.constant dense<0.000000e+00> : vector<512x128xf32>
    %28 = tpu.matmul %27, %25, %cst_22 {dimension_numbers = #tpu.dot_dimension_numbers<[1], [0], [0], [1], [0, 0, 1, 1], [], []>} : vector<512x256xbf16>, vector<256x128xbf16>, vector<512x128xf32> -> vector<512x128xf32>
    %29 = vector.broadcast %26 : vector<1x128xf32> to vector<512x128xf32>
    %30 = arith.addf %28, %29 : vector<512x128xf32>
    %cst_23 = arith.constant dense<0xFF800000> : vector<512xf32>
    %31 = vector.multi_reduction <maximumf>, %30, %cst_23 [1] : vector<512x128xf32> to vector<512xf32>
    %32 = vector.shape_cast %31 : vector<512xf32> to vector<512x1xf32>
    %33 = vector.broadcast %32 : vector<512x1xf32> to vector<512x128xf32>
    %34 = arith.subf %30, %33 : vector<512x128xf32>
    %35 = math.exp %34 : vector<512x128xf32>
    %cst_24 = arith.constant dense<0.000000e+00> : vector<512xf32>
    %36 = vector.multi_reduction <add>, %35, %cst_24 [1] : vector<512x128xf32> to vector<512xf32>
    %37 = vector.shape_cast %36 : vector<512xf32> to vector<512x1xf32>
    %38 = math.log %37 : vector<512x1xf32>
    %39 = vector.broadcast %38 : vector<512x1xf32> to vector<512x128xf32>
    %40 = arith.subf %34, %39 : vector<512x128xf32>
    %c0_25 = arith.constant 0 : index
    %c0_26 = arith.constant 0 : index
    %41 = vector.load %arg10[%c0_25, %c0_26] : memref<512x128xf32, #tpu.memory_space<vmem>>, vector<512x128xf32>
    tpu.vector_store %arg10[%c0_25, %c0_26], %40 {strides = array<i32>} : memref<512x128xf32, #tpu.memory_space<vmem>>, vector<512x128xf32>,
    return
  }
  func.func @transform_0(%arg0: i32) -> (i32, i32) {
    %c0_i32 = arith.constant 0 : i32
    %c0_i32_0 = arith.constant 0 : i32
    return %arg0, %c0_i32 : i32, i32
  }
  func.func @transform_1(%arg0: i32) -> (i32, i32) {
    %c0_i32 = arith.constant 0 : i32
    %c0_i32_0 = arith.constant 0 : i32
    %c0_i32_1 = arith.constant 0 : i32
    return %c0_i32, %c0_i32_0 : i32, i32
  }
  func.func @transform_2(%arg0: i32) -> (i32, i32) {
    %c0_i32 = arith.constant 0 : i32
    %c0_i32_0 = arith.constant 0 : i32
    %c0_i32_1 = arith.constant 0 : i32
    return %c0_i32, %c0_i32_0 : i32, i32
  }
  func.func @transform_3(%arg0: i32) -> (i32, i32) {
    %c0_i32 = arith.constant 0 : i32
    %c0_i32_0 = arith.constant 0 : i32
    %c0_i32_1 = arith.constant 0 : i32
    return %c0_i32, %c0_i32_0 : i32, i32
  }
  func.func @transform_4(%arg0: i32) -> (i32, i32) {
    %c0_i32 = arith.constant 0 : i32
    %c0_i32_0 = arith.constant 0 : i32
    %c0_i32_1 = arith.constant 0 : i32
    return %c0_i32, %c0_i32_0 : i32, i32
  }
  func.func @transform_5(%arg0: i32) -> (i32, i32) {
    %c0_i32 = arith.constant 0 : i32
    %c0_i32_0 = arith.constant 0 : i32
    %c0_i32_1 = arith.constant 0 : i32
    return %c0_i32, %c0_i32_0 : i32, i32
  }
  func.func @transform_6(%arg0: i32) -> (i32, i32) {
    %c0_i32 = arith.constant 0 : i32
    %c0_i32_0 = arith.constant 0 : i32
    %c0_i32_1 = arith.constant 0 : i32
    return %c0_i32, %c0_i32_0 : i32, i32
  }
  func.func @transform_7(%arg0: i32) -> (i32, i32) {
    %c0_i32 = arith.constant 0 : i32
    %c0_i32_0 = arith.constant 0 : i32
    %c0_i32_1 = arith.constant 0 : i32
    return %c0_i32, %c0_i32_0 : i32, i32
  }
  func.func @transform_8(%arg0: i32) -> (i32, i32) {
    %c0_i32 = arith.constant 0 : i32
    %c0_i32_0 = arith.constant 0 : i32
    %c0_i32_1 = arith.constant 0 : i32
    return %c0_i32, %c0_i32_0 : i32, i32
  }
  func.func @transform_9(%arg0: i32) -> (i32, i32) {
    %c0_i32 = arith.constant 0 : i32
    %c0_i32_0 = arith.constant 0 : i32
    return %arg0, %c0_i32 : i32, i32
  }
}

</mosaic_0001>

<bundles_post_ra>
// kernel: fused_class_mlp.1
= control target key start
LH: loop header
LB: loop body
LE: loop exit
PB: predicated region body
PF: predicated region fallthrough
CT: control target
= control target key end

     0   :  { %14 = vsyncpa [#allocation3], 0  ;;  %s6157_s0 = inlined_call_operand.hbm [shape: f32[1024,128], index: 0, kind: input, shape index: {}]   ;;  %s6158_s1 = inlined_call_operand.vmem [shape: bf16[128,256], index: 1, kind: input, shape index: {}]   ;;  %s6159_s2 = inlined_call_operand.vmem [shape: f32[1,256], index: 2, kind: input, shape index: {}]   ;;  %s6160_s3 = inlined_call_operand.vmem [shape: bf16[256,256], index: 3, kind: input, shape index: {}]   ;;  %s6161_s4 = inlined_call_operand.vmem [shape: f32[1,256], index: 4, kind: input, shape index: {}]   ;;  %s6162_s5 = inlined_call_operand.hbm [shape: bf16[256,256], index: 5, kind: input, shape index: {}]   ;;  %s6163_s6 = inlined_call_operand.vmem [shape: f32[1,256], index: 6, kind: input, shape index: {}]   ;;  %s6164_s7 = inlined_call_operand.vmem [shape: bf16[256,128], index: 7, kind: input, shape index: {}]   ;;  %s6165_s8 = inlined_call_operand.vmem [shape: f32[1,128], index: 8, kind: input, shape index: {}]   ;;  %s6166_s9 = inlined_call_operand.vmem [shape: f32[1024,128], index: 9, kind: output, shape index: {}]  }
   0x1   :  { %16 = vsyncpa [#allocation3 + $0x1], 0 }
   0x2   :  { %17 = vsyncpa [#allocation5], 0  ;;  %s4566_s30 = smov 0   ;;  %s4568_s10 = smov 0  }
   0x3   :  { %s4570_s11 = smov 0   ;;  %s4572_s12 = smov 0  }
   0x4 LB: > { %s6171_s13 = sadd.s32 4294967295, %s4509_s12   ;;  %p43_p0 = scmp.ne.s32.totalorder %s4501_s10, %s4497_s30  ;;  %s4509_s12 = sphi %s4572_s12, %s6226_s12   ;;  %s4505_s11 = sphi %s4570_s11, %s6225_s11   ;;  %s4501_s10 = sphi %s4568_s10, %s6224_s10   ;;  %s4497_s30 = sphi %s4566_s30, %s6223_s30  }
   0x5   : > { %p4588_p1 = scmp.eq.s32.totalorder %s6171_s13, 0  ;;  %p3825_p2 = scmp.ge.s32.totalorder %s4509_s12, 1 }
   0x6   : > { %p248_p3 = scmp.lt.s32.totalorder %s4509_s12, 3  ;;  %s4511_s17 = smov [#allocation4]  }
   0x7   : > { %s6186_s14 = scalar_select %p4588_p1, 1, 0 }
   0x8   : > { %p4596_p4 = por %p4588_p1, %p43_p0  ;;  %p4600_p5 = pnand %p3825_p2, %p248_p3 }
   0x9   : > { %s272_s18 = sshll.u32 %s4511_s17, 4  ;;  %s4613_s20 = sadd.s32 1, %s4509_s12   ;;  %s273_s18 = int_to_ptr.vmem [resolvable:$true] %s272_s18 }
   0xa   : > { %s6187_s15 = scalar_select %p4596_p4, 1, 0 }
   0xb   : > { %s6188_s16 = scalar_select %p4600_p5, 1, 0 }
   0xc   : > { %p3974_p6 = pneg %p4600_p5  ;;  %s30_s21 = sadd.s32 1, %s4505_s11 }
   0xd   : > { %s27_s22 = ssub.s32 %s4509_s12, %s4613_s20  ;;  %s4413_s25 = scalar_lea.hbm %s6162_s5, 4096 }
   0xe   : > { %p4608_p7 = pnand %p3974_p6, %p4588_p1  ;;  %p4414_p8 = scmp.ne.s32.totalorder %s6162_s5, %s4413_s25 }
   0xf   : > { %p4420_p12 = scmp.lt.u32.totalorder %s4413_s25, %s6162_s5 }
  0x10   : > { %p4415_p9 = pneg %p4608_p7 }
  0x12   : > { %p4416_p10 = pnand %p4415_p9, %p4414_p8 }
  0x14   : > { %p4417_p11 = pneg %p4416_p10 }
  0x16   : > { %p4422_p13 = pnand %p4420_p12, %p4417_p11 }
  0x18   : > { %4425 = shalt.err (!%p4422_p13)
}
  0x19   : > { %s4426_s30 = scalar_lea.vmem %s273_s18, 4096  ;;  %p4434_p6 = scmp.lt.s32.totalorder %s273_s18, %s273_s18 }
  0x1a   : > { %p4427_p0 = scmp.ne.s32.totalorder %s273_s18, %s4426_s30  ;;  %p4435_p1 = scmp.lt.s32.totalorder %s4426_s30, %s4426_s30 }
  0x1c   : > { %p4429_p2 = pnand %p4427_p0, %p4415_p9  ;;  %p4436_p4 = por %p4435_p1, %p4434_p6 }
  0x1e   : > { %p4430_p3 = pneg %p4429_p2 }
  0x20   : > { %p4437_p5 = pnand %p4436_p4, %p4430_p3 }
  0x22   : > { %4440 = shalt.err (!%p4437_p5)
}
  0x23   : > { %s4512_s17 = smov 128   ;;  %s4513_s23 = smov 8  }
  0x24   : > { %3977 = dma.hbm_to_vmem [thread:$0]  (!%p4608_p7), %s6162_s5, 4096, %s273_s18, [#allocation5], %s4512_s17, %s4512_s17, %s4513_s23  }
  0x25   : > { %p28_p1 = scmp.eq.s32.totalorder %s27_s22, 0  ;;  %p37_p4 = scmp.ne.s32.totalorder %s4505_s11, %s4501_s10 }
  0x26   : > { %p38_p5 = scmp.eq.s32.totalorder %s4509_s12, 0  ;;  %p3983_p8 = scmp.lt.s32.totalorder %s4509_s12, 2 }
  0x27   : > { %s4642_s26 = scalar_select %p28_p1, %s4505_s11, %s30_s21  }
  0x28   : > { %p39_p9 = por %p38_p5, %p37_p4  ;;  %s295_s27 = sand.u32 1, %s4505_s11  }
  0x29   : > { %s3828_s28 = sshll.u32 %s295_s27, 9  ;;  %s3935_s29 = sshll.u32 %s4509_s12, 13 }
  0x2a   : > { %s4649_s19 = scalar_lea.hbm %s6157_s0, %s3935_s29  ;;  %s299_s18 = scalar_lea.vmem [#allocation2], %s3828_s28 }
  0x2b   : > { %s306_s22 = sshll.u32 %s299_s18, 4  ;;  %p4653_p7 = pnand %p3983_p8, %p39_p9  ;;  %s4651_s22 = int_to_ptr.vmem [resolvable:$true] %s306_s22 }
  0x2c   : > { %s4657_s24 = scalar_lea.sflag [#allocation3], %s295_s27  ;;  %s4441_s25 = scalar_lea.hbm %s4649_s19, 8192 }
  0x2d   : > { %p4442_p10 = scmp.ne.s32.totalorder %s4649_s19, %s4441_s25  ;;  %p4443_p11 = pneg %p4653_p7 }
  0x2e   : > { %s4446_s29 = scalar_lea.hbm %s6157_s0, 16384  ;;  %p4447_p0 = scmp.lt.u32.totalorder %s4649_s19, %s6157_s0 }
  0x2f   : > { %p4444_p12 = pnand %p4443_p11, %p4442_p10  ;;  %p4448_p2 = scmp.lt.u32.totalorder %s4446_s29, %s4441_s25 }
  0x30   : > { %p4450_p6 = scmp.lt.u32.totalorder %s4441_s25, %s4649_s19 }
  0x31   : > { %p4445_p13 = pneg %p4444_p12  ;;  %p4449_p3 = por %p4448_p2, %p4447_p0 }
  0x33   : > { %p4451_p1 = por %p4450_p6, %p4449_p3 }
  0x35   : > { %p4452_p4 = pnand %p4451_p1, %p4445_p13 }
  0x37   : > { %4455 = shalt.err (!%p4452_p4)
}
  0x38   : > { %s4456_s27 = scalar_lea.vmem %s4651_s22, 8192  ;;  %s4514_s13 = smov [#allocation2]  }
  0x39   : > { %p4457_p5 = scmp.ne.s32.totalorder %s4651_s22, %s4456_s27  ;;  %s4461_s28 = sshll.u32 %s4514_s13, 4  ;;  %s4462_s28 = int_to_ptr.vmem [resolvable:$false] %s4461_s28 }
  0x3a   : > { %s4463_s30 = scalar_lea.vmem %s4462_s28, 16384  ;;  %p4464_p10 = scmp.lt.s32.totalorder %s4651_s22, %s4462_s28 }
  0x3b   : > { %p4459_p8 = pnand %p4457_p5, %p4443_p11  ;;  %p4465_p12 = scmp.lt.s32.totalorder %s4463_s30, %s4456_s27 }
  0x3d   : > { %p4460_p9 = pneg %p4459_p8  ;;  %p4466_p0 = por %p4465_p12, %p4464_p10 }
  0x3f   : > { %p4467_p2 = pnand %p4466_p0, %p4460_p9 }
  0x41   : > { %4470 = shalt.err (!%p4467_p2)
}
  0x42   : > { %3981 = dma.hbm_to_vmem [thread:$0]  (!%p4653_p7), %s4649_s19, 8192, %s4651_s22, %s4657_s24, %s4512_s17, %s4512_s17, %s4513_s23  }
  0x43   : > { %p6191_p11 = scmp.ne.s32.totalorder %s6188_s16, 0 }
  0x45   : > { %318 = sbr.rel (%p6191_p11) target bundleno = 1564 (0x61c), region = 56 }
  0x4c   : > { %s320_s25 = sand.u32 1, %s4501_s10   ;;  %p6192_p13 = scmp.ne.s32.totalorder %s6187_s15, 0 }
  0x4d   : > { %s3832_s29 = sshll.u32 %s320_s25, 9  ;;  %s321_s18 = scalar_lea.sflag [#allocation3], %s320_s25 }
  0x4e   : > { %s4691_s27 = scalar_lea.vmem [#allocation2], %s3832_s29 }
  0x4f   : > { %4488 = dma.done.wait (%p6192_p13), %s321_s18, 8192  }
  0x50   : > { %4490 = vsyncadd (%p6192_p13), %s321_s18, 4294959104  ;;  %p6193_p3 = scmp.ne.s32.totalorder %s6186_s14, 0 }
  0x52   : > { %4492 = dma.done.wait (%p6193_p3), [#allocation5], 4096  }
  0x53   : > { %4494 = vsyncadd (%p6193_p3), [#allocation5], 4294963200  ;;  %v4515_v0 = vmov 0   ;;  %v4021_v1 = vld [vmem:[%s6158_s1 + $0x4] ss:$8 sps:$4 sm:$0xff]   ;;  %v373_v20 = vld [vmem:[%s4691_s27 + $0x10] sm:$0xff] }
  0x54   : > { %607 = vmatprep.mubr.bf16.mxu0 %v4515_v0  ;;  %v4023_v2 = vld [vmem:[%s6158_s1] ss:$8 sps:$4 sm:$0xff]   ;;  %575 = vmatprep.subr.bf16.mxu0 %v4021_v1  ;;  %v4024_v3 = vld [vmem:[%s6158_s1 + $0x14] ss:$8 sps:$4 sm:$0xff]   ;;  %v4026_v4 = vld [vmem:[%s6158_s1 + $0x10] ss:$8 sps:$4 sm:$0xff]  }
  0x55   : > { %576 = vmatpush1.bf16.msra.mxu0 %v4023_v2  ;;  %v4027_v5 = vld [vmem:[%s6158_s1 + $0x24] ss:$8 sps:$4 sm:$0xff]   ;;  %v4029_v6 = vld [vmem:[%s6158_s1 + $0x20] ss:$8 sps:$4 sm:$0xff]   ;;  %v4030_v7 = vld [vmem:[%s6158_s1 + $0x34] ss:$8 sps:$4 sm:$0xff]  }
  0x56   : > { %577 = vmatprep.subr.bf16.mxu0 %v4024_v3  ;;  %v4032_v8 = vld [vmem:[%s6158_s1 + $0x30] ss:$8 sps:$4 sm:$0xff]   ;;  %v4033_v9 = vld [vmem:[%s6158_s1 + $0x44] ss:$8 sps:$4 sm:$0xff]   ;;  %v4035_v10 = vld [vmem:[%s6158_s1 + $0x40] ss:$8 sps:$4 sm:$0xff]  }
  0x57   : > { %v4036_v11 = vld [vmem:[%s6158_s1 + $0x54] ss:$8 sps:$4 sm:$0xff]   ;;  %v4038_v12 = vld [vmem:[%s6158_s1 + $0x50] ss:$8 sps:$4 sm:$0xff]   ;;  %v4039_v13 = vld [vmem:[%s6158_s1 + $0x64] ss:$8 sps:$4 sm:$0xff]  }
  0x58   : > { %v4041_v14 = vld [vmem:[%s6158_s1 + $0x60] ss:$8 sps:$4 sm:$0xff]   ;;  %v4042_v15 = vld [vmem:[%s6158_s1 + $0x74] ss:$8 sps:$4 sm:$0xff]   ;;  %v4044_v16 = vld [vmem:[%s6158_s1 + $0x70] ss:$8 sps:$4 sm:$0xff]  }
  0x59   : > { %578 = vmatpush1.bf16.msra.mxu0 %v4026_v4  ;;  %v371_v17 = vld [vmem:[%s4691_s27] sm:$0xff]  ;;  %v372_v18 = vld [vmem:[%s4691_s27 + $0x8] sm:$0xff]  ;;  %v374_v21 = vld [vmem:[%s4691_s27 + $0x18] sm:$0xff]  ;;  %s6208_s29 = sadd.s32 4294967295, %s4509_s12  }
  0x5a   : > { %579 = vmatprep.subr.bf16.mxu0 %v4027_v5  ;;  %v452_v19 = vpack.c.bf16 %v372_v18, %v371_v17  ;;  %v453_v22 = vpack.c.bf16 %v374_v21, %v373_v20  ;;  %v375_v23 = vld [vmem:[%s4691_s27 + $0x20] sm:$0xff]  ;;  %v376_v24 = vld [vmem:[%s4691_s27 + $0x28] sm:$0xff]  ;;  %v377_v26 = vld [vmem:[%s4691_s27 + $0x30] sm:$0xff]  ;;  %s3834_s18 = sshll.u32 %s6208_s29, 6 }
  0x5b   : > { %v454_v25 = vpack.c.bf16 %v376_v24, %v375_v23  ;;  %v378_v27 = vld [vmem:[%s4691_s27 + $0x38] sm:$0xff]  ;;  %v4045_v29 = vld [vmem:[%s6160_s3 + $0x4] ss:$8 sps:$4 sm:$0xff]   ;;  %v4047_v32 = vld [vmem:[%s6160_s3] ss:$8 sps:$4 sm:$0xff]   ;;  %p365_p7 = scmp.lt.s32.totalorder %s3834_s18, 127 }
  0x5c   : > { %v455_v28 = vpack.c.bf16 %v378_v27, %v377_v26  ;;  %v379_v30 = vld [vmem:[%s4691_s27 + $0x40] sm:$0xff]  ;;  %v380_v31 = vld [vmem:[%s4691_s27 + $0x48] sm:$0xff]  ;;  %1324 = vmatprep.subr.bf16.mxu1 %v4045_v29  ;;  %v4048_v34 = vld [vmem:[%s6160_s3 + $0x14] ss:$8 sps:$4 sm:$0xff]  }
  0x5d   : > { %580 = vmatpush1.bf16.msra.mxu0 %v4029_v6  ;;  %1325 = vmatpush1.bf16.msra.mxu1 %v4047_v32  ;;  %v456_v33 = vpack.c.bf16 %v380_v31, %v379_v30  ;;  %v4050_v35 = vld [vmem:[%s6160_s3 + $0x10] ss:$8 sps:$4 sm:$0xff]   ;;  %v4051_v36 = vld [vmem:[%s6160_s3 + $0x24] ss:$8 sps:$4 sm:$0xff]   ;;  %v4053_v39 = vld [vmem:[%s6160_s3 + $0x20] ss:$8 sps:$4 sm:$0xff]  }
  0x5e   : > { %581 = vmatprep.subr.bf16.mxu0 %v4030_v7  ;;  %v381_v37 = vld [vmem:[%s4691_s27 + $0x50] sm:$0xff]  ;;  %v382_v38 = vld [vmem:[%s4691_s27 + $0x58] sm:$0xff]  ;;  %1326 = vmatprep.subr.bf16.mxu1 %v4048_v34  ;;  %v4057_v43 = vld [vmem:[%s6160_s3 + $0x44] ss:$8 sps:$4 sm:$0xff]   ;;  %s6228_s18 = smov (!%p365_p7, %s3834_s18), 127 }
  0x5f   : > { %v457_v40 = vpack.c.bf16 %v382_v38, %v381_v37  ;;  %v4054_v41 = vld [vmem:[%s6160_s3 + $0x34] ss:$8 sps:$4 sm:$0xff]   ;;  %v4056_v42 = vld [vmem:[%s6160_s3 + $0x30] ss:$8 sps:$4 sm:$0xff]   ;;  %v383_v44 = vld [vmem:[%s4691_s27 + $0x60] sm:$0xff]  ;;  %s3835_s12 = sshll.u32 %s6228_s18, 3 }
  0x60   : > { %v384_v45 = vld [vmem:[%s4691_s27 + $0x68] sm:$0xff]  ;;  %v4060_v48 = vld [vmem:[%s6160_s3 + $0x54] ss:$8 sps:$4 sm:$0xff]   ;;  %v4062_v49 = vld [vmem:[%s6160_s3 + $0x50] ss:$8 sps:$4 sm:$0xff]   ;;  %s5942_s23 = scalar_lea.vmem %s6166_s9, %s3835_s12 }
  0x61   : > { %582 = vmatpush1.bf16.msra.mxu0 %v4032_v8  ;;  %1327 = vmatpush1.bf16.msra.mxu1 %v4050_v35  ;;  %v4059_v46 = vld [vmem:[%s6160_s3 + $0x40] ss:$8 sps:$4 sm:$0xff]   ;;  %v458_v47 = vpack.c.bf16 %v384_v45, %v383_v44  ;;  %v4063_v50 = vld [vmem:[%s6160_s3 + $0x64] ss:$8 sps:$4 sm:$0xff]   ;;  %v385_v51 = vld [vmem:[%s4691_s27 + $0x70] sm:$0xff] }
  0x62   : > { %583 = vmatprep.subr.bf16.mxu0 %v4033_v9  ;;  %1328 = vmatprep.subr.bf16.mxu1 %v4051_v36  ;;  %v386_v52 = vld [vmem:[%s4691_s27 + $0x78] sm:$0xff]  ;;  %v4065_v53 = vld [vmem:[%s6160_s3 + $0x60] ss:$8 sps:$4 sm:$0xff]   ;;  %v4071_v60 = vld [vmem:[#allocation4 + $0x4] ss:$8 sps:$4 sm:$0xff]  }
  0x63   : > { %v459_v54 = vpack.c.bf16 %v386_v52, %v385_v51  ;;  %v387_v55 = vld [vmem:[%s4691_s27 + $0x80] sm:$0xff]  ;;  %v4066_v56 = vld [vmem:[%s6160_s3 + $0x74] ss:$8 sps:$4 sm:$0xff]   ;;  %v4068_v57 = vld [vmem:[%s6160_s3 + $0x70] ss:$8 sps:$4 sm:$0xff]  }
  0x64   : > { %v4069_v58 = vld [vmem:[#allocation4] ss:$8 sps:$4 sm:$0xff]   ;;  %v4072_v61 = vld [vmem:[%s6160_s3 + $0x84] ss:$8 sps:$4 sm:$0xff]   ;;  %v4075_v1 = vld [vmem:[%s6160_s3 + $0x94] ss:$8 sps:$4 sm:$0xff]  }
  0x65   : > { %584 = vmatpush1.bf16.msra.mxu0 %v4035_v10  ;;  %1329 = vmatpush1.bf16.msra.mxu1 %v4053_v39  ;;  %v388_v59 = vld [vmem:[%s4691_s27 + $0x88] sm:$0xff]  ;;  %v4077_v2 = vld [vmem:[%s6160_s3 + $0x90] ss:$8 sps:$4 sm:$0xff]   ;;  %v391_v8 = vld [vmem:[%s4691_s27 + $0xa0] sm:$0xff] }
  0x66   : > { %585 = vmatprep.subr.bf16.mxu0 %v4036_v11  ;;  %1330 = vmatprep.subr.bf16.mxu1 %v4054_v41  ;;  %v4074_v62 = vld [vmem:[%s6160_s3 + $0x80] ss:$8 sps:$4 sm:$0xff]   ;;  %v460_v63 = vpack.c.bf16 %v388_v59, %v387_v55  ;;  %v4078_v3 = vld [vmem:[%s6160_s3 + $0xa4] ss:$8 sps:$4 sm:$0xff]   ;;  %v389_v4 = vld [vmem:[%s4691_s27 + $0x90] sm:$0xff] }
  0x67   : > { %v390_v5 = vld [vmem:[%s4691_s27 + $0x98] sm:$0xff]  ;;  %v4080_v6 = vld [vmem:[%s6160_s3 + $0xa0] ss:$8 sps:$4 sm:$0xff]   ;;  %v393_v18 = vld [vmem:[%s4691_s27 + $0xb0] sm:$0xff] }
  0x68   : > { %v461_v7 = vpack.c.bf16 %v390_v5, %v389_v4  ;;  %v4081_v9 = vld [vmem:[%s6160_s3 + $0xb4] ss:$8 sps:$4 sm:$0xff]   ;;  %v4083_v10 = vld [vmem:[%s6160_s3 + $0xb0] ss:$8 sps:$4 sm:$0xff]   ;;  %v4095_v23 = vld [vmem:[%s6160_s3 + $0xe0] ss:$8 sps:$4 sm:$0xff]  }
  0x69   : > { %586 = vmatpush1.bf16.msra.mxu0 %v4038_v12  ;;  %1331 = vmatpush1.bf16.msra.mxu1 %v4056_v42  ;;  %v4084_v11 = vld [vmem:[#allocation4 + $0x10] ss:$8 sps:$4 sm:$0xff]   ;;  %v392_v12 = vld [vmem:[%s4691_s27 + $0xa8] sm:$0xff]  ;;  %v4090_v17 = vld [vmem:[%s6160_s3 + $0xd4] ss:$8 sps:$4 sm:$0xff]  }
  0x6a   : > { %587 = vmatprep.subr.bf16.mxu0 %v4039_v13  ;;  %1332 = vmatprep.subr.bf16.mxu1 %v4057_v43  ;;  %v4086_v13 = vld [vmem:[#allocation4 + $0x14] ss:$8 sps:$4 sm:$0xff]   ;;  %v4092_v20 = vld [vmem:[%s6160_s3 + $0xd0] ss:$8 sps:$4 sm:$0xff]   ;;  %v396_v26 = vld [vmem:[%s4691_s27 + $0xc8] sm:$0xff] }
  0x6b   : > { %v4096_v24 = vld [vmem:[%s6160_s3 + $0xf4] ss:$8 sps:$4 sm:$0xff]   ;;  %v4098_v27 = vld [vmem:[%s6160_s3 + $0xf0] ss:$8 sps:$4 sm:$0xff]   ;;  %v4099_v29 = vld [vmem:[#allocation4 + $0x20] ss:$8 sps:$4 sm:$0xff]  }
  0x6c   : > { %v4101_v30 = vld [vmem:[#allocation4 + $0x24] ss:$8 sps:$4 sm:$0xff]   ;;  %v397_v31 = vld [vmem:[%s4691_s27 + $0xd0] sm:$0xff]  ;;  %v398_v32 = vld [vmem:[%s4691_s27 + $0xd8] sm:$0xff] }
  0x6d   : > { %588 = vmatpush1.bf16.msra.mxu0 %v4041_v14  ;;  %1333 = vmatpush1.bf16.msra.mxu1 %v4059_v46  ;;  %v4087_v14 = vld [vmem:[%s6160_s3 + $0xc4] ss:$8 sps:$4 sm:$0xff]   ;;  %v4102_v37 = vld [vmem:[#allocation4 + $0x30] ss:$8 sps:$4 sm:$0xff]   ;;  %v4104_v38 = vld [vmem:[#allocation4 + $0x34] ss:$8 sps:$4 sm:$0xff]  }
  0x6e   : > { %589 = vmatprep.subr.bf16.mxu0 %v4042_v15  ;;  %1334 = vmatprep.subr.bf16.mxu1 %v4060_v48  ;;  %v4089_v15 = vld [vmem:[%s6160_s3 + $0xc0] ss:$8 sps:$4 sm:$0xff]   ;;  %v401_v39 = vld [vmem:[%s4691_s27 + $0xf0] sm:$0xff]  ;;  %v4107_v46 = vld [vmem:[#allocation4 + $0x44] ss:$8 sps:$4 sm:$0xff]  }
  0x6f   : > { %v399_v34 = vld [vmem:[%s4691_s27 + $0xe0] sm:$0xff]  ;;  %v400_v35 = vld [vmem:[%s4691_s27 + $0xe8] sm:$0xff]  ;;  %v406_v48 = vld [vmem:[%s4691_s27 + $0x118] sm:$0xff] }
  0x70   : > { %v466_v36 = vpack.c.bf16 %v400_v35, %v399_v34  ;;  %v403_v42 = vld [vmem:[%s4691_s27 + $0x100] sm:$0xff]  ;;  %v404_v43 = vld [vmem:[%s4691_s27 + $0x108] sm:$0xff]  ;;  %v409_v55 = vld [vmem:[%s4691_s27 + $0x130] sm:$0xff] }
  0x71   : > { %590 = vmatpush1.bf16.msra.mxu0 %v4044_v16  ;;  %1335 = vmatpush1.bf16.msra.mxu1 %v4062_v49  ;;  %v462_v16 = vpack.c.bf16 %v392_v12, %v391_v8  ;;  %v468_v44 = vpack.c.bf16 %v404_v43, %v403_v42  ;;  %v4105_v45 = vld [vmem:[#allocation4 + $0x40] ss:$8 sps:$4 sm:$0xff]   ;;  %v417_v8 = vld [vmem:[%s4691_s27 + $0x170] sm:$0xff] }
  0x72   : > { %1336 = vmatprep.subr.bf16.mxu1 %v4063_v50  ;;  %2073 = vmatprep.subr.bf16.mxu0 %v4071_v60  ;;  %v407_v50 = vld [vmem:[%s4691_s27 + $0x120] sm:$0xff]  ;;  %v408_v51 = vld [vmem:[%s4691_s27 + $0x128] sm:$0xff] }
  0x73   : > { %v470_v52 = vpack.c.bf16 %v408_v51, %v407_v50  ;;  %v412_v59 = vld [vmem:[%s4691_s27 + $0x148] sm:$0xff] }
  0x74   : > { %608 = vmatmul.mubr.bf16.vlgmr.msra.gmra.mrb[0].mxu0 %v452_v19  ;;  %v394_v19 = vld [vmem:[%s4691_s27 + $0xb8] sm:$0xff]  ;;  %v416_v4 = vld [vmem:[%s4691_s27 + $0x168] sm:$0xff] }
  0x75   : > { %617 = vmatprep.mubr.bf16.mxu0 %v4515_v0  ;;  %1337 = vmatpush1.bf16.msra.mxu1 %v4065_v53  ;;  %v463_v21 = vpack.c.bf16 %v394_v19, %v393_v18  ;;  %v4108_v53 = vld [vmem:[#allocation4 + $0x50] ss:$8 sps:$4 sm:$0xff]   ;;  %v420_v12 = vld [vmem:[%s4691_s27 + $0x188] sm:$0xff]  ;;  %v485_v19 = vlaneseq }
  0x76   : > { %1338 = vmatprep.subr.bf16.mxu1 %v4066_v56  ;;  %2074 = vmatpush1.bf16.msra.mxu0 %v4069_v58  ;;  %v410_v56 = vld [vmem:[%s4691_s27 + $0x138] sm:$0xff]  ;;  %v411_v58 = vld [vmem:[%s4691_s27 + $0x140] sm:$0xff] }
  0x77   : > { %2075 = vmatprep.subr.bf16.mxu0 %v4086_v13  ;;  %v472_v60 = vpack.c.bf16 %v412_v59, %v411_v58  ;;  %v4123_v58 = vld [vmem:[#allocation4 + $0xa0] ss:$8 sps:$4 sm:$0xff]   ;;  %v4125_v59 = vld [vmem:[#allocation4 + $0xa4] ss:$8 sps:$4 sm:$0xff]  }
  0x79   : > { %1339 = vmatpush1.bf16.msra.mxu1 %v4068_v57  ;;  %v471_v57 = vpack.c.bf16 %v410_v56, %v409_v55 }
  0x7a   : > { %1340 = vmatprep.subr.bf16.mxu1 %v4072_v61  ;;  %2076 = vmatpush1.bf16.msra.mxu0 %v4084_v11  ;;  %v4111_v61 = vld [vmem:[#allocation4 + $0x60] ss:$8 sps:$4 sm:$0xff]  }
  0x7b   : > { %2077 = vmatprep.subr.bf16.mxu0 %v4101_v30  ;;  %v419_v11 = vld [vmem:[%s4691_s27 + $0x180] sm:$0xff]  ;;  %v425_v30 = vld [vmem:[%s4691_s27 + $0x1b0] sm:$0xff] }
  0x7c   : > { %618 = vmatmul.mubr.bf16.gmra.mrb[4].mxu0 %v453_v22  ;;  %v4093_v22 = vld [vmem:[%s6160_s3 + $0xe4] ss:$8 sps:$4 sm:$0xff]   ;;  %v476_v13 = vpack.c.bf16 %v420_v12, %v419_v11 }
  0x7d   : > { %627 = vmatprep.mubr.bf16.mxu0 %v4515_v0  ;;  %1341 = vmatpush1.bf16.msra.mxu1 %v4074_v62  ;;  %v4113_v62 = vld [vmem:[#allocation4 + $0x64] ss:$8 sps:$4 sm:$0xff]  }
  0x7e   : > { %1342 = vmatprep.subr.bf16.mxu1 %v4075_v1  ;;  %2078 = vmatpush1.bf16.msra.mxu0 %v4099_v29  ;;  %v414_v1 = vld [vmem:[%s4691_s27 + $0x158] sm:$0xff] }
  0x7f   : > { %2079 = vmatprep.subr.bf16.mxu0 %v4104_v38 }
  0x81   : > { %1343 = vmatpush1.bf16.msra.mxu1 %v4077_v2 }
  0x82   : > { %1344 = vmatprep.subr.bf16.mxu1 %v4078_v3  ;;  %2080 = vmatpush1.bf16.msra.mxu0 %v4102_v37  ;;  %v415_v3 = vld [vmem:[%s4691_s27 + $0x160] sm:$0xff] }
  0x83   : > { %2081 = vmatprep.subr.bf16.mxu0 %v4107_v46  ;;  %v474_v5 = vpack.c.bf16 %v416_v4, %v415_v3  ;;  %v427_v46 = vld [vmem:[%s4691_s27 + $0x1c0] sm:$0xff]  ;;  %v430_v3 = vld [vmem:[%s4691_s27 + $0x1d8] sm:$0xff] }
  0x84   : > { %628 = vmatmul.mubr.bf16.gmra.mrb[8].mxu0 %v454_v25  ;;  %v395_v25 = vld [vmem:[%s4691_s27 + $0xc0] sm:$0xff] }
  0x85   : > { %637 = vmatprep.mubr.bf16.mxu0 %v4515_v0  ;;  %1345 = vmatpush1.bf16.msra.mxu1 %v4080_v6  ;;  %v4114_v6 = vld [vmem:[#allocation4 + $0x70] ss:$8 sps:$4 sm:$0xff]  }
  0x86   : > { %1346 = vmatprep.subr.bf16.mxu1 %v4081_v9  ;;  %2082 = vmatpush1.bf16.msra.mxu0 %v4105_v45  ;;  %v418_v9 = vld [vmem:[%s4691_s27 + $0x178] sm:$0xff] }
  0x89   : > { %1347 = vmatpush1.bf16.msra.mxu1 %v4083_v10  ;;  %v475_v10 = vpack.c.bf16 %v418_v9, %v417_v8 }
  0x8a   : > { %1348 = vmatprep.subr.bf16.mxu1 %v4087_v14  ;;  %v4117_v14 = vld [vmem:[#allocation4 + $0x80] ss:$8 sps:$4 sm:$0xff]  }
  0x8c   : > { %638 = vmatmul.mubr.bf16.gmra.mrb[12].mxu0 %v455_v28  ;;  %v464_v28 = vpack.c.bf16 %v396_v26, %v395_v25  ;;  %v451_v25 = vld [vmem:[%s6159_s2] sm:$0x3] }
  0x8d   : > { %647 = vmatprep.mubr.bf16.mxu0 %v4515_v0  ;;  %1349 = vmatpush1.bf16.msra.mxu1 %v4089_v15  ;;  %v4119_v15 = vld [vmem:[#allocation4 + $0x84] ss:$8 sps:$4 sm:$0xff]  }
  0x8e   : > { %1350 = vmatprep.subr.bf16.mxu1 %v4090_v17  ;;  %v422_v17 = vld [vmem:[%s4691_s27 + $0x198] sm:$0xff] }
  0x91   : > { %1351 = vmatpush1.bf16.msra.mxu1 %v4092_v20  ;;  %v486_v20 = vshrl.u32 %v485_v19, 7  ;;  %v431_v19 = vld [vmem:[%s4691_s27 + $0x1e0] sm:$0xff] }
  0x92   : > { %1352 = vmatprep.subr.bf16.mxu1 %v4093_v22  ;;  %v424_v22 = vld [vmem:[%s4691_s27 + $0x1a8] sm:$0xff] }
  0x93   : > { %v4932_v26 = vsub.s32 1, %v486_v20 }
  0x94   : > { %648 = vmatmul.mubr.bf16.gmra.mrb[16].mxu0 %v456_v33  ;;  %v465_v33 = vpack.c.bf16 %v398_v32, %v397_v31  ;;  %v426_v31 = vld [vmem:[%s4691_s27 + $0x1b8] sm:$0xff] }
  0x95   : > { %657 = vmatprep.mubr.bf16.mxu0 %v4515_v0  ;;  %1353 = vmatpush1.bf16.msra.mxu1 %v4095_v23  ;;  %v4941_v32 = vrot.slane %v451_v25, %v4932_v26 }
  0x96   : > { %1354 = vmatprep.subr.bf16.mxu1 %v4096_v24  ;;  %v4927_v24 = vsub.s32 0, %v486_v20  ;;  %v432_v20 = vld [vmem:[%s4691_s27 + $0x1e8] sm:$0xff] }
  0x98   : > { %v4935_v29 = vrot.slane %v451_v25, %v4927_v24 }
  0x99   : > { %1355 = vmatpush1.bf16.msra.mxu1 %v4098_v27  ;;  %v4120_v27 = vld [vmem:[#allocation4 + $0x90] ss:$8 sps:$4 sm:$0xff]  }
  0x9a   : > { %3936 = vmatprep.subr.bf16.mxu1 %v4515_v0 }
  0x9c   : > { %658 = vmatmul.mubr.bf16.gmra.mrb[20].mxu0 %v457_v40  ;;  %v402_v40 = vld [vmem:[%s4691_s27 + $0xf8] sm:$0xff] }
  0x9d   : > { %667 = vmatprep.mubr.bf16.mxu0 %v4515_v0  ;;  %v467_v41 = vpack.c.bf16 %v402_v40, %v401_v39 }
  0xa4   : > { %668 = vmatmul.mubr.bf16.gmra.mrb[24].mxu0 %v458_v47  ;;  %v405_v47 = vld [vmem:[%s4691_s27 + $0x110] sm:$0xff] }
  0xa5   : > { %677 = vmatprep.mubr.bf16.mxu0 %v4515_v0  ;;  %v469_v49 = vpack.c.bf16 %v406_v48, %v405_v47  ;;  %v428_v47 = vld [vmem:[%s4691_s27 + $0x1c8] sm:$0xff] }
  0xac   : > { %678 = vmatmul.mubr.bf16.gmra.mrb[28].mxu0 %v459_v54  ;;  %v4110_v54 = vld [vmem:[#allocation4 + $0x54] ss:$8 sps:$4 sm:$0xff]  }
  0xad   : > { %687 = vmatprep.mubr.bf16.mxu0 %v4515_v0  ;;  %2083 = vmatprep.subr.bf16.mxu0 %v4110_v54 }
  0xae   : > { %2084 = vmatpush1.bf16.msra.mxu0 %v4108_v53  ;;  %v480_v53 = vpack.c.bf16 %v428_v47, %v427_v46 }
  0xaf   : > { %2085 = vmatprep.subr.bf16.mxu0 %v4113_v62 }
  0xb2   : > { %2086 = vmatpush1.bf16.msra.mxu0 %v4111_v61 }
  0xb4   : > { %688 = vmatmul.mubr.bf16.gmra.mrb[32].mxu0 %v460_v63  ;;  %v413_v63 = vld [vmem:[%s4691_s27 + $0x150] sm:$0xff] }
  0xb5   : > { %697 = vmatprep.mubr.bf16.mxu0 %v4515_v0  ;;  %v473_v2 = vpack.c.bf16 %v414_v1, %v413_v63 }
  0xbc   : > { %698 = vmatmul.mubr.bf16.gmra.mrb[36].mxu0 %v461_v7  ;;  %v4116_v7 = vld [vmem:[#allocation4 + $0x74] ss:$8 sps:$4 sm:$0xff]  }
  0xbd   : > { %707 = vmatprep.mubr.bf16.mxu0 %v4515_v0  ;;  %2087 = vmatprep.subr.bf16.mxu0 %v4116_v7 }
  0xbe   : > { %2088 = vmatpush1.bf16.msra.mxu0 %v4114_v6 }
  0xbf   : > { %2089 = vmatprep.subr.bf16.mxu0 %v4119_v15 }
  0xc2   : > { %2090 = vmatpush1.bf16.msra.mxu0 %v4117_v14 }
  0xc4   : > { %708 = vmatmul.mubr.bf16.gmra.mrb[40].mxu0 %v462_v16  ;;  %v421_v16 = vld [vmem:[%s4691_s27 + $0x190] sm:$0xff] }
  0xc5   : > { %717 = vmatprep.mubr.bf16.mxu0 %v4515_v0  ;;  %v477_v18 = vpack.c.bf16 %v422_v17, %v421_v16 }
  0xcc   : > { %718 = vmatmul.mubr.bf16.gmra.mrb[44].mxu0 %v463_v21  ;;  %v423_v21 = vld [vmem:[%s4691_s27 + $0x1a0] sm:$0xff] }
  0xcd   : > { %727 = vmatprep.mubr.bf16.mxu0 %v4515_v0  ;;  %v478_v23 = vpack.c.bf16 %v424_v22, %v423_v21 }
  0xd4   : > { %728 = vmatmul.mubr.bf16.gmra.mrb[48].mxu0 %v464_v28  ;;  %v4122_v28 = vld [vmem:[#allocation4 + $0x94] ss:$8 sps:$4 sm:$0xff]  }
  0xd5   : > { %737 = vmatprep.mubr.bf16.mxu0 %v4515_v0  ;;  %2091 = vmatprep.subr.bf16.mxu0 %v4122_v28  ;;  %v482_v28 = vpack.c.bf16 %v432_v20, %v431_v19 }
  0xd6   : > { %2092 = vmatpush1.bf16.msra.mxu0 %v4120_v27 }
  0xd7   : > { %2093 = vmatprep.subr.bf16.mxu0 %v4125_v59 }
  0xda   : > { %2094 = vmatpush1.bf16.msra.mxu0 %v4123_v58 }
  0xdc   : > { %738 = vmatmul.mubr.bf16.gmra.mrb[52].mxu0 %v465_v33 }
  0xdd   : > { %747 = vmatprep.mubr.bf16.mxu0 %v4515_v0 }
  0xe4   : > { %748 = vmatmul.mubr.bf16.gmra.mrb[56].mxu0 %v466_v36  ;;  %v479_v36 = vpack.c.bf16 %v426_v31, %v425_v30 }
  0xe5   : > { %757 = vmatprep.mubr.bf16.mxu0 %v4515_v0 }
  0xec   : > { %758 = vmatmul.mubr.bf16.gmra.mrb[60].mxu0 %v467_v41 }
  0xed   : > { %767 = vmatprep.mubr.bf16.mxu0 %v4515_v0 }
  0xf4   : > { %768 = vmatmul.mubr.bf16.gmra.mrb[64].mxu0 %v468_v44 }
  0xf5   : > { %777 = vmatprep.mubr.bf16.mxu0 %v4515_v0 }
  0xfc   : > { %778 = vmatmul.mubr.bf16.gmra.mrb[68].mxu0 %v469_v49 }
  0xfd   : > { %787 = vmatprep.mubr.bf16.mxu0 %v4515_v0 }
 0x104   : > { %788 = vmatmul.mubr.bf16.gmra.mrb[72].mxu0 %v470_v52 }
 0x105   : > { %797 = vmatprep.mubr.bf16.mxu0 %v4515_v0 }
 0x10c   : > { %798 = vmatmul.mubr.bf16.gmra.mrb[76].mxu0 %v471_v57 }
 0x10d   : > { %807 = vmatprep.mubr.bf16.mxu0 %v4515_v0 }
 0x114   : > { %808 = vmatmul.mubr.bf16.gmra.mrb[80].mxu0 %v472_v60 }
 0x115   : > { %817 = vmatprep.mubr.bf16.mxu0 %v4515_v0 }
 0x11c   : > { %818 = vmatmul.mubr.bf16.gmra.mrb[84].mxu0 %v473_v2  ;;  %v429_v2 = vld [vmem:[%s4691_s27 + $0x1d0] sm:$0xff] }
 0x11d   : > { %827 = vmatprep.mubr.bf16.mxu0 %v4515_v0  ;;  %v481_v9 = vpack.c.bf16 %v430_v3, %v429_v2 }
 0x124   : > { %828 = vmatmul.mubr.bf16.gmra.mrb[88].mxu0 %v474_v5 }
 0x125   : > { %837 = vmatprep.mubr.bf16.mxu0 %v4515_v0 }
 0x12c   : > { %838 = vmatmul.mubr.bf16.gmra.mrb[92].mxu0 %v475_v10 }
 0x12d   : > { %847 = vmatprep.mubr.bf16.mxu0 %v4515_v0 }
 0x134   : > { %848 = vmatmul.mubr.bf16.gmra.mrb[96].mxu0 %v476_v13 }
 0x135   : > { %857 = vmatprep.mubr.bf16.mxu0 %v4515_v0 }
 0x13c   : > { %858 = vmatmul.mubr.bf16.gmra.mrb[100].mxu0 %v477_v18 }
 0x13d   : > { %867 = vmatprep.mubr.bf16.mxu0 %v4515_v0 }
 0x144   : > { %868 = vmatmul.mubr.bf16.gmra.mrb[104].mxu0 %v478_v23 }
 0x145   : > { %877 = vmatprep.mubr.bf16.mxu0 %v4515_v0 }
 0x147   : > { %v609_v33 = vpop.f32.mrb[0].mxu0 }
 0x148   : > { %v610_v34 = vadd.f32 %v609_v33, %v4935_v29  ;;  %v611_v35 = vpop.f32.mrb[1].mxu0 }
 0x149   : > { %v613_v37 = vpop.f32.mrb[2].mxu0  ;;  %v612_v38 = vadd.f32 %v611_v35, %v4941_v32  ;;  %v4126_v35 = vld [vmem:[#allocation4 + $0xb0] ss:$8 sps:$4 sm:$0xff]  }
 0x14a   : > { %v614_v39 = vadd.f32 %v613_v37, %v4935_v29  ;;  %v615_v40 = vpop.f32.mrb[3].mxu0  ;;  %v928_v42 = vmax.f32 %v610_v34, 0.0 }
 0x14b   : > { %v616_v41 = vadd.f32 %v615_v40, %v4941_v32  ;;  %v929_v44 = vmax.f32 %v612_v38, 0.0 }
 0x14c   : > { %v930_v43 = vmax.f32 %v614_v39, 0.0  ;;  %878 = vmatmul.mubr.bf16.gmra.mrb[108].mxu0 %v479_v36  ;;  %v4128_v36 = vld [vmem:[#allocation4 + $0xb4] ss:$8 sps:$4 sm:$0xff]  }
 0x14d   : > { %v931_v45 = vmax.f32 %v616_v41, 0.0  ;;  %887 = vmatprep.mubr.bf16.mxu0 %v4515_v0  ;;  %2095 = vmatprep.subr.bf16.mxu0 %v4128_v36 }
 0x14e   : > { %v1089_v48 = vpack.c.bf16 %v930_v43, %v928_v42  ;;  %v433_v42 = vld [vmem:[%s4691_s27 + $0x1f0] sm:$0xff]  ;;  %v434_v43 = vld [vmem:[%s4691_s27 + $0x1f8] sm:$0xff]  ;;  %2096 = vmatpush1.bf16.msra.mxu0 %v4126_v35 }
 0x14f   : > { %v619_v49 = vpop.f32.mrb[4].mxu0  ;;  %v1090_v50 = vpack.c.bf16 %v931_v45, %v929_v44 }
 0x150   : > { %v620_v51 = vadd.f32 %v619_v49, %v4935_v29  ;;  %v621_v52 = vpop.f32.mrb[5].mxu0  ;;  %v483_v49 = vpack.c.bf16 %v434_v43, %v433_v42 }
 0x151   : > { %v622_v54 = vadd.f32 %v621_v52, %v4941_v32  ;;  %v623_v55 = vpop.f32.mrb[6].mxu0  ;;  %1356 = vmatprep.mubr.bf16.mxu1 %v1090_v50 }
 0x152   : > { %v624_v56 = vadd.f32 %v623_v55, %v4935_v29  ;;  %v625_v57 = vpop.f32.mrb[7].mxu0  ;;  %1357 = vmatmul.mubr.bf16.vlgmr.msra.gmra.mrb[0].mxu1 %v1089_v48  ;;  %v932_v61 = vmax.f32 %v620_v51, 0.0 }
 0x153   : > { %v626_v60 = vadd.f32 %v625_v57, %v4941_v32  ;;  %v933_v63 = vmax.f32 %v622_v54, 0.0 }
 0x154   : > { %v934_v62 = vmax.f32 %v624_v56, 0.0  ;;  %888 = vmatmul.mubr.bf16.gmra.mrb[112].mxu0 %v480_v53 }
 0x155   : > { %v935_v1 = vmax.f32 %v626_v60, 0.0  ;;  %897 = vmatprep.mubr.bf16.mxu0 %v4515_v0 }
 0x156   : > { %v1091_v4 = vpack.c.bf16 %v934_v62, %v932_v61 }
 0x157   : > { %v629_v5 = vpop.f32.mrb[8].mxu0  ;;  %v1092_v6 = vpack.c.bf16 %v935_v1, %v933_v63 }
 0x158   : > { %v630_v7 = vadd.f32 %v629_v5, %v4935_v29  ;;  %v631_v8 = vpop.f32.mrb[9].mxu0 }
 0x159   : > { %v632_v10 = vadd.f32 %v631_v8, %v4941_v32  ;;  %v633_v11 = vpop.f32.mrb[10].mxu0  ;;  %1366 = vmatprep.mubr.bf16.mxu1 %v1092_v6  ;;  %v4129_v6 = vld [vmem:[#allocation4 + $0xc0] ss:$8 sps:$4 sm:$0xff]  }
 0x15a   : > { %v634_v12 = vadd.f32 %v633_v11, %v4935_v29  ;;  %v635_v13 = vpop.f32.mrb[11].mxu0  ;;  %1367 = vmatmul.mubr.bf16.gmra.mrb[4].mxu1 %v1091_v4  ;;  %v936_v15 = vmax.f32 %v630_v7, 0.0  ;;  %v4131_v7 = vld [vmem:[#allocation4 + $0xc4] ss:$8 sps:$4 sm:$0xff]  }
 0x15b   : > { %v636_v14 = vadd.f32 %v635_v13, %v4941_v32  ;;  %v937_v17 = vmax.f32 %v632_v10, 0.0  ;;  %2097 = vmatprep.subr.bf16.mxu0 %v4131_v7  ;;  %v4135_v7 = vld [vmem:[#allocation4 + $0xe0] ss:$8 sps:$4 sm:$0xff]  }
 0x15c   : > { %v938_v16 = vmax.f32 %v634_v12, 0.0  ;;  %898 = vmatmul.mubr.bf16.gmra.mrb[116].mxu0 %v481_v9 }
 0x15d   : > { %v939_v18 = vmax.f32 %v636_v14, 0.0  ;;  %907 = vmatprep.mubr.bf16.mxu0 %v4515_v0  ;;  %2098 = vmatpush1.bf16.msra.mxu0 %v4129_v6 }
 0x15e   : > { %v1093_v21 = vpack.c.bf16 %v938_v16, %v936_v15 }
 0x15f   : > { %v1094_v22 = vpack.c.bf16 %v939_v18, %v937_v17  ;;  %v639_v23 = vpop.f32.mrb[12].mxu0 }
 0x160   : > { %v640_v25 = vadd.f32 %v639_v23, %v4935_v29  ;;  %v641_v27 = vpop.f32.mrb[13].mxu0 }
 0x161   : > { %v642_v30 = vadd.f32 %v641_v27, %v4941_v32  ;;  %v643_v31 = vpop.f32.mrb[14].mxu0  ;;  %1376 = vmatprep.mubr.bf16.mxu1 %v1094_v22 }
 0x162   : > { %v644_v33 = vadd.f32 %v643_v31, %v4935_v29  ;;  %v645_v34 = vpop.f32.mrb[15].mxu0  ;;  %1377 = vmatmul.mubr.bf16.gmra.mrb[8].mxu1 %v1093_v21  ;;  %v940_v38 = vmax.f32 %v640_v25, 0.0 }
 0x163   : > { %v646_v37 = vadd.f32 %v645_v34, %v4941_v32  ;;  %v941_v40 = vmax.f32 %v642_v30, 0.0 }
 0x164   : > { %v942_v39 = vmax.f32 %v644_v33, 0.0  ;;  %908 = vmatmul.mubr.bf16.gmra.mrb[120].mxu0 %v482_v28 }
 0x165   : > { %v943_v41 = vmax.f32 %v646_v37, 0.0  ;;  %917 = vmatprep.mubr.bf16.mxu0 %v4515_v0 }
 0x166   : > { %v1095_v44 = vpack.c.bf16 %v942_v39, %v940_v38 }
 0x167   : > { %v1096_v45 = vpack.c.bf16 %v943_v41, %v941_v40  ;;  %v649_v46 = vpop.f32.mrb[16].mxu0  ;;  %v4132_v40 = vld [vmem:[#allocation4 + $0xd0] ss:$8 sps:$4 sm:$0xff]   ;;  %v4134_v41 = vld [vmem:[#allocation4 + $0xd4] ss:$8 sps:$4 sm:$0xff]  }
 0x168   : > { %v650_v47 = vadd.f32 %v649_v46, %v4935_v29  ;;  %v651_v48 = vpop.f32.mrb[17].mxu0  ;;  %2099 = vmatprep.subr.bf16.mxu0 %v4134_v41 }
 0x169   : > { %v652_v50 = vadd.f32 %v651_v48, %v4941_v32  ;;  %v653_v51 = vpop.f32.mrb[18].mxu0  ;;  %1386 = vmatprep.mubr.bf16.mxu1 %v1096_v45  ;;  %2100 = vmatpush1.bf16.msra.mxu0 %v4132_v40 }
 0x16a   : > { %v654_v52 = vadd.f32 %v653_v51, %v4935_v29  ;;  %v655_v53 = vpop.f32.mrb[19].mxu0  ;;  %1387 = vmatmul.mubr.bf16.gmra.mrb[12].mxu1 %v1095_v44  ;;  %v944_v55 = vmax.f32 %v650_v47, 0.0 }
 0x16b   : > { %v656_v54 = vadd.f32 %v655_v53, %v4941_v32  ;;  %v945_v57 = vmax.f32 %v652_v50, 0.0 }
 0x16c   : > { %v946_v56 = vmax.f32 %v654_v52, 0.0  ;;  %918 = vmatmul.mubr.bf16.gmra.mrb[124].mxu0 %v483_v49 }
 0x16d   : > { %v947_v58 = vmax.f32 %v656_v54, 0.0 }
 0x16e   : > { %v1097_v59 = vpack.c.bf16 %v946_v56, %v944_v55 }
 0x16f   : > { %v1098_v60 = vpack.c.bf16 %v947_v58, %v945_v57  ;;  %v659_v61 = vpop.f32.mrb[20].mxu0 }
 0x170   : > { %v660_v62 = vadd.f32 %v659_v61, %v4935_v29  ;;  %v661_v63 = vpop.f32.mrb[21].mxu0 }
 0x171   : > { %v662_v1 = vadd.f32 %v661_v63, %v4941_v32  ;;  %v663_v2 = vpop.f32.mrb[22].mxu0  ;;  %1396 = vmatprep.mubr.bf16.mxu1 %v1098_v60 }
 0x172   : > { %v948_v3 = vmax.f32 %v660_v62, 0.0  ;;  %v664_v4 = vadd.f32 %v663_v2, %v4935_v29  ;;  %v665_v5 = vpop.f32.mrb[23].mxu0  ;;  %1397 = vmatmul.mubr.bf16.gmra.mrb[16].mxu1 %v1097_v59 }
 0x173   : > { %v949_v8 = vmax.f32 %v662_v1, 0.0  ;;  %v666_v9 = vadd.f32 %v665_v5, %v4941_v32 }
 0x174   : > { %v950_v10 = vmax.f32 %v664_v4, 0.0 }
 0x175   : > { %v951_v11 = vmax.f32 %v666_v9, 0.0 }
 0x176   : > { %v1099_v12 = vpack.c.bf16 %v950_v10, %v948_v3 }
 0x177   : > { %v1100_v13 = vpack.c.bf16 %v951_v11, %v949_v8  ;;  %v669_v14 = vpop.f32.mrb[24].mxu0  ;;  %v4137_v8 = vld [vmem:[#allocation4 + $0xe4] ss:$8 sps:$4 sm:$0xff]  }
 0x178   : > { %v670_v15 = vadd.f32 %v669_v14, %v4935_v29  ;;  %v671_v16 = vpop.f32.mrb[25].mxu0  ;;  %2101 = vmatprep.subr.bf16.mxu0 %v4137_v8 }
 0x179   : > { %v672_v17 = vadd.f32 %v671_v16, %v4941_v32  ;;  %v673_v18 = vpop.f32.mrb[26].mxu0  ;;  %1406 = vmatprep.mubr.bf16.mxu1 %v1100_v13  ;;  %2102 = vmatpush1.bf16.msra.mxu0 %v4135_v7 }
 0x17a   : > { %v952_v19 = vmax.f32 %v670_v15, 0.0  ;;  %v674_v20 = vadd.f32 %v673_v18, %v4935_v29  ;;  %v675_v21 = vpop.f32.mrb[27].mxu0  ;;  %1407 = vmatmul.mubr.bf16.gmra.mrb[20].mxu1 %v1099_v12 }
 0x17b   : > { %v953_v22 = vmax.f32 %v672_v17, 0.0  ;;  %v676_v23 = vadd.f32 %v675_v21, %v4941_v32 }
 0x17c   : > { %v954_v25 = vmax.f32 %v674_v20, 0.0 }
 0x17d   : > { %v955_v27 = vmax.f32 %v676_v23, 0.0 }
 0x17e   : > { %v1101_v28 = vpack.c.bf16 %v954_v25, %v952_v19 }
 0x17f   : > { %v1102_v30 = vpack.c.bf16 %v955_v27, %v953_v22  ;;  %v679_v31 = vpop.f32.mrb[28].mxu0 }
 0x180   : > { %v680_v33 = vadd.f32 %v679_v31, %v4935_v29  ;;  %v681_v34 = vpop.f32.mrb[29].mxu0 }
 0x181   : > { %v682_v35 = vadd.f32 %v681_v34, %v4941_v32  ;;  %v683_v36 = vpop.f32.mrb[30].mxu0  ;;  %1416 = vmatprep.mubr.bf16.mxu1 %v1102_v30  ;;  %v5002_v34 = vld [vmem:[%s6164_s7] sm:$0xff]  }
 0x182   : > { %v956_v37 = vmax.f32 %v680_v33, 0.0  ;;  %v684_v38 = vadd.f32 %v683_v36, %v4935_v29  ;;  %v685_v39 = vpop.f32.mrb[31].mxu0  ;;  %1417 = vmatmul.mubr.bf16.gmra.mrb[24].mxu1 %v1101_v28 }
 0x183   : > { %v957_v42 = vmax.f32 %v682_v35, 0.0  ;;  %v686_v43 = vadd.f32 %v685_v39, %v4941_v32  ;;  %3952 = vmatpush1.bf16.msra.mxu1 %v5002_v34 }
 0x184   : > { %v958_v44 = vmax.f32 %v684_v38, 0.0  ;;  %3937 = vmatprep.subr.bf16.mxu1 %v4515_v0 }
 0x185   : > { %v959_v45 = vmax.f32 %v686_v43, 0.0  ;;  %v4141_v43 = vld [vmem:[#allocation4 + $0xf4] ss:$8 sps:$4 sm:$0xff]  }
 0x186   : > { %v1103_v46 = vpack.c.bf16 %v958_v44, %v956_v37  ;;  %2103 = vmatprep.subr.bf16.mxu0 %v4141_v43 }
 0x187   : > { %v1104_v47 = vpack.c.bf16 %v959_v45, %v957_v42  ;;  %v689_v48 = vpop.f32.mrb[32].mxu0  ;;  %v4139_v42 = vld [vmem:[#allocation4 + $0xf0] ss:$8 sps:$4 sm:$0xff]  }
 0x188   : > { %v690_v49 = vadd.f32 %v689_v48, %v4935_v29  ;;  %v691_v50 = vpop.f32.mrb[33].mxu0  ;;  %2104 = vmatpush1.bf16.msra.mxu0 %v4139_v42 }
 0x189   : > { %v692_v51 = vadd.f32 %v691_v50, %v4941_v32  ;;  %v693_v52 = vpop.f32.mrb[34].mxu0  ;;  %1426 = vmatprep.mubr.bf16.mxu1 %v1104_v47  ;;  %2753 = vmatprep.subr.bf16.mxu0 %v4515_v0 }
 0x18a   : > { %v960_v53 = vmax.f32 %v690_v49, 0.0  ;;  %v694_v54 = vadd.f32 %v693_v52, %v4935_v29  ;;  %v695_v55 = vpop.f32.mrb[35].mxu0  ;;  %1427 = vmatmul.mubr.bf16.gmra.mrb[28].mxu1 %v1103_v46 }
 0x18b   : > { %v961_v56 = vmax.f32 %v692_v51, 0.0  ;;  %v696_v57 = vadd.f32 %v695_v55, %v4941_v32 }
 0x18c   : > { %v962_v58 = vmax.f32 %v694_v54, 0.0 }
 0x18d   : > { %v963_v59 = vmax.f32 %v696_v57, 0.0 }
 0x18e   : > { %v1105_v60 = vpack.c.bf16 %v962_v58, %v960_v53 }
 0x18f   : > { %v1106_v61 = vpack.c.bf16 %v963_v59, %v961_v56  ;;  %v699_v62 = vpop.f32.mrb[36].mxu0 }
 0x190   : > { %v700_v63 = vadd.f32 %v699_v62, %v4935_v29  ;;  %v701_v1 = vpop.f32.mrb[37].mxu0 }
 0x191   : > { %v702_v2 = vadd.f32 %v701_v1, %v4941_v32  ;;  %v703_v3 = vpop.f32.mrb[38].mxu0  ;;  %1436 = vmatprep.mubr.bf16.mxu1 %v1106_v61 }
 0x192   : > { %v964_v4 = vmax.f32 %v700_v63, 0.0  ;;  %v704_v5 = vadd.f32 %v703_v3, %v4935_v29  ;;  %v705_v6 = vpop.f32.mrb[39].mxu0  ;;  %1437 = vmatmul.mubr.bf16.gmra.mrb[32].mxu1 %v1105_v60 }
 0x193   : > { %v965_v9 = vmax.f32 %v702_v2, 0.0  ;;  %v706_v10 = vadd.f32 %v705_v6, %v4941_v32  ;;  %v5020_v6 = vld [vmem:[%s6164_s7 + $0x8] sm:$0xff]  }
 0x194   : > { %v966_v11 = vmax.f32 %v704_v5, 0.0  ;;  %3953 = vmatpush1.bf16.msra.mxu1 %v5020_v6 }
 0x195   : > { %v967_v12 = vmax.f32 %v706_v10, 0.0  ;;  %3938 = vmatprep.subr.bf16.mxu1 %v4515_v0 }
 0x196   : > { %v1107_v13 = vpack.c.bf16 %v966_v11, %v964_v4 }
 0x197   : > { %v1108_v14 = vpack.c.bf16 %v967_v12, %v965_v9  ;;  %v709_v15 = vpop.f32.mrb[40].mxu0 }
 0x198   : > { %v710_v16 = vadd.f32 %v709_v15, %v4935_v29  ;;  %v711_v17 = vpop.f32.mrb[41].mxu0 }
 0x199   : > { %v712_v18 = vadd.f32 %v711_v17, %v4941_v32  ;;  %v713_v19 = vpop.f32.mrb[42].mxu0  ;;  %1446 = vmatprep.mubr.bf16.mxu1 %v1108_v14 }
 0x19a   : > { %v968_v20 = vmax.f32 %v710_v16, 0.0  ;;  %v714_v21 = vadd.f32 %v713_v19, %v4935_v29  ;;  %v715_v22 = vpop.f32.mrb[43].mxu0  ;;  %1447 = vmatmul.mubr.bf16.gmra.mrb[36].mxu1 %v1107_v13 }
 0x19b   : > { %v969_v23 = vmax.f32 %v712_v18, 0.0  ;;  %v716_v25 = vadd.f32 %v715_v22, %v4941_v32 }
 0x19c   : > { %v970_v27 = vmax.f32 %v714_v21, 0.0 }
 0x19d   : > { %v971_v28 = vmax.f32 %v716_v25, 0.0 }
 0x19e   : > { %v1109_v30 = vpack.c.bf16 %v970_v27, %v968_v20 }
 0x19f   : > { %v1110_v31 = vpack.c.bf16 %v971_v28, %v969_v23  ;;  %v719_v33 = vpop.f32.mrb[44].mxu0 }
 0x1a0   : > { %v720_v35 = vadd.f32 %v719_v33, %v4935_v29  ;;  %v721_v36 = vpop.f32.mrb[45].mxu0 }
 0x1a1   : > { %v722_v37 = vadd.f32 %v721_v36, %v4941_v32  ;;  %v723_v38 = vpop.f32.mrb[46].mxu0  ;;  %1456 = vmatprep.mubr.bf16.mxu1 %v1110_v31 }
 0x1a2   : > { %v972_v39 = vmax.f32 %v720_v35, 0.0  ;;  %v724_v40 = vadd.f32 %v723_v38, %v4935_v29  ;;  %v725_v41 = vpop.f32.mrb[47].mxu0  ;;  %1457 = vmatmul.mubr.bf16.gmra.mrb[40].mxu1 %v1109_v30 }
 0x1a3   : > { %v973_v44 = vmax.f32 %v722_v37, 0.0  ;;  %v726_v45 = vadd.f32 %v725_v41, %v4941_v32 }
 0x1a4   : > { %v974_v46 = vmax.f32 %v724_v40, 0.0  ;;  %v5035_v40 = vld [vmem:[%s6164_s7 + $0x10] sm:$0xff]  }
 0x1a5   : > { %v975_v47 = vmax.f32 %v726_v45, 0.0  ;;  %3954 = vmatpush1.bf16.msra.mxu1 %v5035_v40 }
 0x1a6   : > { %v1111_v48 = vpack.c.bf16 %v974_v46, %v972_v39  ;;  %3939 = vmatprep.subr.bf16.mxu1 %v4515_v0 }
 0x1a7   : > { %v1112_v49 = vpack.c.bf16 %v975_v47, %v973_v44  ;;  %v729_v50 = vpop.f32.mrb[48].mxu0 }
 0x1a8   : > { %v730_v51 = vadd.f32 %v729_v50, %v4935_v29  ;;  %v731_v52 = vpop.f32.mrb[49].mxu0 }
 0x1a9   : > { %v732_v53 = vadd.f32 %v731_v52, %v4941_v32  ;;  %v733_v54 = vpop.f32.mrb[50].mxu0  ;;  %1466 = vmatprep.mubr.bf16.mxu1 %v1112_v49 }
 0x1aa   : > { %v976_v55 = vmax.f32 %v730_v51, 0.0  ;;  %v734_v56 = vadd.f32 %v733_v54, %v4935_v29  ;;  %v735_v57 = vpop.f32.mrb[51].mxu0  ;;  %1467 = vmatmul.mubr.bf16.gmra.mrb[44].mxu1 %v1111_v48 }
 0x1ab   : > { %v977_v58 = vmax.f32 %v732_v53, 0.0  ;;  %v736_v59 = vadd.f32 %v735_v57, %v4941_v32 }
 0x1ac   : > { %v978_v60 = vmax.f32 %v734_v56, 0.0 }
 0x1ad   : > { %v979_v61 = vmax.f32 %v736_v59, 0.0 }
 0x1ae   : > { %v1113_v62 = vpack.c.bf16 %v978_v60, %v976_v55 }
 0x1af   : > { %v1114_v63 = vpack.c.bf16 %v979_v61, %v977_v58  ;;  %v739_v1 = vpop.f32.mrb[52].mxu0 }
 0x1b0   : > { %v740_v2 = vadd.f32 %v739_v1, %v4935_v29  ;;  %v741_v3 = vpop.f32.mrb[53].mxu0 }
 0x1b1   : > { %v742_v4 = vadd.f32 %v741_v3, %v4941_v32  ;;  %v743_v5 = vpop.f32.mrb[54].mxu0  ;;  %1476 = vmatprep.mubr.bf16.mxu1 %v1114_v63 }
 0x1b2   : > { %v980_v7 = vmax.f32 %v740_v2, 0.0  ;;  %v744_v8 = vadd.f32 %v743_v5, %v4935_v29  ;;  %v745_v9 = vpop.f32.mrb[55].mxu0  ;;  %1477 = vmatmul.mubr.bf16.gmra.mrb[48].mxu1 %v1113_v62 }
 0x1b3   : > { %v981_v10 = vmax.f32 %v742_v4, 0.0  ;;  %v746_v11 = vadd.f32 %v745_v9, %v4941_v32 }
 0x1b4   : > { %v982_v12 = vmax.f32 %v744_v8, 0.0 }
 0x1b5   : > { %v983_v13 = vmax.f32 %v746_v11, 0.0 }
 0x1b6   : > { %v1115_v14 = vpack.c.bf16 %v982_v12, %v980_v7  ;;  %v5050_v7 = vld [vmem:[%s6164_s7 + $0x18] sm:$0xff]  }
 0x1b7   : > { %v1116_v15 = vpack.c.bf16 %v983_v13, %v981_v10  ;;  %v749_v16 = vpop.f32.mrb[56].mxu0  ;;  %3955 = vmatpush1.bf16.msra.mxu1 %v5050_v7 }
 0x1b8   : > { %v750_v17 = vadd.f32 %v749_v16, %v4935_v29  ;;  %v751_v18 = vpop.f32.mrb[57].mxu0  ;;  %3940 = vmatprep.subr.bf16.mxu1 %v4515_v0 }
 0x1b9   : > { %v752_v19 = vadd.f32 %v751_v18, %v4941_v32  ;;  %v753_v20 = vpop.f32.mrb[58].mxu0  ;;  %1486 = vmatprep.mubr.bf16.mxu1 %v1116_v15 }
 0x1ba   : > { %v984_v21 = vmax.f32 %v750_v17, 0.0  ;;  %v754_v22 = vadd.f32 %v753_v20, %v4935_v29  ;;  %v755_v23 = vpop.f32.mrb[59].mxu0  ;;  %1487 = vmatmul.mubr.bf16.gmra.mrb[52].mxu1 %v1115_v14 }
 0x1bb   : > { %v985_v25 = vmax.f32 %v752_v19, 0.0  ;;  %v756_v27 = vadd.f32 %v755_v23, %v4941_v32 }
 0x1bc   : > { %v986_v28 = vmax.f32 %v754_v22, 0.0 }
 0x1bd   : > { %v987_v30 = vmax.f32 %v756_v27, 0.0 }
 0x1be   : > { %v1117_v31 = vpack.c.bf16 %v986_v28, %v984_v21 }
 0x1bf   : > { %v1118_v33 = vpack.c.bf16 %v987_v30, %v985_v25  ;;  %v759_v35 = vpop.f32.mrb[60].mxu0 }
 0x1c0   : > { %v760_v36 = vadd.f32 %v759_v35, %v4935_v29  ;;  %v761_v37 = vpop.f32.mrb[61].mxu0 }
 0x1c1   : > { %v762_v38 = vadd.f32 %v761_v37, %v4941_v32  ;;  %v763_v39 = vpop.f32.mrb[62].mxu0  ;;  %1496 = vmatprep.mubr.bf16.mxu1 %v1118_v33 }
 0x1c2   : > { %v988_v41 = vmax.f32 %v760_v36, 0.0  ;;  %v764_v42 = vadd.f32 %v763_v39, %v4935_v29  ;;  %v765_v43 = vpop.f32.mrb[63].mxu0  ;;  %1497 = vmatmul.mubr.bf16.gmra.mrb[56].mxu1 %v1117_v31 }
 0x1c3   : > { %v989_v44 = vmax.f32 %v762_v38, 0.0  ;;  %v766_v45 = vadd.f32 %v765_v43, %v4941_v32 }
 0x1c4   : > { %v990_v46 = vmax.f32 %v764_v42, 0.0  ;;  %v5065_v42 = vld [vmem:[%s6164_s7 + $0x20] sm:$0xff]  }
 0x1c5   : > { %v991_v47 = vmax.f32 %v766_v45, 0.0  ;;  %3956 = vmatpush1.bf16.msra.mxu1 %v5065_v42 }
 0x1c6   : > { %v1119_v48 = vpack.c.bf16 %v990_v46, %v988_v41  ;;  %3941 = vmatprep.subr.bf16.mxu1 %v4515_v0 }
 0x1c7   : > { %v1120_v49 = vpack.c.bf16 %v991_v47, %v989_v44  ;;  %v769_v50 = vpop.f32.mrb[64].mxu0 }
 0x1c8   : > { %v770_v51 = vadd.f32 %v769_v50, %v4935_v29  ;;  %v771_v52 = vpop.f32.mrb[65].mxu0 }
 0x1c9   : > { %v772_v53 = vadd.f32 %v771_v52, %v4941_v32  ;;  %v773_v54 = vpop.f32.mrb[66].mxu0  ;;  %1506 = vmatprep.mubr.bf16.mxu1 %v1120_v49 }
 0x1ca   : > { %v992_v55 = vmax.f32 %v770_v51, 0.0  ;;  %v774_v56 = vadd.f32 %v773_v54, %v4935_v29  ;;  %v775_v57 = vpop.f32.mrb[67].mxu0  ;;  %1507 = vmatmul.mubr.bf16.gmra.mrb[60].mxu1 %v1119_v48 }
 0x1cb   : > { %v993_v58 = vmax.f32 %v772_v53, 0.0  ;;  %v776_v59 = vadd.f32 %v775_v57, %v4941_v32 }
 0x1cc   : > { %v994_v60 = vmax.f32 %v774_v56, 0.0 }
 0x1cd   : > { %v995_v61 = vmax.f32 %v776_v59, 0.0 }
 0x1ce   : > { %v1121_v62 = vpack.c.bf16 %v994_v60, %v992_v55 }
 0x1cf   : > { %v1122_v63 = vpack.c.bf16 %v995_v61, %v993_v58  ;;  %v779_v1 = vpop.f32.mrb[68].mxu0 }
 0x1d0   : > { %v780_v2 = vadd.f32 %v779_v1, %v4935_v29  ;;  %v781_v3 = vpop.f32.mrb[69].mxu0 }
 0x1d1   : > { %v782_v4 = vadd.f32 %v781_v3, %v4941_v32  ;;  %v783_v5 = vpop.f32.mrb[70].mxu0  ;;  %1516 = vmatprep.mubr.bf16.mxu1 %v1122_v63 }
 0x1d2   : > { %v996_v8 = vmax.f32 %v780_v2, 0.0  ;;  %v784_v9 = vadd.f32 %v783_v5, %v4935_v29  ;;  %v785_v10 = vpop.f32.mrb[71].mxu0  ;;  %1517 = vmatmul.mubr.bf16.gmra.mrb[64].mxu1 %v1121_v62 }
 0x1d3   : > { %v997_v11 = vmax.f32 %v782_v4, 0.0  ;;  %v786_v12 = vadd.f32 %v785_v10, %v4941_v32  ;;  %v5080_v10 = vld [vmem:[%s6164_s7 + $0x28] sm:$0xff]  }
 0x1d4   : > { %v998_v13 = vmax.f32 %v784_v9, 0.0  ;;  %3957 = vmatpush1.bf16.msra.mxu1 %v5080_v10 }
 0x1d5   : > { %v999_v14 = vmax.f32 %v786_v12, 0.0  ;;  %3942 = vmatprep.subr.bf16.mxu1 %v4515_v0 }
 0x1d6   : > { %v1123_v15 = vpack.c.bf16 %v998_v13, %v996_v8 }
 0x1d7   : > { %v1124_v16 = vpack.c.bf16 %v999_v14, %v997_v11  ;;  %v789_v17 = vpop.f32.mrb[72].mxu0 }
 0x1d8   : > { %v790_v18 = vadd.f32 %v789_v17, %v4935_v29  ;;  %v791_v19 = vpop.f32.mrb[73].mxu0 }
 0x1d9   : > { %v792_v20 = vadd.f32 %v791_v19, %v4941_v32  ;;  %v793_v21 = vpop.f32.mrb[74].mxu0  ;;  %1526 = vmatprep.mubr.bf16.mxu1 %v1124_v16 }
 0x1da   : > { %v1000_v22 = vmax.f32 %v790_v18, 0.0  ;;  %v794_v23 = vadd.f32 %v793_v21, %v4935_v29  ;;  %v795_v25 = vpop.f32.mrb[75].mxu0  ;;  %1527 = vmatmul.mubr.bf16.gmra.mrb[68].mxu1 %v1123_v15 }
 0x1db   : > { %v1001_v27 = vmax.f32 %v792_v20, 0.0  ;;  %v796_v28 = vadd.f32 %v795_v25, %v4941_v32 }
 0x1dc   : > { %v1002_v30 = vmax.f32 %v794_v23, 0.0 }
 0x1dd   : > { %v1003_v31 = vmax.f32 %v796_v28, 0.0 }
 0x1de   : > { %v1125_v33 = vpack.c.bf16 %v1002_v30, %v1000_v22 }
 0x1df   : > { %v1126_v35 = vpack.c.bf16 %v1003_v31, %v1001_v27  ;;  %v799_v36 = vpop.f32.mrb[76].mxu0 }
 0x1e0   : > { %v800_v37 = vadd.f32 %v799_v36, %v4935_v29  ;;  %v801_v38 = vpop.f32.mrb[77].mxu0 }
 0x1e1   : > { %v802_v39 = vadd.f32 %v801_v38, %v4941_v32  ;;  %v803_v41 = vpop.f32.mrb[78].mxu0  ;;  %1536 = vmatprep.mubr.bf16.mxu1 %v1126_v35 }
 0x1e2   : > { %v1004_v43 = vmax.f32 %v800_v37, 0.0  ;;  %v804_v44 = vadd.f32 %v803_v41, %v4935_v29  ;;  %v805_v45 = vpop.f32.mrb[79].mxu0  ;;  %1537 = vmatmul.mubr.bf16.gmra.mrb[72].mxu1 %v1125_v33 }
 0x1e3   : > { %v1005_v46 = vmax.f32 %v802_v39, 0.0  ;;  %v806_v47 = vadd.f32 %v805_v45, %v4941_v32 }
 0x1e4   : > { %v1006_v48 = vmax.f32 %v804_v44, 0.0 }
 0x1e5   : > { %v1007_v49 = vmax.f32 %v806_v47, 0.0 }
 0x1e6   : > { %v1127_v50 = vpack.c.bf16 %v1006_v48, %v1004_v43 }
 0x1e7   : > { %v1128_v51 = vpack.c.bf16 %v1007_v49, %v1005_v46  ;;  %v809_v52 = vpop.f32.mrb[80].mxu0  ;;  %v5095_v46 = vld [vmem:[%s6164_s7 + $0x30] sm:$0xff]  }
 0x1e8   : > { %v810_v53 = vadd.f32 %v809_v52, %v4935_v29  ;;  %v811_v54 = vpop.f32.mrb[81].mxu0  ;;  %3958 = vmatpush1.bf16.msra.mxu1 %v5095_v46 }
 0x1e9   : > { %v812_v55 = vadd.f32 %v811_v54, %v4941_v32  ;;  %v813_v56 = vpop.f32.mrb[82].mxu0  ;;  %1546 = vmatprep.mubr.bf16.mxu1 %v1128_v51  ;;  %3943 = vmatprep.subr.bf16.mxu1 %v4515_v0 }
 0x1ea   : > { %v1008_v57 = vmax.f32 %v810_v53, 0.0  ;;  %v814_v58 = vadd.f32 %v813_v56, %v4935_v29  ;;  %v815_v59 = vpop.f32.mrb[83].mxu0  ;;  %1547 = vmatmul.mubr.bf16.gmra.mrb[76].mxu1 %v1127_v50 }
 0x1eb   : > { %v1009_v60 = vmax.f32 %v812_v55, 0.0  ;;  %v816_v61 = vadd.f32 %v815_v59, %v4941_v32 }
 0x1ec   : > { %v1010_v62 = vmax.f32 %v814_v58, 0.0 }
 0x1ed   : > { %v1011_v63 = vmax.f32 %v816_v61, 0.0 }
 0x1ee   : > { %v1129_v1 = vpack.c.bf16 %v1010_v62, %v1008_v57 }
 0x1ef   : > { %v1130_v2 = vpack.c.bf16 %v1011_v63, %v1009_v60  ;;  %v819_v3 = vpop.f32.mrb[84].mxu0 }
 0x1f0   : > { %v820_v4 = vadd.f32 %v819_v3, %v4935_v29  ;;  %v821_v5 = vpop.f32.mrb[85].mxu0 }
 0x1f1   : > { %v822_v8 = vadd.f32 %v821_v5, %v4941_v32  ;;  %v823_v9 = vpop.f32.mrb[86].mxu0  ;;  %1556 = vmatprep.mubr.bf16.mxu1 %v1130_v2 }
 0x1f2   : > { %v1012_v11 = vmax.f32 %v820_v4, 0.0  ;;  %v824_v12 = vadd.f32 %v823_v9, %v4935_v29  ;;  %v825_v13 = vpop.f32.mrb[87].mxu0  ;;  %1557 = vmatmul.mubr.bf16.gmra.mrb[80].mxu1 %v1129_v1 }
 0x1f3   : > { %v1013_v14 = vmax.f32 %v822_v8, 0.0  ;;  %v826_v15 = vadd.f32 %v825_v13, %v4941_v32 }
 0x1f4   : > { %v1014_v16 = vmax.f32 %v824_v12, 0.0 }
 0x1f5   : > { %v1015_v17 = vmax.f32 %v826_v15, 0.0  ;;  %v5110_v15 = vld [vmem:[%s6164_s7 + $0x38] sm:$0xff]  }
 0x1f6   : > { %v1131_v18 = vpack.c.bf16 %v1014_v16, %v1012_v11  ;;  %3959 = vmatpush1.bf16.msra.mxu1 %v5110_v15 }
 0x1f7   : > { %v1132_v19 = vpack.c.bf16 %v1015_v17, %v1013_v14  ;;  %v829_v20 = vpop.f32.mrb[88].mxu0  ;;  %3944 = vmatprep.subr.bf16.mxu1 %v4515_v0 }
 0x1f8   : > { %v830_v21 = vadd.f32 %v829_v20, %v4935_v29  ;;  %v831_v22 = vpop.f32.mrb[89].mxu0 }
 0x1f9   : > { %v832_v23 = vadd.f32 %v831_v22, %v4941_v32  ;;  %v833_v25 = vpop.f32.mrb[90].mxu0  ;;  %1566 = vmatprep.mubr.bf16.mxu1 %v1132_v19 }
 0x1fa   : > { %v1016_v27 = vmax.f32 %v830_v21, 0.0  ;;  %v834_v28 = vadd.f32 %v833_v25, %v4935_v29  ;;  %v835_v30 = vpop.f32.mrb[91].mxu0  ;;  %1567 = vmatmul.mubr.bf16.gmra.mrb[84].mxu1 %v1131_v18 }
 0x1fb   : > { %v1017_v31 = vmax.f32 %v832_v23, 0.0  ;;  %v836_v33 = vadd.f32 %v835_v30, %v4941_v32 }
 0x1fc   : > { %v1018_v35 = vmax.f32 %v834_v28, 0.0 }
 0x1fd   : > { %v1019_v36 = vmax.f32 %v836_v33, 0.0 }
 0x1fe   : > { %v1133_v37 = vpack.c.bf16 %v1018_v35, %v1016_v27 }
 0x1ff   : > { %v1134_v38 = vpack.c.bf16 %v1019_v36, %v1017_v31  ;;  %v839_v39 = vpop.f32.mrb[92].mxu0 }
 0x200   : > { %v840_v41 = vadd.f32 %v839_v39, %v4935_v29  ;;  %v841_v43 = vpop.f32.mrb[93].mxu0 }
 0x201   : > { %v842_v44 = vadd.f32 %v841_v43, %v4941_v32  ;;  %v843_v45 = vpop.f32.mrb[94].mxu0  ;;  %1576 = vmatprep.mubr.bf16.mxu1 %v1134_v38 }
 0x202   : > { %v1020_v47 = vmax.f32 %v840_v41, 0.0  ;;  %v844_v48 = vadd.f32 %v843_v45, %v4935_v29  ;;  %v845_v49 = vpop.f32.mrb[95].mxu0  ;;  %1577 = vmatmul.mubr.bf16.gmra.mrb[88].mxu1 %v1133_v37 }
 0x203   : > { %v1021_v50 = vmax.f32 %v842_v44, 0.0  ;;  %v846_v51 = vadd.f32 %v845_v49, %v4941_v32 }
 0x204   : > { %v1022_v52 = vmax.f32 %v844_v48, 0.0  ;;  %v1088_v48 = vld [vmem:[%s6161_s4] sm:$0x3] }
 0x205   : > { %v1023_v53 = vmax.f32 %v846_v51, 0.0 }
 0x206   : > { %v1135_v54 = vpack.c.bf16 %v1022_v52, %v1020_v47 }
 0x207   : > { %v1136_v55 = vpack.c.bf16 %v1023_v53, %v1021_v50  ;;  %v849_v56 = vpop.f32.mrb[96].mxu0  ;;  %v5128_v53 = vld [vmem:[%s6164_s7 + $0x40] sm:$0xff]  }
 0x208   : > { %v850_v57 = vadd.f32 %v849_v56, %v4935_v29  ;;  %v851_v58 = vpop.f32.mrb[97].mxu0  ;;  %3960 = vmatpush1.bf16.msra.mxu1 %v5128_v53 }
 0x209   : > { %v852_v59 = vadd.f32 %v851_v58, %v4941_v32  ;;  %v853_v60 = vpop.f32.mrb[98].mxu0  ;;  %1586 = vmatprep.mubr.bf16.mxu1 %v1136_v55  ;;  %3945 = vmatprep.subr.bf16.mxu1 %v4515_v0 }
 0x20a   : > { %v1024_v61 = vmax.f32 %v850_v57, 0.0  ;;  %v854_v62 = vadd.f32 %v853_v60, %v4935_v29  ;;  %v855_v63 = vpop.f32.mrb[99].mxu0  ;;  %1587 = vmatmul.mubr.bf16.gmra.mrb[92].mxu1 %v1135_v54  ;;  %v5132_v57 = vrot.slane %v1088_v48, %v4927_v24  ;;  %v5136_v60 = vrot.slane %v1088_v48, %v4932_v26 }
 0x20b   : > { %v1025_v1 = vmax.f32 %v852_v59, 0.0  ;;  %v856_v2 = vadd.f32 %v855_v63, %v4941_v32 }
 0x20c   : > { %v1026_v3 = vmax.f32 %v854_v62, 0.0 }
 0x20d   : > { %v1027_v4 = vmax.f32 %v856_v2, 0.0 }
 0x20e   : > { %v1137_v5 = vpack.c.bf16 %v1026_v3, %v1024_v61 }
 0x20f   : > { %v1138_v8 = vpack.c.bf16 %v1027_v4, %v1025_v1  ;;  %v859_v9 = vpop.f32.mrb[100].mxu0 }
 0x210   : > { %v860_v11 = vadd.f32 %v859_v9, %v4935_v29  ;;  %v861_v12 = vpop.f32.mrb[101].mxu0 }
 0x211   : > { %v862_v13 = vadd.f32 %v861_v12, %v4941_v32  ;;  %v863_v14 = vpop.f32.mrb[102].mxu0  ;;  %1596 = vmatprep.mubr.bf16.mxu1 %v1138_v8 }
 0x212   : > { %v1028_v16 = vmax.f32 %v860_v11, 0.0  ;;  %v864_v17 = vadd.f32 %v863_v14, %v4935_v29  ;;  %v865_v18 = vpop.f32.mrb[103].mxu0  ;;  %1597 = vmatmul.mubr.bf16.gmra.mrb[96].mxu1 %v1137_v5 }
 0x213   : > { %v1029_v19 = vmax.f32 %v862_v13, 0.0  ;;  %v866_v20 = vadd.f32 %v865_v18, %v4941_v32 }
 0x214   : > { %v1030_v21 = vmax.f32 %v864_v17, 0.0 }
 0x215   : > { %v1031_v22 = vmax.f32 %v866_v20, 0.0 }
 0x216   : > { %v1139_v23 = vpack.c.bf16 %v1030_v21, %v1028_v16 }
 0x217   : > { %v1140_v25 = vpack.c.bf16 %v1031_v22, %v1029_v19  ;;  %v869_v27 = vpop.f32.mrb[104].mxu0 }
 0x218   : > { %v870_v28 = vadd.f32 %v869_v27, %v4935_v29  ;;  %v871_v30 = vpop.f32.mrb[105].mxu0 }
 0x219   : > { %v872_v31 = vadd.f32 %v871_v30, %v4941_v32  ;;  %v873_v33 = vpop.f32.mrb[106].mxu0  ;;  %1606 = vmatprep.mubr.bf16.mxu1 %v1140_v25 }
 0x21a   : > { %v1032_v35 = vmax.f32 %v870_v28, 0.0  ;;  %v874_v36 = vadd.f32 %v873_v33, %v4935_v29  ;;  %v875_v37 = vpop.f32.mrb[107].mxu0  ;;  %1607 = vmatmul.mubr.bf16.gmra.mrb[100].mxu1 %v1139_v23 }
 0x21b   : > { %v1033_v38 = vmax.f32 %v872_v31, 0.0  ;;  %v876_v39 = vadd.f32 %v875_v37, %v4941_v32 }
 0x21c   : > { %v1034_v41 = vmax.f32 %v874_v36, 0.0 }
 0x21d   : > { %v1035_v43 = vmax.f32 %v876_v39, 0.0 }
 0x21e   : > { %v1141_v44 = vpack.c.bf16 %v1034_v41, %v1032_v35 }
 0x21f   : > { %v1142_v45 = vpack.c.bf16 %v1035_v43, %v1033_v38  ;;  %v879_v47 = vpop.f32.mrb[108].mxu0 }
 0x220   : > { %v880_v49 = vadd.f32 %v879_v47, %v4935_v29  ;;  %v881_v50 = vpop.f32.mrb[109].mxu0 }
 0x221   : > { %v882_v51 = vadd.f32 %v881_v50, %v4941_v32  ;;  %v883_v52 = vpop.f32.mrb[110].mxu0  ;;  %1616 = vmatprep.mubr.bf16.mxu1 %v1142_v45 }
 0x222   : > { %v1036_v54 = vmax.f32 %v880_v49, 0.0  ;;  %v884_v55 = vadd.f32 %v883_v52, %v4935_v29  ;;  %v885_v56 = vpop.f32.mrb[111].mxu0  ;;  %1617 = vmatmul.mubr.bf16.gmra.mrb[104].mxu1 %v1141_v44 }
 0x223   : > { %v1037_v58 = vmax.f32 %v882_v51, 0.0  ;;  %v886_v59 = vadd.f32 %v885_v56, %v4941_v32  ;;  %v5158_v56 = vld [vmem:[%s6164_s7 + $0x48] sm:$0xff]  }
 0x224   : > { %v1038_v61 = vmax.f32 %v884_v55, 0.0  ;;  %3961 = vmatpush1.bf16.msra.mxu1 %v5158_v56 }
 0x225   : > { %v1039_v62 = vmax.f32 %v886_v59, 0.0  ;;  %v1358_v63 = vpop.f32.mrb[0].mxu1  ;;  %3946 = vmatprep.subr.bf16.mxu1 %v4515_v0 }
 0x226   : > { %v1143_v1 = vpack.c.bf16 %v1038_v61, %v1036_v54  ;;  %v1359_v2 = vadd.f32 %v1358_v63, %v5132_v57  ;;  %v1360_v3 = vpop.f32.mrb[1].mxu1 }
 0x227   : > { %v1144_v4 = vpack.c.bf16 %v1039_v62, %v1037_v58  ;;  %v1361_v5 = vadd.f32 %v1360_v3, %v5136_v60  ;;  %v889_v8 = vpop.f32.mrb[112].mxu0  ;;  %v1362_v9 = vpop.f32.mrb[2].mxu1 }
 0x228   : > { %v890_v11 = vadd.f32 %v889_v8, %v4935_v29  ;;  %v1363_v12 = vadd.f32 %v1362_v9, %v5132_v57  ;;  %v891_v13 = vpop.f32.mrb[113].mxu0  ;;  %v1364_v14 = vpop.f32.mrb[3].mxu1  ;;  %v1677_v19 = vmax.f32 %v1359_v2, 0.0 }
 0x229   : > { %v892_v16 = vadd.f32 %v891_v13, %v4941_v32  ;;  %v1365_v17 = vadd.f32 %v1364_v14, %v5136_v60  ;;  %v893_v18 = vpop.f32.mrb[114].mxu0  ;;  %1626 = vmatprep.mubr.bf16.mxu1 %v1144_v4  ;;  %v1678_v25 = vmax.f32 %v1361_v5, 0.0 }
 0x22a   : > { %v1040_v20 = vmax.f32 %v890_v11, 0.0  ;;  %v1679_v21 = vmax.f32 %v1363_v12, 0.0  ;;  %v894_v22 = vadd.f32 %v893_v18, %v4935_v29  ;;  %v895_v23 = vpop.f32.mrb[115].mxu0  ;;  %1627 = vmatmul.mubr.bf16.gmra.mrb[108].mxu1 %v1143_v1 }
 0x22b   : > { %v1041_v27 = vmax.f32 %v892_v16, 0.0  ;;  %v1680_v28 = vmax.f32 %v1365_v17, 0.0  ;;  %v896_v30 = vadd.f32 %v895_v23, %v4941_v32 }
 0x22c   : > { %v1838_v31 = vpack.c.bf16 %v1679_v21, %v1677_v19  ;;  %v1042_v33 = vmax.f32 %v894_v22, 0.0 }
 0x22d   : > { %v1839_v35 = vpack.c.bf16 %v1680_v28, %v1678_v25  ;;  %v1043_v36 = vmax.f32 %v896_v30, 0.0  ;;  %v1368_v37 = vpop.f32.mrb[4].mxu1 }
 0x22e   : > { %v1145_v38 = vpack.c.bf16 %v1042_v33, %v1040_v20  ;;  %v1369_v39 = vadd.f32 %v1368_v37, %v5132_v57  ;;  %v1370_v41 = vpop.f32.mrb[5].mxu1 }
 0x22f   : > { %v1146_v43 = vpack.c.bf16 %v1043_v36, %v1041_v27  ;;  %v1371_v44 = vadd.f32 %v1370_v41, %v5136_v60  ;;  %v899_v45 = vpop.f32.mrb[116].mxu0  ;;  %v1372_v47 = vpop.f32.mrb[6].mxu1  ;;  %2105 = vmatprep.mubr.bf16.mxu0 %v1839_v35 }
 0x230   : > { %v900_v48 = vadd.f32 %v899_v45, %v4935_v29  ;;  %v1373_v49 = vadd.f32 %v1372_v47, %v5132_v57  ;;  %v901_v50 = vpop.f32.mrb[117].mxu0  ;;  %v1374_v51 = vpop.f32.mrb[7].mxu1  ;;  %2106 = vmatmul.mubr.bf16.vlgmr.msra.gmra.mrb[128].mxu0 %v1838_v31  ;;  %v1681_v58 = vmax.f32 %v1369_v39, 0.0 }
 0x231   : > { %v902_v52 = vadd.f32 %v901_v50, %v4941_v32  ;;  %v1375_v54 = vadd.f32 %v1374_v51, %v5136_v60  ;;  %v903_v55 = vpop.f32.mrb[118].mxu0  ;;  %1636 = vmatprep.mubr.bf16.mxu1 %v1146_v43  ;;  %2754 = vmatpush1.bf16.msra.mxu0 %v5002_v34  ;;  %v1682_v1 = vmax.f32 %v1371_v44, 0.0 }
 0x232   : > { %v1044_v59 = vmax.f32 %v900_v48, 0.0  ;;  %v1683_v61 = vmax.f32 %v1373_v49, 0.0  ;;  %v904_v62 = vadd.f32 %v903_v55, %v4935_v29  ;;  %v905_v63 = vpop.f32.mrb[119].mxu0  ;;  %1637 = vmatmul.mubr.bf16.gmra.mrb[112].mxu1 %v1145_v38  ;;  %2755 = vmatprep.subr.bf16.mxu0 %v4515_v0 }
 0x233   : > { %v1045_v2 = vmax.f32 %v902_v52, 0.0  ;;  %v1684_v3 = vmax.f32 %v1375_v54, 0.0  ;;  %v906_v4 = vadd.f32 %v905_v63, %v4941_v32 }
 0x234   : > { %v1840_v34 = vpack.c.bf16 %v1683_v61, %v1681_v58  ;;  %v1046_v5 = vmax.f32 %v904_v62, 0.0 }
 0x235   : > { %v1841_v8 = vpack.c.bf16 %v1684_v3, %v1682_v1  ;;  %v1047_v9 = vmax.f32 %v906_v4, 0.0  ;;  %v1378_v11 = vpop.f32.mrb[8].mxu1  ;;  %2756 = vmatpush1.bf16.msra.mxu0 %v5020_v6  ;;  %v5189_v1 = vld [vmem:[%s6164_s7 + $0x50] sm:$0xff]  }
 0x236   : > { %v1147_v12 = vpack.c.bf16 %v1046_v5, %v1044_v59  ;;  %v1379_v13 = vadd.f32 %v1378_v11, %v5132_v57  ;;  %v1380_v14 = vpop.f32.mrb[9].mxu1  ;;  %2757 = vmatprep.subr.bf16.mxu0 %v4515_v0  ;;  %3962 = vmatpush1.bf16.msra.mxu1 %v5189_v1 }
 0x237   : > { %v1148_v16 = vpack.c.bf16 %v1047_v9, %v1045_v2  ;;  %v1381_v17 = vadd.f32 %v1380_v14, %v5136_v60  ;;  %v909_v18 = vpop.f32.mrb[120].mxu0  ;;  %v1382_v19 = vpop.f32.mrb[10].mxu1  ;;  %2115 = vmatprep.mubr.bf16.mxu0 %v1841_v8  ;;  %3947 = vmatprep.subr.bf16.mxu1 %v4515_v0 }
 0x238   : > { %v910_v20 = vadd.f32 %v909_v18, %v4935_v29  ;;  %v1383_v21 = vadd.f32 %v1382_v19, %v5132_v57  ;;  %v911_v22 = vpop.f32.mrb[121].mxu0  ;;  %v1384_v23 = vpop.f32.mrb[11].mxu1  ;;  %2116 = vmatmul.mubr.bf16.gmra.mrb[132].mxu0 %v1840_v34  ;;  %v1685_v28 = vmax.f32 %v1379_v13, 0.0 }
 0x239   : > { %v912_v6 = vadd.f32 %v911_v22, %v4941_v32  ;;  %v1385_v25 = vadd.f32 %v1384_v23, %v5136_v60  ;;  %v913_v27 = vpop.f32.mrb[122].mxu0  ;;  %1646 = vmatprep.mubr.bf16.mxu1 %v1148_v16  ;;  %2758 = vmatpush1.bf16.msra.mxu0 %v5035_v40  ;;  %v1686_v36 = vmax.f32 %v1381_v17, 0.0 }
 0x23a   : > { %v1048_v30 = vmax.f32 %v910_v20, 0.0  ;;  %v1687_v31 = vmax.f32 %v1383_v21, 0.0  ;;  %v914_v33 = vadd.f32 %v913_v27, %v4935_v29  ;;  %v915_v35 = vpop.f32.mrb[123].mxu0  ;;  %1647 = vmatmul.mubr.bf16.gmra.mrb[116].mxu1 %v1147_v12  ;;  %2759 = vmatprep.subr.bf16.mxu0 %v4515_v0 }
 0x23b   : > { %v1049_v37 = vmax.f32 %v912_v6, 0.0  ;;  %v1688_v38 = vmax.f32 %v1385_v25, 0.0  ;;  %v916_v39 = vadd.f32 %v915_v35, %v4941_v32 }
 0x23c   : > { %v1842_v41 = vpack.c.bf16 %v1687_v31, %v1685_v28  ;;  %v1050_v43 = vmax.f32 %v914_v33, 0.0 }
 0x23d   : > { %v1843_v44 = vpack.c.bf16 %v1688_v38, %v1686_v36  ;;  %v1051_v45 = vmax.f32 %v916_v39, 0.0  ;;  %v1388_v47 = vpop.f32.mrb[12].mxu1  ;;  %2760 = vmatpush1.bf16.msra.mxu0 %v5050_v7 }
 0x23e   : > { %v1149_v40 = vpack.c.bf16 %v1050_v43, %v1048_v30  ;;  %v1389_v48 = vadd.f32 %v1388_v47, %v5132_v57  ;;  %v1390_v49 = vpop.f32.mrb[13].mxu1  ;;  %2761 = vmatprep.subr.bf16.mxu0 %v4515_v0 }
 0x23f   : > { %v1150_v50 = vpack.c.bf16 %v1051_v45, %v1049_v37  ;;  %v1391_v51 = vadd.f32 %v1390_v49, %v5136_v60  ;;  %v919_v52 = vpop.f32.mrb[124].mxu0  ;;  %v1392_v54 = vpop.f32.mrb[14].mxu1  ;;  %2125 = vmatprep.mubr.bf16.mxu0 %v1843_v44 }
 0x240   : > { %v920_v55 = vadd.f32 %v919_v52, %v4935_v29  ;;  %v1393_v58 = vadd.f32 %v1392_v54, %v5132_v57  ;;  %v921_v59 = vpop.f32.mrb[125].mxu0  ;;  %v1394_v61 = vpop.f32.mrb[15].mxu1  ;;  %2126 = vmatmul.mubr.bf16.gmra.mrb[136].mxu0 %v1842_v41  ;;  %v1689_v2 = vmax.f32 %v1389_v48, 0.0 }
 0x241   : > { %v922_v7 = vadd.f32 %v921_v59, %v4941_v32  ;;  %v1395_v62 = vadd.f32 %v1394_v61, %v5136_v60  ;;  %v923_v63 = vpop.f32.mrb[126].mxu0  ;;  %1656 = vmatprep.mubr.bf16.mxu1 %v1150_v50  ;;  %2762 = vmatpush1.bf16.msra.mxu0 %v5065_v42  ;;  %v1690_v8 = vmax.f32 %v1391_v51, 0.0 }
 0x242   : > { %v1052_v3 = vmax.f32 %v920_v55, 0.0  ;;  %v1691_v4 = vmax.f32 %v1393_v58, 0.0  ;;  %v924_v34 = vadd.f32 %v923_v63, %v4935_v29  ;;  %v925_v5 = vpop.f32.mrb[127].mxu0  ;;  %1657 = vmatmul.mubr.bf16.gmra.mrb[120].mxu1 %v1149_v40  ;;  %2763 = vmatprep.subr.bf16.mxu0 %v4515_v0 }
 0x243   : > { %v1053_v9 = vmax.f32 %v922_v7, 0.0  ;;  %v1692_v11 = vmax.f32 %v1395_v62, 0.0  ;;  %v926_v12 = vadd.f32 %v925_v5, %v4941_v32 }
 0x244   : > { %v1844_v42 = vpack.c.bf16 %v1691_v4, %v1689_v2  ;;  %v1054_v13 = vmax.f32 %v924_v34, 0.0 }
 0x245   : > { %v1845_v14 = vpack.c.bf16 %v1692_v11, %v1690_v8  ;;  %v1055_v16 = vmax.f32 %v926_v12, 0.0  ;;  %v1398_v17 = vpop.f32.mrb[16].mxu1  ;;  %2764 = vmatpush1.bf16.msra.mxu0 %v5080_v10  ;;  %v4153_v11 = vld [vmem:[%s6164_s7 + $0x60] sm:$0xff]  }
 0x246   : > { %v1151_v29 = vpack.c.bf16 %v1054_v13, %v1052_v3  ;;  %v1399_v18 = vadd.f32 %v1398_v17, %v5132_v57  ;;  %v1400_v19 = vpop.f32.mrb[17].mxu1  ;;  %2765 = vmatprep.subr.bf16.mxu0 %v4515_v0 }
 0x247   : > { %v1152_v20 = vpack.c.bf16 %v1055_v16, %v1053_v9  ;;  %v1401_v32 = vadd.f32 %v1400_v19, %v5136_v60  ;;  %v1402_v21 = vpop.f32.mrb[18].mxu1  ;;  %2135 = vmatprep.mubr.bf16.mxu0 %v1845_v14 }
 0x248   : > { %v1403_v22 = vadd.f32 %v1402_v21, %v5132_v57  ;;  %v1404_v23 = vpop.f32.mrb[19].mxu1  ;;  %2136 = vmatmul.mubr.bf16.gmra.mrb[140].mxu0 %v1844_v42  ;;  %v1693_v10 = vmax.f32 %v1399_v18, 0.0 }
 0x249   : > { %v1405_v6 = vadd.f32 %v1404_v23, %v5136_v60  ;;  %1666 = vmatprep.mubr.bf16.mxu1 %v1152_v20  ;;  %2766 = vmatpush1.bf16.msra.mxu0 %v5095_v46  ;;  %v1694_v27 = vmax.f32 %v1401_v32, 0.0 }
 0x24a   : > { %v1695_v25 = vmax.f32 %v1403_v22, 0.0  ;;  %1667 = vmatmul.mubr.bf16.gmra.mrb[124].mxu1 %v1151_v29  ;;  %2767 = vmatprep.subr.bf16.mxu0 %v4515_v0 }
 0x24b   : > { %v1696_v28 = vmax.f32 %v1405_v6, 0.0 }
 0x24c   : > { %v1846_v30 = vpack.c.bf16 %v1695_v25, %v1693_v10 }
 0x24d   : > { %v1847_v31 = vpack.c.bf16 %v1696_v28, %v1694_v27  ;;  %v1408_v33 = vpop.f32.mrb[20].mxu1  ;;  %2768 = vmatpush1.bf16.msra.mxu0 %v5110_v15  ;;  %v4152_v15 = vld [vmem:[%s6164_s7 + $0x58] sm:$0xff]  }
 0x24e   : > { %v1409_v35 = vadd.f32 %v1408_v33, %v5132_v57  ;;  %v1410_v36 = vpop.f32.mrb[21].mxu1  ;;  %2769 = vmatprep.subr.bf16.mxu0 %v4515_v0  ;;  %3963 = vmatpush1.bf16.msra.mxu1 %v4152_v15 }
 0x24f   : > { %v1411_v37 = vadd.f32 %v1410_v36, %v5136_v60  ;;  %v1412_v46 = vpop.f32.mrb[22].mxu1  ;;  %2145 = vmatprep.mubr.bf16.mxu0 %v1847_v31  ;;  %3948 = vmatprep.subr.bf16.mxu1 %v4515_v0 }
 0x250   : > { %v1413_v38 = vadd.f32 %v1412_v46, %v5132_v57  ;;  %v1414_v39 = vpop.f32.mrb[23].mxu1  ;;  %2146 = vmatmul.mubr.bf16.gmra.mrb[144].mxu0 %v1846_v30  ;;  %v1697_v43 = vmax.f32 %v1409_v35, 0.0 }
 0x251   : > { %v1415_v41 = vadd.f32 %v1414_v39, %v5136_v60  ;;  %2770 = vmatpush1.bf16.msra.mxu0 %v5128_v53  ;;  %v1698_v45 = vmax.f32 %v1411_v37, 0.0 }
 0x252   : > { %v1699_v44 = vmax.f32 %v1413_v38, 0.0  ;;  %2771 = vmatprep.subr.bf16.mxu0 %v4515_v0  ;;  %3964 = vmatpush1.bf16.msra.mxu1 %v4153_v11 }
 0x253   : > { %v1700_v47 = vmax.f32 %v1415_v41, 0.0  ;;  %3949 = vmatprep.subr.bf16.mxu1 %v4515_v0  ;;  %v4154_v41 = vld [vmem:[%s6164_s7 + $0x68] sm:$0xff]  }
 0x254   : > { %v1848_v40 = vpack.c.bf16 %v1699_v44, %v1697_v43 }
 0x255   : > { %v1849_v48 = vpack.c.bf16 %v1700_v47, %v1698_v45  ;;  %v1418_v49 = vpop.f32.mrb[24].mxu1  ;;  %2772 = vmatpush1.bf16.msra.mxu0 %v5158_v56 }
 0x256   : > { %v1419_v53 = vadd.f32 %v1418_v49, %v5132_v57  ;;  %v1420_v50 = vpop.f32.mrb[25].mxu1  ;;  %2773 = vmatprep.subr.bf16.mxu0 %v4515_v0  ;;  %3965 = vmatpush1.bf16.msra.mxu1 %v4154_v41 }
 0x257   : > { %v1421_v51 = vadd.f32 %v1420_v50, %v5136_v60  ;;  %v1422_v52 = vpop.f32.mrb[26].mxu1  ;;  %2155 = vmatprep.mubr.bf16.mxu0 %v1849_v48  ;;  %3950 = vmatprep.subr.bf16.mxu1 %v4515_v0 }
 0x258   : > { %v1423_v54 = vadd.f32 %v1422_v52, %v5132_v57  ;;  %v1424_v55 = vpop.f32.mrb[27].mxu1  ;;  %2156 = vmatmul.mubr.bf16.gmra.mrb[148].mxu0 %v1848_v40  ;;  %v1701_v59 = vmax.f32 %v1419_v53, 0.0 }
 0x259   : > { %v1425_v58 = vadd.f32 %v1424_v55, %v5136_v60  ;;  %2774 = vmatpush1.bf16.msra.mxu0 %v5189_v1  ;;  %v1702_v56 = vmax.f32 %v1421_v51, 0.0 }
 0x25a   : > { %v1703_v61 = vmax.f32 %v1423_v54, 0.0  ;;  %2775 = vmatprep.subr.bf16.mxu0 %v4515_v0 }
 0x25b   : > { %v1704_v7 = vmax.f32 %v1425_v58, 0.0 }
 0x25c   : > { %v1850_v62 = vpack.c.bf16 %v1703_v61, %v1701_v59 }
 0x25d   : > { %v1851_v63 = vpack.c.bf16 %v1704_v7, %v1702_v56  ;;  %v1428_v2 = vpop.f32.mrb[28].mxu1  ;;  %2776 = vmatpush1.bf16.msra.mxu0 %v4152_v15 }
 0x25e   : > { %v1429_v3 = vadd.f32 %v1428_v2, %v5132_v57  ;;  %v1430_v4 = vpop.f32.mrb[29].mxu1  ;;  %2777 = vmatprep.subr.bf16.mxu0 %v4515_v0 }
 0x25f   : > { %v1431_v34 = vadd.f32 %v1430_v4, %v5136_v60  ;;  %v1432_v5 = vpop.f32.mrb[30].mxu1  ;;  %2165 = vmatprep.mubr.bf16.mxu0 %v1851_v63 }
 0x260   : > { %v1433_v1 = vadd.f32 %v1432_v5, %v5132_v57  ;;  %v1434_v8 = vpop.f32.mrb[31].mxu1  ;;  %2166 = vmatmul.mubr.bf16.gmra.mrb[152].mxu0 %v1850_v62  ;;  %v1705_v12 = vmax.f32 %v1429_v3, 0.0 }
 0x261   : > { %v1435_v9 = vadd.f32 %v1434_v8, %v5136_v60  ;;  %v1706_v13 = vmax.f32 %v1431_v34, 0.0  ;;  %2778 = vmatpush1.bf16.msra.mxu0 %v4153_v11 }
 0x262   : > { %v1707_v42 = vmax.f32 %v1433_v1, 0.0  ;;  %2779 = vmatprep.subr.bf16.mxu0 %v4515_v0 }
 0x263   : > { %v1708_v14 = vmax.f32 %v1435_v9, 0.0  ;;  %v4155_v9 = vld [vmem:[%s6164_s7 + $0x70] sm:$0xff]  }
 0x264   : > { %v1852_v16 = vpack.c.bf16 %v1707_v42, %v1705_v12  ;;  %3966 = vmatpush1.bf16.msra.mxu1 %v4155_v9 }
 0x265   : > { %v1853_v17 = vpack.c.bf16 %v1708_v14, %v1706_v13  ;;  %v1438_v29 = vpop.f32.mrb[32].mxu1  ;;  %2780 = vmatpush1.bf16.msra.mxu0 %v4154_v41  ;;  %3951 = vmatprep.subr.bf16.mxu1 %v4515_v0 }
 0x266   : > { %v1439_v18 = vadd.f32 %v1438_v29, %v5132_v57  ;;  %v1440_v19 = vpop.f32.mrb[33].mxu1  ;;  %2781 = vmatprep.subr.bf16.mxu0 %v4515_v0 }
 0x267   : > { %v1441_v20 = vadd.f32 %v1440_v19, %v5136_v60  ;;  %v1442_v32 = vpop.f32.mrb[34].mxu1  ;;  %2175 = vmatprep.mubr.bf16.mxu0 %v1853_v17 }
 0x268   : > { %v1443_v21 = vadd.f32 %v1442_v32, %v5132_v57  ;;  %v1444_v22 = vpop.f32.mrb[35].mxu1  ;;  %2176 = vmatmul.mubr.bf16.gmra.mrb[156].mxu0 %v1852_v16  ;;  %v1709_v6 = vmax.f32 %v1439_v18, 0.0 }
 0x269   : > { %v1445_v23 = vadd.f32 %v1444_v22, %v5136_v60  ;;  %v1710_v25 = vmax.f32 %v1441_v20, 0.0  ;;  %2782 = vmatpush1.bf16.msra.mxu0 %v4155_v9 }
 0x26a   : > { %v1711_v10 = vmax.f32 %v1443_v21, 0.0  ;;  %2783 = vmatprep.subr.bf16.mxu0 %v4515_v0 }
 0x26b   : > { %v1712_v27 = vmax.f32 %v1445_v23, 0.0 }
 0x26c   : > { %v1854_v28 = vpack.c.bf16 %v1711_v10, %v1709_v6 }
 0x26d   : > { %v1855_v30 = vpack.c.bf16 %v1712_v27, %v1710_v25  ;;  %v1448_v31 = vpop.f32.mrb[36].mxu1 }
 0x26e   : > { %v1449_v33 = vadd.f32 %v1448_v31, %v5132_v57  ;;  %v1450_v35 = vpop.f32.mrb[37].mxu1 }
 0x26f   : > { %v1451_v36 = vadd.f32 %v1450_v35, %v5136_v60  ;;  %v1452_v37 = vpop.f32.mrb[38].mxu1  ;;  %2185 = vmatprep.mubr.bf16.mxu0 %v1855_v30 }
 0x270   : > { %v1453_v46 = vadd.f32 %v1452_v37, %v5132_v57  ;;  %v1454_v38 = vpop.f32.mrb[39].mxu1  ;;  %2186 = vmatmul.mubr.bf16.gmra.mrb[160].mxu0 %v1854_v28  ;;  %v1713_v15 = vmax.f32 %v1449_v33, 0.0 }
 0x271   : > { %v1455_v39 = vadd.f32 %v1454_v38, %v5136_v60  ;;  %v1714_v44 = vmax.f32 %v1451_v36, 0.0 }
 0x272   : > { %v1715_v43 = vmax.f32 %v1453_v46, 0.0 }
 0x273   : > { %v1716_v45 = vmax.f32 %v1455_v39, 0.0 }
 0x274   : > { %v1856_v47 = vpack.c.bf16 %v1715_v43, %v1713_v15  ;;  %v4156_v43 = vld [vmem:[%s6164_s7 + $0x78] sm:$0xff]  }
 0x275   : > { %v1857_v40 = vpack.c.bf16 %v1716_v45, %v1714_v44  ;;  %v1458_v48 = vpop.f32.mrb[40].mxu1  ;;  %3967 = vmatpush1.bf16.msra.mxu1 %v4156_v43  ;;  %2784 = vmatpush1.bf16.msra.mxu0 %v4156_v43 }
 0x276   : > { %v1459_v49 = vadd.f32 %v1458_v48, %v5132_v57  ;;  %v1460_v53 = vpop.f32.mrb[41].mxu1 }
 0x277   : > { %v1461_v50 = vadd.f32 %v1460_v53, %v5136_v60  ;;  %v1462_v51 = vpop.f32.mrb[42].mxu1  ;;  %2195 = vmatprep.mubr.bf16.mxu0 %v1857_v40 }
 0x278   : > { %v1463_v52 = vadd.f32 %v1462_v51, %v5132_v57  ;;  %v1464_v54 = vpop.f32.mrb[43].mxu1  ;;  %2196 = vmatmul.mubr.bf16.gmra.mrb[164].mxu0 %v1856_v47  ;;  %v1717_v58 = vmax.f32 %v1459_v49, 0.0 }
 0x279   : > { %v1465_v55 = vadd.f32 %v1464_v54, %v5136_v60  ;;  %v1718_v61 = vmax.f32 %v1461_v50, 0.0 }
 0x27a   : > { %v1719_v59 = vmax.f32 %v1463_v52, 0.0 }
 0x27b   : > { %v1720_v56 = vmax.f32 %v1465_v55, 0.0 }
 0x27c   : > { %v1858_v7 = vpack.c.bf16 %v1719_v59, %v1717_v58 }
 0x27d   : > { %v1859_v62 = vpack.c.bf16 %v1720_v56, %v1718_v61  ;;  %v1468_v63 = vpop.f32.mrb[44].mxu1 }
 0x27e   : > { %v1469_v2 = vadd.f32 %v1468_v63, %v5132_v57  ;;  %v1470_v3 = vpop.f32.mrb[45].mxu1 }
 0x27f   : > { %v1471_v4 = vadd.f32 %v1470_v3, %v5136_v60  ;;  %v1472_v34 = vpop.f32.mrb[46].mxu1  ;;  %2205 = vmatprep.mubr.bf16.mxu0 %v1859_v62 }
 0x280   : > { %v1473_v5 = vadd.f32 %v1472_v34, %v5132_v57  ;;  %v1474_v1 = vpop.f32.mrb[47].mxu1  ;;  %2206 = vmatmul.mubr.bf16.gmra.mrb[168].mxu0 %v1858_v7  ;;  %v1721_v11 = vmax.f32 %v1469_v2, 0.0 }
 0x281   : > { %v1475_v8 = vadd.f32 %v1474_v1, %v5136_v60  ;;  %v1722_v42 = vmax.f32 %v1471_v4, 0.0 }
 0x282   : > { %v1723_v12 = vmax.f32 %v1473_v5, 0.0 }
 0x283   : > { %v1724_v13 = vmax.f32 %v1475_v8, 0.0 }
 0x284   : > { %v1860_v14 = vpack.c.bf16 %v1723_v12, %v1721_v11 }
 0x285   : > { %v1861_v16 = vpack.c.bf16 %v1724_v13, %v1722_v42  ;;  %v1478_v17 = vpop.f32.mrb[48].mxu1 }
 0x286   : > { %v1479_v29 = vadd.f32 %v1478_v17, %v5132_v57  ;;  %v1480_v18 = vpop.f32.mrb[49].mxu1 }
 0x287   : > { %v1481_v19 = vadd.f32 %v1480_v18, %v5136_v60  ;;  %v1482_v20 = vpop.f32.mrb[50].mxu1  ;;  %2215 = vmatprep.mubr.bf16.mxu0 %v1861_v16 }
 0x288   : > { %v1483_v32 = vadd.f32 %v1482_v20, %v5132_v57  ;;  %v1484_v21 = vpop.f32.mrb[51].mxu1  ;;  %2216 = vmatmul.mubr.bf16.gmra.mrb[172].mxu0 %v1860_v14  ;;  %v1725_v23 = vmax.f32 %v1479_v29, 0.0 }
 0x289   : > { %v1485_v22 = vadd.f32 %v1484_v21, %v5136_v60  ;;  %v1726_v10 = vmax.f32 %v1481_v19, 0.0 }
 0x28a   : > { %v1727_v6 = vmax.f32 %v1483_v32, 0.0 }
 0x28b   : > { %v1728_v25 = vmax.f32 %v1485_v22, 0.0 }
 0x28c   : > { %v1862_v0 = vpack.c.bf16 %v1727_v6, %v1725_v23 }
 0x28d   : > { %v1863_v27 = vpack.c.bf16 %v1728_v25, %v1726_v10  ;;  %v1488_v28 = vpop.f32.mrb[52].mxu1 }
 0x28e   : > { %v1489_v30 = vadd.f32 %v1488_v28, %v5132_v57  ;;  %v1490_v31 = vpop.f32.mrb[53].mxu1 }
 0x28f   : > { %v1491_v33 = vadd.f32 %v1490_v31, %v5136_v60  ;;  %v1492_v35 = vpop.f32.mrb[54].mxu1  ;;  %2225 = vmatprep.mubr.bf16.mxu0 %v1863_v27 }
 0x290   : > { %v1493_v36 = vadd.f32 %v1492_v35, %v5132_v57  ;;  %v1494_v37 = vpop.f32.mrb[55].mxu1  ;;  %2226 = vmatmul.mubr.bf16.gmra.mrb[176].mxu0 %v1862_v0  ;;  %v1729_v38 = vmax.f32 %v1489_v30, 0.0 }
 0x291   : > { %v1495_v46 = vadd.f32 %v1494_v37, %v5136_v60  ;;  %v1730_v41 = vmax.f32 %v1491_v33, 0.0 }
 0x292   : > { %v1731_v39 = vmax.f32 %v1493_v36, 0.0 }
 0x293   : > { %v1732_v15 = vmax.f32 %v1495_v46, 0.0 }
 0x294   : > { %v1864_v44 = vpack.c.bf16 %v1731_v39, %v1729_v38 }
 0x295   : > { %v1865_v45 = vpack.c.bf16 %v1732_v15, %v1730_v41  ;;  %v1498_v47 = vpop.f32.mrb[56].mxu1 }
 0x296   : > { %v1499_v40 = vadd.f32 %v1498_v47, %v5132_v57  ;;  %v1500_v48 = vpop.f32.mrb[57].mxu1 }
 0x297   : > { %v1501_v49 = vadd.f32 %v1500_v48, %v5136_v60  ;;  %v1502_v53 = vpop.f32.mrb[58].mxu1  ;;  %2235 = vmatprep.mubr.bf16.mxu0 %v1865_v45 }
 0x298   : > { %v1503_v50 = vadd.f32 %v1502_v53, %v5132_v57  ;;  %v1504_v51 = vpop.f32.mrb[59].mxu1  ;;  %2236 = vmatmul.mubr.bf16.gmra.mrb[180].mxu0 %v1864_v44  ;;  %v1733_v54 = vmax.f32 %v1499_v40, 0.0 }
 0x299   : > { %v1505_v52 = vadd.f32 %v1504_v51, %v5136_v60  ;;  %v1734_v58 = vmax.f32 %v1501_v49, 0.0 }
 0x29a   : > { %v1735_v55 = vmax.f32 %v1503_v50, 0.0 }
 0x29b   : > { %v1736_v59 = vmax.f32 %v1505_v52, 0.0 }
 0x29c   : > { %v1866_v61 = vpack.c.bf16 %v1735_v55, %v1733_v54 }
 0x29d   : > { %v1867_v56 = vpack.c.bf16 %v1736_v59, %v1734_v58  ;;  %v1508_v7 = vpop.f32.mrb[60].mxu1 }
 0x29e   : > { %v1509_v62 = vadd.f32 %v1508_v7, %v5132_v57  ;;  %v1510_v63 = vpop.f32.mrb[61].mxu1 }
 0x29f   : > { %v1511_v2 = vadd.f32 %v1510_v63, %v5136_v60  ;;  %v1512_v3 = vpop.f32.mrb[62].mxu1  ;;  %2245 = vmatprep.mubr.bf16.mxu0 %v1867_v56 }
 0x2a0   : > { %v1513_v4 = vadd.f32 %v1512_v3, %v5132_v57  ;;  %v1514_v34 = vpop.f32.mrb[63].mxu1  ;;  %2246 = vmatmul.mubr.bf16.gmra.mrb[184].mxu0 %v1866_v61  ;;  %v1737_v1 = vmax.f32 %v1509_v62, 0.0 }
 0x2a1   : > { %v1515_v5 = vadd.f32 %v1514_v34, %v5136_v60  ;;  %v1738_v9 = vmax.f32 %v1511_v2, 0.0 }
 0x2a2   : > { %v1739_v8 = vmax.f32 %v1513_v4, 0.0 }
 0x2a3   : > { %v1740_v11 = vmax.f32 %v1515_v5, 0.0 }
 0x2a4   : > { %v1868_v12 = vpack.c.bf16 %v1739_v8, %v1737_v1 }
 0x2a5   : > { %v1869_v42 = vpack.c.bf16 %v1740_v11, %v1738_v9  ;;  %v1518_v13 = vpop.f32.mrb[64].mxu1 }
 0x2a6   : > { %v1519_v14 = vadd.f32 %v1518_v13, %v5132_v57  ;;  %v1520_v16 = vpop.f32.mrb[65].mxu1 }
 0x2a7   : > { %v1521_v17 = vadd.f32 %v1520_v16, %v5136_v60  ;;  %v1522_v29 = vpop.f32.mrb[66].mxu1  ;;  %2255 = vmatprep.mubr.bf16.mxu0 %v1869_v42 }
 0x2a8   : > { %v1523_v18 = vadd.f32 %v1522_v29, %v5132_v57  ;;  %v1524_v19 = vpop.f32.mrb[67].mxu1  ;;  %2256 = vmatmul.mubr.bf16.gmra.mrb[188].mxu0 %v1868_v12  ;;  %v1741_v32 = vmax.f32 %v1519_v14, 0.0 }
 0x2a9   : > { %v1525_v20 = vadd.f32 %v1524_v19, %v5136_v60  ;;  %v1742_v22 = vmax.f32 %v1521_v17, 0.0 }
 0x2aa   : > { %v1743_v21 = vmax.f32 %v1523_v18, 0.0 }
 0x2ab   : > { %v1744_v23 = vmax.f32 %v1525_v20, 0.0 }
 0x2ac   : > { %v1870_v6 = vpack.c.bf16 %v1743_v21, %v1741_v32 }
 0x2ad   : > { %v1871_v10 = vpack.c.bf16 %v1744_v23, %v1742_v22  ;;  %v1528_v25 = vpop.f32.mrb[68].mxu1 }
 0x2ae   : > { %v1529_v0 = vadd.f32 %v1528_v25, %v5132_v57  ;;  %v1530_v27 = vpop.f32.mrb[69].mxu1 }
 0x2af   : > { %v1531_v28 = vadd.f32 %v1530_v27, %v5136_v60  ;;  %v1532_v30 = vpop.f32.mrb[70].mxu1  ;;  %2265 = vmatprep.mubr.bf16.mxu0 %v1871_v10 }
 0x2b0   : > { %v1533_v31 = vadd.f32 %v1532_v30, %v5132_v57  ;;  %v1534_v33 = vpop.f32.mrb[71].mxu1  ;;  %2266 = vmatmul.mubr.bf16.gmra.mrb[192].mxu0 %v1870_v6  ;;  %v1745_v36 = vmax.f32 %v1529_v0, 0.0 }
 0x2b1   : > { %v1535_v35 = vadd.f32 %v1534_v33, %v5136_v60  ;;  %v1746_v46 = vmax.f32 %v1531_v28, 0.0 }
 0x2b2   : > { %v1747_v37 = vmax.f32 %v1533_v31, 0.0 }
 0x2b3   : > { %v1748_v38 = vmax.f32 %v1535_v35, 0.0 }
 0x2b4   : > { %v1872_v39 = vpack.c.bf16 %v1747_v37, %v1745_v36 }
 0x2b5   : > { %v1873_v41 = vpack.c.bf16 %v1748_v38, %v1746_v46  ;;  %v1538_v15 = vpop.f32.mrb[72].mxu1 }
 0x2b6   : > { %v1539_v43 = vadd.f32 %v1538_v15, %v5132_v57  ;;  %v1540_v44 = vpop.f32.mrb[73].mxu1 }
 0x2b7   : > { %v1541_v45 = vadd.f32 %v1540_v44, %v5136_v60  ;;  %v1542_v47 = vpop.f32.mrb[74].mxu1  ;;  %2275 = vmatprep.mubr.bf16.mxu0 %v1873_v41 }
 0x2b8   : > { %v1543_v40 = vadd.f32 %v1542_v47, %v5132_v57  ;;  %v1544_v48 = vpop.f32.mrb[75].mxu1  ;;  %2276 = vmatmul.mubr.bf16.gmra.mrb[196].mxu0 %v1872_v39  ;;  %v1749_v53 = vmax.f32 %v1539_v43, 0.0 }
 0x2b9   : > { %v1545_v49 = vadd.f32 %v1544_v48, %v5136_v60  ;;  %v1750_v51 = vmax.f32 %v1541_v45, 0.0 }
 0x2ba   : > { %v1751_v50 = vmax.f32 %v1543_v40, 0.0 }
 0x2bb   : > { %v1752_v52 = vmax.f32 %v1545_v49, 0.0 }
 0x2bc   : > { %v1874_v54 = vpack.c.bf16 %v1751_v50, %v1749_v53 }
 0x2bd   : > { %v1875_v55 = vpack.c.bf16 %v1752_v52, %v1750_v51  ;;  %v1548_v58 = vpop.f32.mrb[76].mxu1 }
 0x2be   : > { %v1549_v59 = vadd.f32 %v1548_v58, %v5132_v57  ;;  %v1550_v61 = vpop.f32.mrb[77].mxu1 }
 0x2bf   : > { %v1551_v56 = vadd.f32 %v1550_v61, %v5136_v60  ;;  %v1552_v7 = vpop.f32.mrb[78].mxu1  ;;  %2285 = vmatprep.mubr.bf16.mxu0 %v1875_v55 }
 0x2c0   : > { %v1553_v62 = vadd.f32 %v1552_v7, %v5132_v57  ;;  %v1554_v63 = vpop.f32.mrb[79].mxu1  ;;  %2286 = vmatmul.mubr.bf16.gmra.mrb[200].mxu0 %v1874_v54  ;;  %v1753_v3 = vmax.f32 %v1549_v59, 0.0 }
 0x2c1   : > { %v1555_v2 = vadd.f32 %v1554_v63, %v5136_v60  ;;  %v1754_v34 = vmax.f32 %v1551_v56, 0.0 }
 0x2c2   : > { %v1755_v4 = vmax.f32 %v1553_v62, 0.0 }
 0x2c3   : > { %v1756_v5 = vmax.f32 %v1555_v2, 0.0 }
 0x2c4   : > { %v1876_v1 = vpack.c.bf16 %v1755_v4, %v1753_v3 }
 0x2c5   : > { %v1877_v8 = vpack.c.bf16 %v1756_v5, %v1754_v34  ;;  %v1558_v9 = vpop.f32.mrb[80].mxu1 }
 0x2c6   : > { %v1559_v11 = vadd.f32 %v1558_v9, %v5132_v57  ;;  %v1560_v12 = vpop.f32.mrb[81].mxu1 }
 0x2c7   : > { %v1561_v42 = vadd.f32 %v1560_v12, %v5136_v60  ;;  %v1562_v13 = vpop.f32.mrb[82].mxu1  ;;  %2295 = vmatprep.mubr.bf16.mxu0 %v1877_v8 }
 0x2c8   : > { %v1563_v14 = vadd.f32 %v1562_v13, %v5132_v57  ;;  %v1564_v16 = vpop.f32.mrb[83].mxu1  ;;  %2296 = vmatmul.mubr.bf16.gmra.mrb[204].mxu0 %v1876_v1  ;;  %v1757_v29 = vmax.f32 %v1559_v11, 0.0 }
 0x2c9   : > { %v1565_v17 = vadd.f32 %v1564_v16, %v5136_v60  ;;  %v1758_v19 = vmax.f32 %v1561_v42, 0.0 }
 0x2ca   : > { %v1759_v18 = vmax.f32 %v1563_v14, 0.0 }
 0x2cb   : > { %v1760_v20 = vmax.f32 %v1565_v17, 0.0 }
 0x2cc   : > { %v1878_v32 = vpack.c.bf16 %v1759_v18, %v1757_v29 }
 0x2cd   : > { %v1879_v21 = vpack.c.bf16 %v1760_v20, %v1758_v19  ;;  %v1568_v22 = vpop.f32.mrb[84].mxu1 }
 0x2ce   : > { %v1569_v23 = vadd.f32 %v1568_v22, %v5132_v57  ;;  %v1570_v6 = vpop.f32.mrb[85].mxu1 }
 0x2cf   : > { %v1571_v10 = vadd.f32 %v1570_v6, %v5136_v60  ;;  %v1572_v25 = vpop.f32.mrb[86].mxu1  ;;  %2305 = vmatprep.mubr.bf16.mxu0 %v1879_v21 }
 0x2d0   : > { %v1573_v0 = vadd.f32 %v1572_v25, %v5132_v57  ;;  %v1574_v27 = vpop.f32.mrb[87].mxu1  ;;  %2306 = vmatmul.mubr.bf16.gmra.mrb[208].mxu0 %v1878_v32  ;;  %v1761_v30 = vmax.f32 %v1569_v23, 0.0 }
 0x2d1   : > { %v1575_v28 = vadd.f32 %v1574_v27, %v5136_v60  ;;  %v1762_v33 = vmax.f32 %v1571_v10, 0.0 }
 0x2d2   : > { %v1763_v31 = vmax.f32 %v1573_v0, 0.0 }
 0x2d3   : > { %v1764_v35 = vmax.f32 %v1575_v28, 0.0 }
 0x2d4   : > { %v1880_v36 = vpack.c.bf16 %v1763_v31, %v1761_v30 }
 0x2d5   : > { %v1881_v37 = vpack.c.bf16 %v1764_v35, %v1762_v33  ;;  %v1578_v46 = vpop.f32.mrb[88].mxu1 }
 0x2d6   : > { %v1579_v38 = vadd.f32 %v1578_v46, %v5132_v57  ;;  %v1580_v39 = vpop.f32.mrb[89].mxu1 }
 0x2d7   : > { %v1581_v41 = vadd.f32 %v1580_v39, %v5136_v60  ;;  %v1582_v15 = vpop.f32.mrb[90].mxu1  ;;  %2315 = vmatprep.mubr.bf16.mxu0 %v1881_v37 }
 0x2d8   : > { %v1583_v43 = vadd.f32 %v1582_v15, %v5132_v57  ;;  %v1584_v44 = vpop.f32.mrb[91].mxu1  ;;  %2316 = vmatmul.mubr.bf16.gmra.mrb[212].mxu0 %v1880_v36  ;;  %v1765_v47 = vmax.f32 %v1579_v38, 0.0 }
 0x2d9   : > { %v1585_v45 = vadd.f32 %v1584_v44, %v5136_v60  ;;  %v1766_v48 = vmax.f32 %v1581_v41, 0.0 }
 0x2da   : > { %v1767_v40 = vmax.f32 %v1583_v43, 0.0 }
 0x2db   : > { %v1768_v49 = vmax.f32 %v1585_v45, 0.0 }
 0x2dc   : > { %v1882_v53 = vpack.c.bf16 %v1767_v40, %v1765_v47 }
 0x2dd   : > { %v1883_v50 = vpack.c.bf16 %v1768_v49, %v1766_v48  ;;  %v1588_v51 = vpop.f32.mrb[92].mxu1  ;;  %v1837_v49 = vld [vmem:[%s6163_s6] sm:$0x3] }
 0x2de   : > { %v1589_v52 = vadd.f32 %v1588_v51, %v5132_v57  ;;  %v1590_v54 = vpop.f32.mrb[93].mxu1 }
 0x2df   : > { %v1591_v55 = vadd.f32 %v1590_v54, %v5136_v60  ;;  %v1592_v58 = vpop.f32.mrb[94].mxu1  ;;  %2325 = vmatprep.mubr.bf16.mxu0 %v1883_v50 }
 0x2e0   : > { %v1593_v59 = vadd.f32 %v1592_v58, %v5132_v57  ;;  %v1594_v61 = vpop.f32.mrb[95].mxu1  ;;  %2326 = vmatmul.mubr.bf16.gmra.mrb[216].mxu0 %v1882_v53  ;;  %v1769_v7 = vmax.f32 %v1589_v52, 0.0  ;;  %v5330_v58 = vrot.slane %v1837_v49, %v4927_v24 }
 0x2e1   : > { %v1595_v56 = vadd.f32 %v1594_v61, %v5136_v60  ;;  %v1770_v63 = vmax.f32 %v1591_v55, 0.0  ;;  %v5334_v61 = vrot.slane %v1837_v49, %v4932_v26 }
 0x2e2   : > { %v1771_v62 = vmax.f32 %v1593_v59, 0.0 }
 0x2e3   : > { %v1772_v2 = vmax.f32 %v1595_v56, 0.0 }
 0x2e4   : > { %v1884_v3 = vpack.c.bf16 %v1771_v62, %v1769_v7 }
 0x2e5   : > { %v1885_v4 = vpack.c.bf16 %v1772_v2, %v1770_v63  ;;  %v1598_v34 = vpop.f32.mrb[96].mxu1 }
 0x2e6   : > { %v1599_v5 = vadd.f32 %v1598_v34, %v5132_v57  ;;  %v1600_v1 = vpop.f32.mrb[97].mxu1 }
 0x2e7   : > { %v1601_v8 = vadd.f32 %v1600_v1, %v5136_v60  ;;  %v1602_v9 = vpop.f32.mrb[98].mxu1  ;;  %2335 = vmatprep.mubr.bf16.mxu0 %v1885_v4 }
 0x2e8   : > { %v1603_v11 = vadd.f32 %v1602_v9, %v5132_v57  ;;  %v1604_v12 = vpop.f32.mrb[99].mxu1  ;;  %2336 = vmatmul.mubr.bf16.gmra.mrb[220].mxu0 %v1884_v3  ;;  %v1773_v13 = vmax.f32 %v1599_v5, 0.0 }
 0x2e9   : > { %v1605_v42 = vadd.f32 %v1604_v12, %v5136_v60  ;;  %v1774_v16 = vmax.f32 %v1601_v8, 0.0 }
 0x2ea   : > { %v1775_v14 = vmax.f32 %v1603_v11, 0.0 }
 0x2eb   : > { %v1776_v17 = vmax.f32 %v1605_v42, 0.0 }
 0x2ec   : > { %v1886_v29 = vpack.c.bf16 %v1775_v14, %v1773_v13 }
 0x2ed   : > { %v1887_v18 = vpack.c.bf16 %v1776_v17, %v1774_v16  ;;  %v1608_v19 = vpop.f32.mrb[100].mxu1 }
 0x2ee   : > { %v1609_v20 = vadd.f32 %v1608_v19, %v5132_v57  ;;  %v1610_v32 = vpop.f32.mrb[101].mxu1 }
 0x2ef   : > { %v1611_v21 = vadd.f32 %v1610_v32, %v5136_v60  ;;  %v1612_v22 = vpop.f32.mrb[102].mxu1  ;;  %2345 = vmatprep.mubr.bf16.mxu0 %v1887_v18 }
 0x2f0   : > { %v1613_v23 = vadd.f32 %v1612_v22, %v5132_v57  ;;  %v1614_v6 = vpop.f32.mrb[103].mxu1  ;;  %2346 = vmatmul.mubr.bf16.gmra.mrb[224].mxu0 %v1886_v29  ;;  %v1777_v25 = vmax.f32 %v1609_v20, 0.0 }
 0x2f1   : > { %v1615_v10 = vadd.f32 %v1614_v6, %v5136_v60  ;;  %v1778_v27 = vmax.f32 %v1611_v21, 0.0 }
 0x2f2   : > { %v1779_v0 = vmax.f32 %v1613_v23, 0.0 }
 0x2f3   : > { %v1780_v28 = vmax.f32 %v1615_v10, 0.0 }
 0x2f4   : > { %v1888_v30 = vpack.c.bf16 %v1779_v0, %v1777_v25 }
 0x2f5   : > { %v1889_v31 = vpack.c.bf16 %v1780_v28, %v1778_v27  ;;  %v1618_v33 = vpop.f32.mrb[104].mxu1 }
 0x2f6   : > { %v1619_v35 = vadd.f32 %v1618_v33, %v5132_v57  ;;  %v1620_v36 = vpop.f32.mrb[105].mxu1 }
 0x2f7   : > { %v1621_v37 = vadd.f32 %v1620_v36, %v5136_v60  ;;  %v1622_v46 = vpop.f32.mrb[106].mxu1  ;;  %2355 = vmatprep.mubr.bf16.mxu0 %v1889_v31 }
 0x2f8   : > { %v1623_v38 = vadd.f32 %v1622_v46, %v5132_v57  ;;  %v1624_v39 = vpop.f32.mrb[107].mxu1  ;;  %2356 = vmatmul.mubr.bf16.gmra.mrb[228].mxu0 %v1888_v30  ;;  %v1781_v15 = vmax.f32 %v1619_v35, 0.0 }
 0x2f9   : > { %v1625_v41 = vadd.f32 %v1624_v39, %v5136_v60  ;;  %v1782_v44 = vmax.f32 %v1621_v37, 0.0 }
 0x2fa   : > { %v1783_v43 = vmax.f32 %v1623_v38, 0.0 }
 0x2fb   : > { %v1784_v45 = vmax.f32 %v1625_v41, 0.0 }
 0x2fc   : > { %v1890_v47 = vpack.c.bf16 %v1783_v43, %v1781_v15 }
 0x2fd   : > { %v1891_v40 = vpack.c.bf16 %v1784_v45, %v1782_v44  ;;  %v1628_v48 = vpop.f32.mrb[108].mxu1 }
 0x2fe   : > { %v1629_v53 = vadd.f32 %v1628_v48, %v5132_v57  ;;  %v1630_v50 = vpop.f32.mrb[109].mxu1 }
 0x2ff   : > { %v1631_v51 = vadd.f32 %v1630_v50, %v5136_v60  ;;  %v1632_v52 = vpop.f32.mrb[110].mxu1  ;;  %2365 = vmatprep.mubr.bf16.mxu0 %v1891_v40 }
 0x300   : > { %v1633_v54 = vadd.f32 %v1632_v52, %v5132_v57  ;;  %v1634_v55 = vpop.f32.mrb[111].mxu1  ;;  %2366 = vmatmul.mubr.bf16.gmra.mrb[232].mxu0 %v1890_v47  ;;  %v1785_v56 = vmax.f32 %v1629_v53, 0.0 }
 0x301   : > { %v1635_v59 = vadd.f32 %v1634_v55, %v5136_v60  ;;  %v1786_v62 = vmax.f32 %v1631_v51, 0.0 }
 0x302   : > { %v1787_v7 = vmax.f32 %v1633_v54, 0.0 }
 0x303   : > { %v1788_v63 = vmax.f32 %v1635_v59, 0.0  ;;  %v2107_v2 = vpop.f32.mrb[128].mxu0 }
 0x304   : > { %v1892_v3 = vpack.c.bf16 %v1787_v7, %v1785_v56  ;;  %v2108_v4 = vadd.f32 %v2107_v2, %v5330_v58  ;;  %v2109_v34 = vpop.f32.mrb[129].mxu0 }
 0x305   : > { %v1893_v5 = vpack.c.bf16 %v1788_v63, %v1786_v62  ;;  %v2110_v1 = vadd.f32 %v2109_v34, %v5334_v61  ;;  %v1638_v8 = vpop.f32.mrb[112].mxu1  ;;  %v2111_v24 = vpop.f32.mrb[130].mxu0 }
 0x306   : > { %v1639_v9 = vadd.f32 %v1638_v8, %v5132_v57  ;;  %v2112_v11 = vadd.f32 %v2111_v24, %v5330_v58  ;;  %v1640_v26 = vpop.f32.mrb[113].mxu1  ;;  %v2113_v12 = vpop.f32.mrb[131].mxu0  ;;  %v2426_v16 = vmax.f32 %v2108_v4, 0.0 }
 0x307   : > { %v1641_v42 = vadd.f32 %v1640_v26, %v5136_v60  ;;  %v2114_v13 = vadd.f32 %v2113_v12, %v5334_v61  ;;  %v1642_v14 = vpop.f32.mrb[114].mxu1  ;;  %2375 = vmatprep.mubr.bf16.mxu0 %v1893_v5  ;;  %v2427_v19 = vmax.f32 %v2110_v1, 0.0 }
 0x308   : > { %v2428_v17 = vmax.f32 %v2112_v11, 0.0  ;;  %v1643_v29 = vadd.f32 %v1642_v14, %v5132_v57  ;;  %v1644_v18 = vpop.f32.mrb[115].mxu1  ;;  %2376 = vmatmul.mubr.bf16.gmra.mrb[236].mxu0 %v1892_v3  ;;  %v1789_v21 = vmax.f32 %v1639_v9, 0.0 }
 0x309   : > { %v2429_v20 = vmax.f32 %v2114_v13, 0.0  ;;  %v1645_v32 = vadd.f32 %v1644_v18, %v5136_v60  ;;  %v1790_v6 = vmax.f32 %v1641_v42, 0.0 }
 0x30a   : > { %v5344_v22 = vpack.c.bf16 %v2428_v17, %v2426_v16  ;;  %v1791_v23 = vmax.f32 %v1643_v29, 0.0 }
 0x30b   : > { %v5346_v10 = vpack.c.bf16 %v2429_v20, %v2427_v19  ;;  %v1792_v25 = vmax.f32 %v1645_v32, 0.0  ;;  %v2117_v0 = vpop.f32.mrb[132].mxu0 }
 0x30c   : > { %v1894_v27 = vpack.c.bf16 %v1791_v23, %v1789_v21  ;;  %v2118_v28 = vadd.f32 %v2117_v0, %v5330_v58  ;;  %v2119_v30 = vpop.f32.mrb[133].mxu0 }
 0x30d   : > { %v1895_v31 = vpack.c.bf16 %v1792_v25, %v1790_v6  ;;  %v2120_v33 = vadd.f32 %v2119_v30, %v5334_v61  ;;  %v1648_v35 = vpop.f32.mrb[116].mxu1  ;;  %v2121_v36 = vpop.f32.mrb[134].mxu0 }
 0x30e   : > { %v1649_v37 = vadd.f32 %v1648_v35, %v5132_v57  ;;  %v2122_v46 = vadd.f32 %v2121_v36, %v5330_v58  ;;  %v1650_v38 = vpop.f32.mrb[117].mxu1  ;;  %v2123_v39 = vpop.f32.mrb[135].mxu0  ;;  %v2430_v44 = vmax.f32 %v2118_v28, 0.0 }
 0x30f   : > { %v1651_v41 = vadd.f32 %v1650_v38, %v5136_v60  ;;  %v2124_v15 = vadd.f32 %v2123_v39, %v5334_v61  ;;  %v1652_v43 = vpop.f32.mrb[118].mxu1  ;;  %2385 = vmatprep.mubr.bf16.mxu0 %v1895_v31  ;;  %v2431_v48 = vmax.f32 %v2120_v33, 0.0 }
 0x310   : > { %v2432_v45 = vmax.f32 %v2122_v46, 0.0  ;;  %v1653_v47 = vadd.f32 %v1652_v43, %v5132_v57  ;;  %v1654_v40 = vpop.f32.mrb[119].mxu1  ;;  %2386 = vmatmul.mubr.bf16.gmra.mrb[240].mxu0 %v1894_v27  ;;  %v1793_v50 = vmax.f32 %v1649_v37, 0.0 }
 0x311   : > { %v2433_v49 = vmax.f32 %v2124_v15, 0.0  ;;  %v1655_v53 = vadd.f32 %v1654_v40, %v5136_v60  ;;  %v1794_v54 = vmax.f32 %v1651_v41, 0.0 }
 0x312   : > { %v5356_v51 = vpack.c.bf16 %v2432_v45, %v2430_v44  ;;  %v1795_v52 = vmax.f32 %v1653_v47, 0.0 }
 0x313   : > { %v5358_v55 = vpack.c.bf16 %v2433_v49, %v2431_v48  ;;  %v1796_v59 = vmax.f32 %v1655_v53, 0.0  ;;  %v2127_v56 = vpop.f32.mrb[136].mxu0 }
 0x314   : > { %v1896_v7 = vpack.c.bf16 %v1795_v52, %v1793_v50  ;;  %v2128_v62 = vadd.f32 %v2127_v56, %v5330_v58  ;;  %v2129_v63 = vpop.f32.mrb[137].mxu0 }
 0x315   : > { %v1897_v2 = vpack.c.bf16 %v1796_v59, %v1794_v54  ;;  %v2130_v3 = vadd.f32 %v2129_v63, %v5334_v61  ;;  %v1658_v4 = vpop.f32.mrb[120].mxu1  ;;  %v2131_v34 = vpop.f32.mrb[138].mxu0 }
 0x316   : > { %v1659_v5 = vadd.f32 %v1658_v4, %v5132_v57  ;;  %v2132_v1 = vadd.f32 %v2131_v34, %v5330_v58  ;;  %v1660_v8 = vpop.f32.mrb[121].mxu1  ;;  %v2133_v24 = vpop.f32.mrb[139].mxu0  ;;  %v2434_v12 = vmax.f32 %v2128_v62, 0.0 }
 0x317   : > { %v1661_v9 = vadd.f32 %v1660_v8, %v5136_v60  ;;  %v2134_v11 = vadd.f32 %v2133_v24, %v5334_v61  ;;  %v1662_v26 = vpop.f32.mrb[122].mxu1  ;;  %2395 = vmatprep.mubr.bf16.mxu0 %v1897_v2  ;;  %v2435_v16 = vmax.f32 %v2130_v3, 0.0 }
 0x318   : > { %v2436_v42 = vmax.f32 %v2132_v1, 0.0  ;;  %v1663_v13 = vadd.f32 %v1662_v26, %v5132_v57  ;;  %v1664_v14 = vpop.f32.mrb[123].mxu1  ;;  %2396 = vmatmul.mubr.bf16.gmra.mrb[244].mxu0 %v1896_v7  ;;  %v1797_v18 = vmax.f32 %v1659_v5, 0.0 }
 0x319   : > { %v2437_v17 = vmax.f32 %v2134_v11, 0.0  ;;  %v1665_v29 = vadd.f32 %v1664_v14, %v5136_v60  ;;  %v1798_v32 = vmax.f32 %v1661_v9, 0.0 }
 0x31a   : > { %v2591_v19 = vpack.c.bf16 %v2436_v42, %v2434_v12  ;;  %v1799_v20 = vmax.f32 %v1663_v13, 0.0 }
 0x31b   : > { %v2592_v21 = vpack.c.bf16 %v2437_v17, %v2435_v16  ;;  %v1800_v23 = vmax.f32 %v1665_v29, 0.0  ;;  %v2137_v6 = vpop.f32.mrb[140].mxu0 }
 0x31c   : > { %v1898_v25 = vpack.c.bf16 %v1799_v20, %v1797_v18  ;;  %v2138_v0 = vadd.f32 %v2137_v6, %v5330_v58  ;;  %v2139_v27 = vpop.f32.mrb[141].mxu0 }
 0x31d   : > { %v1899_v28 = vpack.c.bf16 %v1800_v23, %v1798_v32  ;;  %v2140_v30 = vadd.f32 %v2139_v27, %v5334_v61  ;;  %v1668_v31 = vpop.f32.mrb[124].mxu1  ;;  %v2141_v33 = vpop.f32.mrb[142].mxu0  ;;  %2801 = vmatprep.mubr.bf16.mxu1 %v2592_v21 }
 0x31e   : > { %v1669_v35 = vadd.f32 %v1668_v31, %v5132_v57  ;;  %v2142_v36 = vadd.f32 %v2141_v33, %v5330_v58  ;;  %v1670_v37 = vpop.f32.mrb[125].mxu1  ;;  %v2143_v46 = vpop.f32.mrb[143].mxu0  ;;  %2802 = vmatmul.mubr.bf16.vlgmr.msra.gmra.mrb[128].mxu1 %v2591_v19  ;;  %v2438_v15 = vmax.f32 %v2138_v0, 0.0 }
 0x31f   : > { %v1671_v38 = vadd.f32 %v1670_v37, %v5136_v60  ;;  %v2144_v39 = vadd.f32 %v2143_v46, %v5334_v61  ;;  %v1672_v41 = vpop.f32.mrb[126].mxu1  ;;  %2405 = vmatprep.mubr.bf16.mxu0 %v1899_v28  ;;  %v2439_v47 = vmax.f32 %v2140_v30, 0.0 }
 0x320   : > { %v2440_v43 = vmax.f32 %v2142_v36, 0.0  ;;  %v1673_v44 = vadd.f32 %v1672_v41, %v5132_v57  ;;  %v1674_v45 = vpop.f32.mrb[127].mxu1  ;;  %2406 = vmatmul.mubr.bf16.gmra.mrb[248].mxu0 %v1898_v25  ;;  %v1801_v49 = vmax.f32 %v1669_v35, 0.0 }
 0x321   : > { %v2441_v40 = vmax.f32 %v2144_v39, 0.0  ;;  %v1675_v48 = vadd.f32 %v1674_v45, %v5136_v60  ;;  %v1802_v52 = vmax.f32 %v1671_v38, 0.0 }
 0x322   : > { %v2593_v53 = vpack.c.bf16 %v2440_v43, %v2438_v15  ;;  %v1803_v50 = vmax.f32 %v1673_v44, 0.0 }
 0x323   : > { %v2594_v54 = vpack.c.bf16 %v2441_v40, %v2439_v47  ;;  %v1804_v59 = vmax.f32 %v1675_v48, 0.0  ;;  %v2147_v56 = vpop.f32.mrb[144].mxu0 }
 0x324   : > { %v1900_v7 = vpack.c.bf16 %v1803_v50, %v1801_v49  ;;  %v2148_v62 = vadd.f32 %v2147_v56, %v5330_v58  ;;  %v2149_v63 = vpop.f32.mrb[145].mxu0 }
 0x325   : > { %v1901_v2 = vpack.c.bf16 %v1804_v59, %v1802_v52  ;;  %v2150_v57 = vadd.f32 %v2149_v63, %v5334_v61  ;;  %v2151_v3 = vpop.f32.mrb[146].mxu0  ;;  %2809 = vmatprep.mubr.bf16.mxu1 %v2594_v54 }
 0x326   : > { %v2152_v4 = vadd.f32 %v2151_v3, %v5330_v58  ;;  %v2153_v34 = vpop.f32.mrb[147].mxu0  ;;  %2810 = vmatmul.mubr.bf16.gmra.mrb[132].mxu1 %v2593_v53  ;;  %v2442_v5 = vmax.f32 %v2148_v62, 0.0 }
 0x327   : > { %v2154_v60 = vadd.f32 %v2153_v34, %v5334_v61  ;;  %2415 = vmatprep.mubr.bf16.mxu0 %v1901_v2  ;;  %v2443_v8 = vmax.f32 %v2150_v57, 0.0 }
 0x328   : > { %v2444_v1 = vmax.f32 %v2152_v4, 0.0  ;;  %2416 = vmatmul.mubr.bf16.gmra.mrb[252].mxu0 %v1900_v7 }
 0x329   : > { %v2445_v24 = vmax.f32 %v2154_v60, 0.0  ;;  %2785 = vmatprep.mubr.bf16.mxu0 %v5346_v10 }
 0x32a   : > { %v2595_v9 = vpack.c.bf16 %v2444_v1, %v2442_v5 }
 0x32b   : > { %v2596_v11 = vpack.c.bf16 %v2445_v24, %v2443_v8  ;;  %v2157_v26 = vpop.f32.mrb[148].mxu0 }
 0x32c   : > { %v2158_v12 = vadd.f32 %v2157_v26, %v5330_v58  ;;  %v2159_v42 = vpop.f32.mrb[149].mxu0 }
 0x32d   : > { %v2160_v13 = vadd.f32 %v2159_v42, %v5334_v61  ;;  %v2161_v14 = vpop.f32.mrb[150].mxu0  ;;  %2817 = vmatprep.mubr.bf16.mxu1 %v2596_v11 }
 0x32e   : > { %v2162_v16 = vadd.f32 %v2161_v14, %v5330_v58  ;;  %v2163_v17 = vpop.f32.mrb[151].mxu0  ;;  %2818 = vmatmul.mubr.bf16.gmra.mrb[136].mxu1 %v2595_v9  ;;  %v2446_v18 = vmax.f32 %v2158_v12, 0.0 }
 0x32f   : > { %v2164_v29 = vadd.f32 %v2163_v17, %v5334_v61  ;;  %v2447_v10 = vmax.f32 %v2160_v13, 0.0 }
 0x330   : > { %v2448_v19 = vmax.f32 %v2162_v16, 0.0  ;;  %2786 = vmatmul.mubr.bf16.vlgmr.msra.gmra.mrb[0].mxu0 %v5344_v22 }
 0x331   : > { %v2449_v20 = vmax.f32 %v2164_v29, 0.0  ;;  %2793 = vmatprep.mubr.bf16.mxu0 %v5358_v55 }
 0x332   : > { %v2597_v32 = vpack.c.bf16 %v2448_v19, %v2446_v18 }
 0x333   : > { %v2598_v21 = vpack.c.bf16 %v2449_v20, %v2447_v10  ;;  %v2167_v23 = vpop.f32.mrb[152].mxu0 }
 0x334   : > { %v2168_v6 = vadd.f32 %v2167_v23, %v5330_v58  ;;  %v2169_v25 = vpop.f32.mrb[153].mxu0 }
 0x335   : > { %v2170_v0 = vadd.f32 %v2169_v25, %v5334_v61  ;;  %v2171_v27 = vpop.f32.mrb[154].mxu0  ;;  %2825 = vmatprep.mubr.bf16.mxu1 %v2598_v21 }
 0x336   : > { %v2172_v28 = vadd.f32 %v2171_v27, %v5330_v58  ;;  %v2173_v30 = vpop.f32.mrb[155].mxu0  ;;  %2826 = vmatmul.mubr.bf16.gmra.mrb[140].mxu1 %v2597_v32  ;;  %v2450_v31 = vmax.f32 %v2168_v6, 0.0 }
 0x337   : > { %v2174_v22 = vadd.f32 %v2173_v30, %v5334_v61  ;;  %v2451_v55 = vmax.f32 %v2170_v0, 0.0 }
 0x338   : > { %v2452_v33 = vmax.f32 %v2172_v28, 0.0  ;;  %2794 = vmatmul.mubr.bf16.gmra.mrb[4].mxu0 %v5356_v51 }
 0x339   : > { %v2453_v35 = vmax.f32 %v2174_v22, 0.0 }
 0x33a   : > { %v2599_v36 = vpack.c.bf16 %v2452_v33, %v2450_v31 }
 0x33b   : > { %v2600_v37 = vpack.c.bf16 %v2453_v35, %v2451_v55  ;;  %v2177_v46 = vpop.f32.mrb[156].mxu0 }
 0x33c   : > { %v2178_v38 = vadd.f32 %v2177_v46, %v5330_v58  ;;  %v2179_v39 = vpop.f32.mrb[157].mxu0 }
 0x33d   : > { %v2180_v41 = vadd.f32 %v2179_v39, %v5334_v61  ;;  %v2181_v15 = vpop.f32.mrb[158].mxu0  ;;  %2833 = vmatprep.mubr.bf16.mxu1 %v2600_v37 }
 0x33e   : > { %v2182_v43 = vadd.f32 %v2181_v15, %v5330_v58  ;;  %v2183_v44 = vpop.f32.mrb[159].mxu0  ;;  %2834 = vmatmul.mubr.bf16.gmra.mrb[144].mxu1 %v2599_v36  ;;  %v2454_v47 = vmax.f32 %v2178_v38, 0.0 }
 0x33f   : > { %v2184_v45 = vadd.f32 %v2183_v44, %v5334_v61  ;;  %v2455_v40 = vmax.f32 %v2180_v41, 0.0 }
 0x340   : > { %v2456_v51 = vmax.f32 %v2182_v43, 0.0 }
 0x341   : > { %v2457_v48 = vmax.f32 %v2184_v45, 0.0 }
 0x342   : > { %v2601_v49 = vpack.c.bf16 %v2456_v51, %v2454_v47 }
 0x343   : > { %v2602_v53 = vpack.c.bf16 %v2457_v48, %v2455_v40  ;;  %v2187_v50 = vpop.f32.mrb[160].mxu0 }
 0x344   : > { %v2188_v52 = vadd.f32 %v2187_v50, %v5330_v58  ;;  %v2189_v54 = vpop.f32.mrb[161].mxu0 }
 0x345   : > { %v2190_v59 = vadd.f32 %v2189_v54, %v5334_v61  ;;  %v2191_v56 = vpop.f32.mrb[162].mxu0  ;;  %2841 = vmatprep.mubr.bf16.mxu1 %v2602_v53 }
 0x346   : > { %v2192_v7 = vadd.f32 %v2191_v56, %v5330_v58  ;;  %v2193_v62 = vpop.f32.mrb[163].mxu0  ;;  %2842 = vmatmul.mubr.bf16.gmra.mrb[148].mxu1 %v2601_v49  ;;  %v2458_v2 = vmax.f32 %v2188_v52, 0.0 }
 0x347   : > { %v2194_v63 = vadd.f32 %v2193_v62, %v5334_v61  ;;  %v2459_v3 = vmax.f32 %v2190_v59, 0.0 }
 0x348   : > { %v2460_v57 = vmax.f32 %v2192_v7, 0.0 }
 0x349   : > { %v2461_v4 = vmax.f32 %v2194_v63, 0.0 }
 0x34a   : > { %v2603_v34 = vpack.c.bf16 %v2460_v57, %v2458_v2 }
 0x34b   : > { %v2604_v60 = vpack.c.bf16 %v2461_v4, %v2459_v3  ;;  %v2197_v5 = vpop.f32.mrb[164].mxu0 }
 0x34c   : > { %v2198_v1 = vadd.f32 %v2197_v5, %v5330_v58  ;;  %v2199_v8 = vpop.f32.mrb[165].mxu0 }
 0x34d   : > { %v2200_v24 = vadd.f32 %v2199_v8, %v5334_v61  ;;  %v2201_v9 = vpop.f32.mrb[166].mxu0  ;;  %2849 = vmatprep.mubr.bf16.mxu1 %v2604_v60 }
 0x34e   : > { %v2202_v11 = vadd.f32 %v2201_v9, %v5330_v58  ;;  %v2203_v26 = vpop.f32.mrb[167].mxu0  ;;  %2850 = vmatmul.mubr.bf16.gmra.mrb[152].mxu1 %v2603_v34  ;;  %v2462_v42 = vmax.f32 %v2198_v1, 0.0 }
 0x34f   : > { %v2204_v12 = vadd.f32 %v2203_v26, %v5334_v61  ;;  %v2463_v14 = vmax.f32 %v2200_v24, 0.0 }
 0x350   : > { %v2464_v13 = vmax.f32 %v2202_v11, 0.0 }
 0x351   : > { %v2465_v16 = vmax.f32 %v2204_v12, 0.0 }
 0x352   : > { %v2605_v17 = vpack.c.bf16 %v2464_v13, %v2462_v42 }
 0x353   : > { %v2606_v29 = vpack.c.bf16 %v2465_v16, %v2463_v14  ;;  %v2207_v18 = vpop.f32.mrb[168].mxu0 }
 0x354   : > { %v2208_v19 = vadd.f32 %v2207_v18, %v5330_v58  ;;  %v2209_v10 = vpop.f32.mrb[169].mxu0 }
 0x355   : > { %v2210_v20 = vadd.f32 %v2209_v10, %v5334_v61  ;;  %v2211_v32 = vpop.f32.mrb[170].mxu0  ;;  %2857 = vmatprep.mubr.bf16.mxu1 %v2606_v29 }
 0x356   : > { %v2212_v21 = vadd.f32 %v2211_v32, %v5330_v58  ;;  %v2213_v23 = vpop.f32.mrb[171].mxu0  ;;  %2858 = vmatmul.mubr.bf16.gmra.mrb[156].mxu1 %v2605_v17  ;;  %v2466_v25 = vmax.f32 %v2208_v19, 0.0 }
 0x357   : > { %v2214_v6 = vadd.f32 %v2213_v23, %v5334_v61  ;;  %v2467_v27 = vmax.f32 %v2210_v20, 0.0 }
 0x358   : > { %v2468_v0 = vmax.f32 %v2212_v21, 0.0 }
 0x359   : > { %v2469_v28 = vmax.f32 %v2214_v6, 0.0 }
 0x35a   : > { %v2607_v30 = vpack.c.bf16 %v2468_v0, %v2466_v25 }
 0x35b   : > { %v2608_v22 = vpack.c.bf16 %v2469_v28, %v2467_v27  ;;  %v2217_v31 = vpop.f32.mrb[172].mxu0 }
 0x35c   : > { %v2218_v33 = vadd.f32 %v2217_v31, %v5330_v58  ;;  %v2219_v55 = vpop.f32.mrb[173].mxu0 }
 0x35d   : > { %v2220_v35 = vadd.f32 %v2219_v55, %v5334_v61  ;;  %v2221_v36 = vpop.f32.mrb[174].mxu0  ;;  %2865 = vmatprep.mubr.bf16.mxu1 %v2608_v22 }
 0x35e   : > { %v2222_v37 = vadd.f32 %v2221_v36, %v5330_v58  ;;  %v2223_v46 = vpop.f32.mrb[175].mxu0  ;;  %2866 = vmatmul.mubr.bf16.gmra.mrb[160].mxu1 %v2607_v30  ;;  %v2470_v39 = vmax.f32 %v2218_v33, 0.0 }
 0x35f   : > { %v2224_v38 = vadd.f32 %v2223_v46, %v5334_v61  ;;  %v2471_v15 = vmax.f32 %v2220_v35, 0.0 }
 0x360   : > { %v2472_v41 = vmax.f32 %v2222_v37, 0.0 }
 0x361   : > { %v2473_v43 = vmax.f32 %v2224_v38, 0.0 }
 0x362   : > { %v2609_v44 = vpack.c.bf16 %v2472_v41, %v2470_v39 }
 0x363   : > { %v2610_v45 = vpack.c.bf16 %v2473_v43, %v2471_v15  ;;  %v2227_v47 = vpop.f32.mrb[176].mxu0 }
 0x364   : > { %v2228_v51 = vadd.f32 %v2227_v47, %v5330_v58  ;;  %v2229_v40 = vpop.f32.mrb[177].mxu0 }
 0x365   : > { %v2230_v48 = vadd.f32 %v2229_v40, %v5334_v61  ;;  %v2231_v49 = vpop.f32.mrb[178].mxu0  ;;  %2873 = vmatprep.mubr.bf16.mxu1 %v2610_v45 }
 0x366   : > { %v2232_v53 = vadd.f32 %v2231_v49, %v5330_v58  ;;  %v2233_v50 = vpop.f32.mrb[179].mxu0  ;;  %2874 = vmatmul.mubr.bf16.gmra.mrb[164].mxu1 %v2609_v44  ;;  %v2474_v54 = vmax.f32 %v2228_v51, 0.0 }
 0x367   : > { %v2234_v52 = vadd.f32 %v2233_v50, %v5334_v61  ;;  %v2475_v56 = vmax.f32 %v2230_v48, 0.0 }
 0x368   : > { %v2476_v59 = vmax.f32 %v2232_v53, 0.0 }
 0x369   : > { %v2477_v7 = vmax.f32 %v2234_v52, 0.0 }
 0x36a   : > { %v2611_v62 = vpack.c.bf16 %v2476_v59, %v2474_v54 }
 0x36b   : > { %v2612_v63 = vpack.c.bf16 %v2477_v7, %v2475_v56  ;;  %v2237_v2 = vpop.f32.mrb[180].mxu0 }
 0x36c   : > { %v2238_v57 = vadd.f32 %v2237_v2, %v5330_v58  ;;  %v2239_v3 = vpop.f32.mrb[181].mxu0 }
 0x36d   : > { %v2240_v4 = vadd.f32 %v2239_v3, %v5334_v61  ;;  %v2241_v34 = vpop.f32.mrb[182].mxu0  ;;  %2881 = vmatprep.mubr.bf16.mxu1 %v2612_v63 }
 0x36e   : > { %v2242_v60 = vadd.f32 %v2241_v34, %v5330_v58  ;;  %v2243_v5 = vpop.f32.mrb[183].mxu0  ;;  %2882 = vmatmul.mubr.bf16.gmra.mrb[168].mxu1 %v2611_v62  ;;  %v2478_v8 = vmax.f32 %v2238_v57, 0.0 }
 0x36f   : > { %v2244_v1 = vadd.f32 %v2243_v5, %v5334_v61  ;;  %v2479_v9 = vmax.f32 %v2240_v4, 0.0 }
 0x370   : > { %v2480_v24 = vmax.f32 %v2242_v60, 0.0 }
 0x371   : > { %v2481_v11 = vmax.f32 %v2244_v1, 0.0 }
 0x372   : > { %v2613_v26 = vpack.c.bf16 %v2480_v24, %v2478_v8 }
 0x373   : > { %v2614_v12 = vpack.c.bf16 %v2481_v11, %v2479_v9  ;;  %v2247_v42 = vpop.f32.mrb[184].mxu0 }
 0x374   : > { %v2248_v13 = vadd.f32 %v2247_v42, %v5330_v58  ;;  %v2249_v14 = vpop.f32.mrb[185].mxu0 }
 0x375   : > { %v2250_v16 = vadd.f32 %v2249_v14, %v5334_v61  ;;  %v2251_v17 = vpop.f32.mrb[186].mxu0  ;;  %2889 = vmatprep.mubr.bf16.mxu1 %v2614_v12 }
 0x376   : > { %v2252_v29 = vadd.f32 %v2251_v17, %v5330_v58  ;;  %v2253_v18 = vpop.f32.mrb[187].mxu0  ;;  %2890 = vmatmul.mubr.bf16.gmra.mrb[172].mxu1 %v2613_v26  ;;  %v2482_v10 = vmax.f32 %v2248_v13, 0.0 }
 0x377   : > { %v2254_v19 = vadd.f32 %v2253_v18, %v5334_v61  ;;  %v2483_v32 = vmax.f32 %v2250_v16, 0.0 }
 0x378   : > { %v2484_v20 = vmax.f32 %v2252_v29, 0.0 }
 0x379   : > { %v2485_v21 = vmax.f32 %v2254_v19, 0.0 }
 0x37a   : > { %v2615_v23 = vpack.c.bf16 %v2484_v20, %v2482_v10 }
 0x37b   : > { %v2616_v6 = vpack.c.bf16 %v2485_v21, %v2483_v32  ;;  %v2257_v25 = vpop.f32.mrb[188].mxu0 }
 0x37c   : > { %v2258_v0 = vadd.f32 %v2257_v25, %v5330_v58  ;;  %v2259_v27 = vpop.f32.mrb[189].mxu0 }
 0x37d   : > { %v2260_v28 = vadd.f32 %v2259_v27, %v5334_v61  ;;  %v2261_v30 = vpop.f32.mrb[190].mxu0  ;;  %2897 = vmatprep.mubr.bf16.mxu1 %v2616_v6 }
 0x37e   : > { %v2262_v22 = vadd.f32 %v2261_v30, %v5330_v58  ;;  %v2263_v31 = vpop.f32.mrb[191].mxu0  ;;  %2898 = vmatmul.mubr.bf16.gmra.mrb[176].mxu1 %v2615_v23  ;;  %v2486_v55 = vmax.f32 %v2258_v0, 0.0 }
 0x37f   : > { %v2264_v33 = vadd.f32 %v2263_v31, %v5334_v61  ;;  %v2487_v36 = vmax.f32 %v2260_v28, 0.0 }
 0x380   : > { %v2488_v35 = vmax.f32 %v2262_v22, 0.0 }
 0x381   : > { %v2489_v37 = vmax.f32 %v2264_v33, 0.0 }
 0x382   : > { %v2617_v46 = vpack.c.bf16 %v2488_v35, %v2486_v55 }
 0x383   : > { %v2618_v38 = vpack.c.bf16 %v2489_v37, %v2487_v36  ;;  %v2267_v39 = vpop.f32.mrb[192].mxu0 }
 0x384   : > { %v2268_v41 = vadd.f32 %v2267_v39, %v5330_v58  ;;  %v2269_v15 = vpop.f32.mrb[193].mxu0 }
 0x385   : > { %v2270_v43 = vadd.f32 %v2269_v15, %v5334_v61  ;;  %v2271_v44 = vpop.f32.mrb[194].mxu0  ;;  %2905 = vmatprep.mubr.bf16.mxu1 %v2618_v38 }
 0x386   : > { %v2272_v45 = vadd.f32 %v2271_v44, %v5330_v58  ;;  %v2273_v47 = vpop.f32.mrb[195].mxu0  ;;  %2906 = vmatmul.mubr.bf16.gmra.mrb[180].mxu1 %v2617_v46  ;;  %v2490_v40 = vmax.f32 %v2268_v41, 0.0 }
 0x387   : > { %v2274_v51 = vadd.f32 %v2273_v47, %v5334_v61  ;;  %v2491_v49 = vmax.f32 %v2270_v43, 0.0 }
 0x388   : > { %v2492_v48 = vmax.f32 %v2272_v45, 0.0 }
 0x389   : > { %v2493_v53 = vmax.f32 %v2274_v51, 0.0 }
 0x38a   : > { %v2619_v50 = vpack.c.bf16 %v2492_v48, %v2490_v40 }
 0x38b   : > { %v2620_v52 = vpack.c.bf16 %v2493_v53, %v2491_v49  ;;  %v2277_v54 = vpop.f32.mrb[196].mxu0 }
 0x38c   : > { %v2278_v59 = vadd.f32 %v2277_v54, %v5330_v58  ;;  %v2279_v56 = vpop.f32.mrb[197].mxu0 }
 0x38d   : > { %v2280_v7 = vadd.f32 %v2279_v56, %v5334_v61  ;;  %v2281_v62 = vpop.f32.mrb[198].mxu0  ;;  %2913 = vmatprep.mubr.bf16.mxu1 %v2620_v52 }
 0x38e   : > { %v2282_v63 = vadd.f32 %v2281_v62, %v5330_v58  ;;  %v2283_v2 = vpop.f32.mrb[199].mxu0  ;;  %2914 = vmatmul.mubr.bf16.gmra.mrb[184].mxu1 %v2619_v50  ;;  %v2494_v3 = vmax.f32 %v2278_v59, 0.0 }
 0x38f   : > { %v2284_v57 = vadd.f32 %v2283_v2, %v5334_v61  ;;  %v2495_v34 = vmax.f32 %v2280_v7, 0.0 }
 0x390   : > { %v2496_v4 = vmax.f32 %v2282_v63, 0.0 }
 0x391   : > { %v2497_v60 = vmax.f32 %v2284_v57, 0.0 }
 0x392   : > { %v2621_v5 = vpack.c.bf16 %v2496_v4, %v2494_v3 }
 0x393   : > { %v2622_v1 = vpack.c.bf16 %v2497_v60, %v2495_v34  ;;  %v2287_v8 = vpop.f32.mrb[200].mxu0 }
 0x394   : > { %v2288_v24 = vadd.f32 %v2287_v8, %v5330_v58  ;;  %v2289_v9 = vpop.f32.mrb[201].mxu0 }
 0x395   : > { %v2290_v11 = vadd.f32 %v2289_v9, %v5334_v61  ;;  %v2291_v26 = vpop.f32.mrb[202].mxu0  ;;  %2921 = vmatprep.mubr.bf16.mxu1 %v2622_v1 }
 0x396   : > { %v2292_v12 = vadd.f32 %v2291_v26, %v5330_v58  ;;  %v2293_v42 = vpop.f32.mrb[203].mxu0  ;;  %2922 = vmatmul.mubr.bf16.gmra.mrb[188].mxu1 %v2621_v5  ;;  %v2498_v14 = vmax.f32 %v2288_v24, 0.0 }
 0x397   : > { %v2294_v13 = vadd.f32 %v2293_v42, %v5334_v61  ;;  %v2499_v17 = vmax.f32 %v2290_v11, 0.0 }
 0x398   : > { %v2500_v16 = vmax.f32 %v2292_v12, 0.0 }
 0x399   : > { %v2501_v29 = vmax.f32 %v2294_v13, 0.0 }
 0x39a   : > { %v2623_v18 = vpack.c.bf16 %v2500_v16, %v2498_v14 }
 0x39b   : > { %v2624_v19 = vpack.c.bf16 %v2501_v29, %v2499_v17  ;;  %v2297_v10 = vpop.f32.mrb[204].mxu0 }
 0x39c   : > { %v2298_v20 = vadd.f32 %v2297_v10, %v5330_v58  ;;  %v2299_v32 = vpop.f32.mrb[205].mxu0 }
 0x39d   : > { %v2300_v21 = vadd.f32 %v2299_v32, %v5334_v61  ;;  %v2301_v23 = vpop.f32.mrb[206].mxu0  ;;  %2929 = vmatprep.mubr.bf16.mxu1 %v2624_v19 }
 0x39e   : > { %v2302_v6 = vadd.f32 %v2301_v23, %v5330_v58  ;;  %v2303_v25 = vpop.f32.mrb[207].mxu0  ;;  %2930 = vmatmul.mubr.bf16.gmra.mrb[192].mxu1 %v2623_v18  ;;  %v2502_v27 = vmax.f32 %v2298_v20, 0.0 }
 0x39f   : > { %v2304_v0 = vadd.f32 %v2303_v25, %v5334_v61  ;;  %v2503_v30 = vmax.f32 %v2300_v21, 0.0 }
 0x3a0   : > { %v2504_v28 = vmax.f32 %v2302_v6, 0.0 }
 0x3a1   : > { %v2505_v22 = vmax.f32 %v2304_v0, 0.0 }
 0x3a2   : > { %v2625_v31 = vpack.c.bf16 %v2504_v28, %v2502_v27 }
 0x3a3   : > { %v2626_v33 = vpack.c.bf16 %v2505_v22, %v2503_v30  ;;  %v2307_v55 = vpop.f32.mrb[208].mxu0 }
 0x3a4   : > { %v2308_v35 = vadd.f32 %v2307_v55, %v5330_v58  ;;  %v2309_v36 = vpop.f32.mrb[209].mxu0 }
 0x3a5   : > { %v2310_v37 = vadd.f32 %v2309_v36, %v5334_v61  ;;  %v2311_v46 = vpop.f32.mrb[210].mxu0  ;;  %2937 = vmatprep.mubr.bf16.mxu1 %v2626_v33 }
 0x3a6   : > { %v2312_v38 = vadd.f32 %v2311_v46, %v5330_v58  ;;  %v2313_v39 = vpop.f32.mrb[211].mxu0  ;;  %2938 = vmatmul.mubr.bf16.gmra.mrb[196].mxu1 %v2625_v31  ;;  %v2506_v15 = vmax.f32 %v2308_v35, 0.0 }
 0x3a7   : > { %v2314_v41 = vadd.f32 %v2313_v39, %v5334_v61  ;;  %v2507_v44 = vmax.f32 %v2310_v37, 0.0 }
 0x3a8   : > { %v2508_v43 = vmax.f32 %v2312_v38, 0.0 }
 0x3a9   : > { %v2509_v45 = vmax.f32 %v2314_v41, 0.0 }
 0x3aa   : > { %v2627_v47 = vpack.c.bf16 %v2508_v43, %v2506_v15 }
 0x3ab   : > { %v2628_v51 = vpack.c.bf16 %v2509_v45, %v2507_v44  ;;  %v2317_v40 = vpop.f32.mrb[212].mxu0 }
 0x3ac   : > { %v2318_v48 = vadd.f32 %v2317_v40, %v5330_v58  ;;  %v2319_v49 = vpop.f32.mrb[213].mxu0 }
 0x3ad   : > { %v2320_v53 = vadd.f32 %v2319_v49, %v5334_v61  ;;  %v2321_v50 = vpop.f32.mrb[214].mxu0  ;;  %2945 = vmatprep.mubr.bf16.mxu1 %v2628_v51 }
 0x3ae   : > { %v2322_v52 = vadd.f32 %v2321_v50, %v5330_v58  ;;  %v2323_v54 = vpop.f32.mrb[215].mxu0  ;;  %2946 = vmatmul.mubr.bf16.gmra.mrb[200].mxu1 %v2627_v47  ;;  %v2510_v56 = vmax.f32 %v2318_v48, 0.0 }
 0x3af   : > { %v2324_v59 = vadd.f32 %v2323_v54, %v5334_v61  ;;  %v2511_v62 = vmax.f32 %v2320_v53, 0.0 }
 0x3b0   : > { %v2512_v7 = vmax.f32 %v2322_v52, 0.0 }
 0x3b1   : > { %v2513_v63 = vmax.f32 %v2324_v59, 0.0 }
 0x3b2   : > { %v2629_v2 = vpack.c.bf16 %v2512_v7, %v2510_v56 }
 0x3b3   : > { %v2630_v57 = vpack.c.bf16 %v2513_v63, %v2511_v62  ;;  %v2327_v3 = vpop.f32.mrb[216].mxu0 }
 0x3b4   : > { %v2328_v4 = vadd.f32 %v2327_v3, %v5330_v58  ;;  %v2329_v34 = vpop.f32.mrb[217].mxu0 }
 0x3b5   : > { %v2330_v60 = vadd.f32 %v2329_v34, %v5334_v61  ;;  %v2331_v5 = vpop.f32.mrb[218].mxu0  ;;  %2953 = vmatprep.mubr.bf16.mxu1 %v2630_v57 }
 0x3b6   : > { %v2332_v1 = vadd.f32 %v2331_v5, %v5330_v58  ;;  %v2333_v8 = vpop.f32.mrb[219].mxu0  ;;  %2954 = vmatmul.mubr.bf16.gmra.mrb[204].mxu1 %v2629_v2  ;;  %v2514_v9 = vmax.f32 %v2328_v4, 0.0 }
 0x3b7   : > { %v2334_v24 = vadd.f32 %v2333_v8, %v5334_v61  ;;  %v2515_v26 = vmax.f32 %v2330_v60, 0.0 }
 0x3b8   : > { %v2516_v11 = vmax.f32 %v2332_v1, 0.0 }
 0x3b9   : > { %v2517_v12 = vmax.f32 %v2334_v24, 0.0 }
 0x3ba   : > { %v2631_v42 = vpack.c.bf16 %v2516_v11, %v2514_v9 }
 0x3bb   : > { %v2632_v13 = vpack.c.bf16 %v2517_v12, %v2515_v26  ;;  %v2337_v14 = vpop.f32.mrb[220].mxu0 }
 0x3bc   : > { %v2338_v16 = vadd.f32 %v2337_v14, %v5330_v58  ;;  %v2339_v17 = vpop.f32.mrb[221].mxu0 }
 0x3bd   : > { %v2340_v29 = vadd.f32 %v2339_v17, %v5334_v61  ;;  %v2341_v18 = vpop.f32.mrb[222].mxu0  ;;  %2961 = vmatprep.mubr.bf16.mxu1 %v2632_v13 }
 0x3be   : > { %v2342_v19 = vadd.f32 %v2341_v18, %v5330_v58  ;;  %v2343_v10 = vpop.f32.mrb[223].mxu0  ;;  %2962 = vmatmul.mubr.bf16.gmra.mrb[208].mxu1 %v2631_v42  ;;  %v2518_v32 = vmax.f32 %v2338_v16, 0.0 }
 0x3bf   : > { %v2344_v20 = vadd.f32 %v2343_v10, %v5334_v61  ;;  %v2519_v23 = vmax.f32 %v2340_v29, 0.0 }
 0x3c0   : > { %v2520_v21 = vmax.f32 %v2342_v19, 0.0 }
 0x3c1   : > { %v2521_v6 = vmax.f32 %v2344_v20, 0.0 }
 0x3c2   : > { %v2633_v25 = vpack.c.bf16 %v2520_v21, %v2518_v32 }
 0x3c3   : > { %v2634_v0 = vpack.c.bf16 %v2521_v6, %v2519_v23  ;;  %v2347_v27 = vpop.f32.mrb[224].mxu0 }
 0x3c4   : > { %v2348_v28 = vadd.f32 %v2347_v27, %v5330_v58  ;;  %v2349_v30 = vpop.f32.mrb[225].mxu0 }
 0x3c5   : > { %v2350_v22 = vadd.f32 %v2349_v30, %v5334_v61  ;;  %v2351_v31 = vpop.f32.mrb[226].mxu0  ;;  %2969 = vmatprep.mubr.bf16.mxu1 %v2634_v0 }
 0x3c6   : > { %v2352_v33 = vadd.f32 %v2351_v31, %v5330_v58  ;;  %v2353_v55 = vpop.f32.mrb[227].mxu0  ;;  %2970 = vmatmul.mubr.bf16.gmra.mrb[212].mxu1 %v2633_v25  ;;  %v2522_v36 = vmax.f32 %v2348_v28, 0.0 }
 0x3c7   : > { %v2354_v35 = vadd.f32 %v2353_v55, %v5334_v61  ;;  %v2523_v46 = vmax.f32 %v2350_v22, 0.0 }
 0x3c8   : > { %v2524_v37 = vmax.f32 %v2352_v33, 0.0 }
 0x3c9   : > { %v2525_v38 = vmax.f32 %v2354_v35, 0.0 }
 0x3ca   : > { %v2635_v39 = vpack.c.bf16 %v2524_v37, %v2522_v36 }
 0x3cb   : > { %v2636_v41 = vpack.c.bf16 %v2525_v38, %v2523_v46  ;;  %v2357_v15 = vpop.f32.mrb[228].mxu0 }
 0x3cc   : > { %v2358_v43 = vadd.f32 %v2357_v15, %v5330_v58  ;;  %v2359_v44 = vpop.f32.mrb[229].mxu0 }
 0x3cd   : > { %v2360_v45 = vadd.f32 %v2359_v44, %v5334_v61  ;;  %v2361_v47 = vpop.f32.mrb[230].mxu0  ;;  %2977 = vmatprep.mubr.bf16.mxu1 %v2636_v41  ;;  %v5487_v44 = vld [vmem:[%s6165_s8] ss:$0 sm:$0xff] }
 0x3ce   : > { %v2362_v51 = vadd.f32 %v2361_v47, %v5330_v58  ;;  %v2363_v40 = vpop.f32.mrb[231].mxu0  ;;  %2978 = vmatmul.mubr.bf16.gmra.mrb[216].mxu1 %v2635_v39  ;;  %v2526_v49 = vmax.f32 %v2358_v43, 0.0 }
 0x3cf   : > { %v2364_v48 = vadd.f32 %v2363_v40, %v5334_v61  ;;  %v2527_v50 = vmax.f32 %v2360_v45, 0.0 }
 0x3d0   : > { %v2528_v53 = vmax.f32 %v2362_v51, 0.0 }
 0x3d1   : > { %v2529_v52 = vmax.f32 %v2364_v48, 0.0 }
 0x3d2   : > { %v2637_v54 = vpack.c.bf16 %v2528_v53, %v2526_v49 }
 0x3d3   : > { %v2638_v59 = vpack.c.bf16 %v2529_v52, %v2527_v50  ;;  %v2367_v56 = vpop.f32.mrb[232].mxu0 }
 0x3d4   : > { %v2368_v7 = vadd.f32 %v2367_v56, %v5330_v58  ;;  %v2369_v62 = vpop.f32.mrb[233].mxu0 }
 0x3d5   : > { %v2370_v63 = vadd.f32 %v2369_v62, %v5334_v61  ;;  %v2371_v2 = vpop.f32.mrb[234].mxu0  ;;  %2985 = vmatprep.mubr.bf16.mxu1 %v2638_v59 }
 0x3d6   : > { %v2372_v57 = vadd.f32 %v2371_v2, %v5330_v58  ;;  %v2373_v3 = vpop.f32.mrb[235].mxu0  ;;  %2986 = vmatmul.mubr.bf16.gmra.mrb[220].mxu1 %v2637_v54  ;;  %v2530_v34 = vmax.f32 %v2368_v7, 0.0 }
 0x3d7   : > { %v2374_v4 = vadd.f32 %v2373_v3, %v5334_v61  ;;  %v2531_v5 = vmax.f32 %v2370_v63, 0.0 }
 0x3d8   : > { %v2532_v60 = vmax.f32 %v2372_v57, 0.0 }
 0x3d9   : > { %v2533_v1 = vmax.f32 %v2374_v4, 0.0 }
 0x3da   : > { %v2639_v8 = vpack.c.bf16 %v2532_v60, %v2530_v34 }
 0x3db   : > { %v2640_v24 = vpack.c.bf16 %v2533_v1, %v2531_v5  ;;  %v2377_v9 = vpop.f32.mrb[236].mxu0 }
 0x3dc   : > { %v2378_v11 = vadd.f32 %v2377_v9, %v5330_v58  ;;  %v2379_v26 = vpop.f32.mrb[237].mxu0 }
 0x3dd   : > { %v2380_v12 = vadd.f32 %v2379_v26, %v5334_v61  ;;  %v2381_v42 = vpop.f32.mrb[238].mxu0  ;;  %2993 = vmatprep.mubr.bf16.mxu1 %v2640_v24 }
 0x3de   : > { %v2382_v13 = vadd.f32 %v2381_v42, %v5330_v58  ;;  %v2383_v14 = vpop.f32.mrb[239].mxu0  ;;  %2994 = vmatmul.mubr.bf16.gmra.mrb[224].mxu1 %v2639_v8  ;;  %v2534_v17 = vmax.f32 %v2378_v11, 0.0 }
 0x3df   : > { %v2384_v16 = vadd.f32 %v2383_v14, %v5334_v61  ;;  %v2535_v18 = vmax.f32 %v2380_v12, 0.0 }
 0x3e0   : > { %v2536_v29 = vmax.f32 %v2382_v13, 0.0 }
 0x3e1   : > { %v2537_v19 = vmax.f32 %v2384_v16, 0.0 }
 0x3e2   : > { %v2641_v10 = vpack.c.bf16 %v2536_v29, %v2534_v17 }
 0x3e3   : > { %v2642_v20 = vpack.c.bf16 %v2537_v19, %v2535_v18  ;;  %v2387_v32 = vpop.f32.mrb[240].mxu0 }
 0x3e4   : > { %v2388_v21 = vadd.f32 %v2387_v32, %v5330_v58  ;;  %v2389_v23 = vpop.f32.mrb[241].mxu0 }
 0x3e5   : > { %v2390_v6 = vadd.f32 %v2389_v23, %v5334_v61  ;;  %v2391_v25 = vpop.f32.mrb[242].mxu0  ;;  %3001 = vmatprep.mubr.bf16.mxu1 %v2642_v20 }
 0x3e6   : > { %v2392_v0 = vadd.f32 %v2391_v25, %v5330_v58  ;;  %v2393_v27 = vpop.f32.mrb[243].mxu0  ;;  %3002 = vmatmul.mubr.bf16.gmra.mrb[228].mxu1 %v2641_v10  ;;  %v2538_v30 = vmax.f32 %v2388_v21, 0.0 }
 0x3e7   : > { %v2394_v28 = vadd.f32 %v2393_v27, %v5334_v61  ;;  %v2539_v31 = vmax.f32 %v2390_v6, 0.0 }
 0x3e8   : > { %v2540_v22 = vmax.f32 %v2392_v0, 0.0 }
 0x3e9   : > { %v2541_v33 = vmax.f32 %v2394_v28, 0.0 }
 0x3ea   : > { %v2643_v55 = vpack.c.bf16 %v2540_v22, %v2538_v30 }
 0x3eb   : > { %v2644_v35 = vpack.c.bf16 %v2541_v33, %v2539_v31  ;;  %v2397_v36 = vpop.f32.mrb[244].mxu0 }
 0x3ec   : > { %v2398_v37 = vadd.f32 %v2397_v36, %v5330_v58  ;;  %v2399_v46 = vpop.f32.mrb[245].mxu0 }
 0x3ed   : > { %v2400_v38 = vadd.f32 %v2399_v46, %v5334_v61  ;;  %v2401_v39 = vpop.f32.mrb[246].mxu0  ;;  %3009 = vmatprep.mubr.bf16.mxu1 %v2644_v35 }
 0x3ee   : > { %v2402_v41 = vadd.f32 %v2401_v39, %v5330_v58  ;;  %v2403_v15 = vpop.f32.mrb[247].mxu0  ;;  %3010 = vmatmul.mubr.bf16.gmra.mrb[232].mxu1 %v2643_v55  ;;  %v2542_v45 = vmax.f32 %v2398_v37, 0.0 }
 0x3ef   : > { %v2404_v43 = vadd.f32 %v2403_v15, %v5334_v61  ;;  %v2543_v51 = vmax.f32 %v2400_v38, 0.0 }
 0x3f0   : > { %v2544_v47 = vmax.f32 %v2402_v41, 0.0 }
 0x3f1   : > { %v2545_v40 = vmax.f32 %v2404_v43, 0.0  ;;  %v2803_v48 = vpop.f32.mrb[128].mxu1 }
 0x3f2   : > { %v2645_v49 = vpack.c.bf16 %v2544_v47, %v2542_v45  ;;  %v5490_v53 = vadd.f32 %v5487_v44, %v2803_v48  ;;  %v2805_v50 = vpop.f32.mrb[129].mxu1 }
 0x3f3   : > { %v2646_v52 = vpack.c.bf16 %v2545_v40, %v2543_v51  ;;  %v2407_v54 = vpop.f32.mrb[248].mxu0  ;;  %v2806_v59 = vpop.f32.mrb[130].mxu1 }
 0x3f4   : > { %v2408_v56 = vadd.f32 %v2407_v54, %v5330_v58  ;;  %v5494_v7 = vadd.f32 %v5487_v44, %v2806_v59  ;;  %v2409_v62 = vpop.f32.mrb[249].mxu0  ;;  %v2808_v63 = vpop.f32.mrb[131].mxu1  ;;  %3050 = vmax.xlane.f32.xlu0 %v5490_v53 }
 0x3f5   : > { %v2410_v2 = vadd.f32 %v2409_v62, %v5334_v61  ;;  %v2411_v57 = vpop.f32.mrb[250].mxu0  ;;  %3017 = vmatprep.mubr.bf16.mxu1 %v2646_v52 }
 0x3f6   : > { %v2412_v3 = vadd.f32 %v2411_v57, %v5330_v58  ;;  %v2413_v4 = vpop.f32.mrb[251].mxu0  ;;  %3018 = vmatmul.mubr.bf16.gmra.mrb[236].mxu1 %v2645_v49  ;;  %3052 = vmax.xlane.f32.xlu1 %v5494_v7  ;;  %v2546_v60 = vmax.f32 %v2408_v56, 0.0 }
 0x3f7   : > { %v2414_v34 = vadd.f32 %v2413_v4, %v5334_v61  ;;  %v2547_v1 = vmax.f32 %v2410_v2, 0.0 }
 0x3f8   : > { %v2548_v5 = vmax.f32 %v2412_v3, 0.0 }
 0x3f9   : > { %v2549_v8 = vmax.f32 %v2414_v34, 0.0  ;;  %v2811_v24 = vpop.f32.mrb[132].mxu1 }
 0x3fa   : > { %v2647_v9 = vpack.c.bf16 %v2548_v5, %v2546_v60  ;;  %v5502_v11 = vadd.f32 %v5487_v44, %v2811_v24  ;;  %v2813_v26 = vpop.f32.mrb[133].mxu1 }
 0x3fb   : > { %v2648_v12 = vpack.c.bf16 %v2549_v8, %v2547_v1  ;;  %v2417_v42 = vpop.f32.mrb[252].mxu0  ;;  %v2814_v13 = vpop.f32.mrb[134].mxu1 }
 0x3fc   : > { %v2418_v14 = vadd.f32 %v2417_v42, %v5330_v58  ;;  %v5506_v16 = vadd.f32 %v5487_v44, %v2814_v13  ;;  %v2419_v17 = vpop.f32.mrb[253].mxu0  ;;  %v2816_v29 = vpop.f32.mrb[135].mxu1  ;;  %3054 = vmax.xlane.f32.xlu0 %v5502_v11 }
 0x3fd   : > { %v2420_v18 = vadd.f32 %v2419_v17, %v5334_v61  ;;  %v2421_v19 = vpop.f32.mrb[254].mxu0  ;;  %3025 = vmatprep.mubr.bf16.mxu1 %v2648_v12 }
 0x3fe   : > { %v2422_v10 = vadd.f32 %v2421_v19, %v5330_v58  ;;  %v2423_v20 = vpop.f32.mrb[255].mxu0  ;;  %3026 = vmatmul.mubr.bf16.gmra.mrb[240].mxu1 %v2647_v9  ;;  %3056 = vmax.xlane.f32.xlu1 %v5506_v16  ;;  %v2550_v21 = vmax.f32 %v2418_v14, 0.0 }
 0x3ff   : > { %v2424_v32 = vadd.f32 %v2423_v20, %v5334_v61  ;;  %v2551_v6 = vmax.f32 %v2420_v18, 0.0 }
 0x400   : > { %v2552_v23 = vmax.f32 %v2422_v10, 0.0 }
 0x401   : > { %v2553_v25 = vmax.f32 %v2424_v32, 0.0  ;;  %v2819_v0 = vpop.f32.mrb[136].mxu1 }
 0x402   : > { %v2649_v27 = vpack.c.bf16 %v2552_v23, %v2550_v21  ;;  %v5514_v28 = vadd.f32 %v5487_v44, %v2819_v0  ;;  %v2821_v30 = vpop.f32.mrb[137].mxu1 }
 0x403   : > { %v2650_v22 = vpack.c.bf16 %v2553_v25, %v2551_v6  ;;  %v2787_v31 = vpop.f32.mrb[0].mxu0  ;;  %v2822_v33 = vpop.f32.mrb[138].mxu1 }
 0x404   : > { %v5517_v58 = vadd.f32 %v5487_v44, %v2822_v33  ;;  %v2824_v55 = vpop.f32.mrb[139].mxu1  ;;  %3058 = vmax.xlane.f32.xlu0 %v5514_v28  ;;  %v2789_v61 = vpop.f32.mrb[1].mxu0  ;;  %v5521_v36 = vadd.f32 %v5487_v44, %v2787_v31 }
 0x405   : > { %v2790_v35 = vpop.f32.mrb[2].mxu0  ;;  %3033 = vmatprep.mubr.bf16.mxu1 %v2650_v22 }
 0x406   : > { %3034 = vmatmul.mubr.bf16.gmra.mrb[244].mxu1 %v2649_v27  ;;  %3060 = vmax.xlane.f32.xlu1 %v5517_v58  ;;  %v2792_v37 = vpop.f32.mrb[3].mxu0  ;;  %v5526_v38 = vadd.f32 %v5487_v44, %v2790_v35 }
 0x408   : > { %3042 = vmax.xlane.f32.xlu0 %v5521_v36 }
 0x409   : > { %v2827_v46 = vpop.f32.mrb[140].mxu1 }
 0x40a   : > { %v2829_v39 = vpop.f32.mrb[141].mxu1  ;;  %v5533_v40 = vadd.f32 %v5487_v44, %v2827_v46 }
 0x40b   : > { %v2795_v41 = vpop.f32.mrb[4].mxu0  ;;  %v2830_v15 = vpop.f32.mrb[142].mxu1 }
 0x40c   : > { %v5529_v43 = vadd.f32 %v5487_v44, %v2795_v41  ;;  %v2797_v45 = vpop.f32.mrb[5].mxu0  ;;  %v2832_v47 = vpop.f32.mrb[143].mxu1  ;;  %3044 = vmax.xlane.f32.xlu0 %v5526_v38  ;;  %v5537_v49 = vadd.f32 %v5487_v44, %v2830_v15 }
 0x40d   : > { %v2798_v51 = vpop.f32.mrb[6].mxu0 }
 0x40e   : > { %v2800_v48 = vpop.f32.mrb[7].mxu0  ;;  %3046 = vmax.xlane.f32.xlu1 %v5529_v43  ;;  %v5545_v56 = vadd.f32 %v5487_v44, %v2798_v51 }
 0x410   : > { %3062 = vmax.xlane.f32.xlu0 %v5533_v40 }
 0x411   : > { %v2835_v50 = vpop.f32.mrb[144].mxu1 }
 0x412   : > { %v5541_v52 = vadd.f32 %v5487_v44, %v2835_v50  ;;  %v2837_v54 = vpop.f32.mrb[145].mxu1  ;;  %3064 = vmax.xlane.f32.xlu1 %v5537_v49 }
 0x413   : > { %v2838_v59 = vpop.f32.mrb[146].mxu1 }
 0x414   : > { %v2840_v62 = vpop.f32.mrb[147].mxu1  ;;  %3066 = vmax.xlane.f32.xlu0 %v5541_v52  ;;  %v5550_v63 = vadd.f32 %v5487_v44, %v2838_v59 }
 0x416   : > { %3048 = vmax.xlane.f32.xlu1 %v5545_v56 }
 0x419   : > { %v2843_v2 = vpop.f32.mrb[148].mxu1 }
 0x41a   : > { %v5553_v57 = vadd.f32 %v5487_v44, %v2843_v2  ;;  %v2845_v3 = vpop.f32.mrb[149].mxu1  ;;  %3068 = vmax.xlane.f32.xlu1 %v5550_v63 }
 0x41b   : > { %v2846_v4 = vpop.f32.mrb[150].mxu1 }
 0x41c   : > { %v5557_v34 = vadd.f32 %v5487_v44, %v2846_v4  ;;  %v2848_v60 = vpop.f32.mrb[151].mxu1  ;;  %3070 = vmax.xlane.f32.xlu0 %v5553_v57 }
 0x41e   : > { %3072 = vmax.xlane.f32.xlu1 %v5557_v34 }
 0x421   : > { %v2851_v5 = vpop.f32.mrb[152].mxu1 }
 0x422   : > { %v5562_v1 = vadd.f32 %v5487_v44, %v2851_v5  ;;  %v2853_v8 = vpop.f32.mrb[153].mxu1 }
 0x423   : > { %v2854_v24 = vpop.f32.mrb[154].mxu1 }
 0x424   : > { %v5565_v9 = vadd.f32 %v5487_v44, %v2854_v24  ;;  %v2856_v26 = vpop.f32.mrb[155].mxu1  ;;  %3074 = vmax.xlane.f32.xlu0 %v5562_v1 }
 0x426   : > { %3076 = vmax.xlane.f32.xlu1 %v5565_v9 }
 0x429   : > { %v2859_v12 = vpop.f32.mrb[156].mxu1 }
 0x42a   : > { %v5570_v42 = vadd.f32 %v5487_v44, %v2859_v12  ;;  %v2861_v13 = vpop.f32.mrb[157].mxu1 }
 0x42b   : > { %v2862_v14 = vpop.f32.mrb[158].mxu1 }
 0x42c   : > { %v5573_v17 = vadd.f32 %v5487_v44, %v2862_v14  ;;  %v2864_v29 = vpop.f32.mrb[159].mxu1  ;;  %3078 = vmax.xlane.f32.xlu0 %v5570_v42 }
 0x42e   : > { %3080 = vmax.xlane.f32.xlu1 %v5573_v17 }
 0x431   : > { %v2867_v18 = vpop.f32.mrb[160].mxu1 }
 0x432   : > { %v5578_v19 = vadd.f32 %v5487_v44, %v2867_v18  ;;  %v2869_v10 = vpop.f32.mrb[161].mxu1 }
 0x433   : > { %v2870_v20 = vpop.f32.mrb[162].mxu1 }
 0x434   : > { %v5581_v32 = vadd.f32 %v5487_v44, %v2870_v20  ;;  %v2872_v21 = vpop.f32.mrb[163].mxu1  ;;  %3082 = vmax.xlane.f32.xlu0 %v5578_v19 }
 0x436   : > { %3084 = vmax.xlane.f32.xlu1 %v5581_v32 }
 0x439   : > { %v2875_v23 = vpop.f32.mrb[164].mxu1 }
 0x43a   : > { %v5586_v6 = vadd.f32 %v5487_v44, %v2875_v23  ;;  %v2877_v25 = vpop.f32.mrb[165].mxu1 }
 0x43b   : > { %v2878_v0 = vpop.f32.mrb[166].mxu1 }
 0x43c   : > { %v5589_v27 = vadd.f32 %v5487_v44, %v2878_v0  ;;  %v2880_v30 = vpop.f32.mrb[167].mxu1  ;;  %3086 = vmax.xlane.f32.xlu0 %v5586_v6 }
 0x43e   : > { %3088 = vmax.xlane.f32.xlu1 %v5589_v27 }
 0x441   : > { %v2883_v22 = vpop.f32.mrb[168].mxu1 }
 0x442   : > { %v5594_v31 = vadd.f32 %v5487_v44, %v2883_v22  ;;  %v2885_v33 = vpop.f32.mrb[169].mxu1 }
 0x443   : > { %v2886_v55 = vpop.f32.mrb[170].mxu1 }
 0x444   : > { %v5597_v61 = vadd.f32 %v5487_v44, %v2886_v55  ;;  %v2888_v35 = vpop.f32.mrb[171].mxu1  ;;  %3090 = vmax.xlane.f32.xlu0 %v5594_v31 }
 0x446   : > { %3092 = vmax.xlane.f32.xlu1 %v5597_v61 }
 0x449   : > { %v2891_v37 = vpop.f32.mrb[172].mxu1 }
 0x44a   : > { %v5602_v46 = vadd.f32 %v5487_v44, %v2891_v37  ;;  %v2893_v39 = vpop.f32.mrb[173].mxu1 }
 0x44b   : > { %v2894_v41 = vpop.f32.mrb[174].mxu1 }
 0x44c   : > { %v5605_v15 = vadd.f32 %v5487_v44, %v2894_v41  ;;  %v2896_v45 = vpop.f32.mrb[175].mxu1  ;;  %3094 = vmax.xlane.f32.xlu0 %v5602_v46 }
 0x44e   : > { %3096 = vmax.xlane.f32.xlu1 %v5605_v15 }
 0x451   : > { %v2899_v47 = vpop.f32.mrb[176].mxu1 }
 0x452   : > { %v5610_v51 = vadd.f32 %v5487_v44, %v2899_v47  ;;  %v2901_v48 = vpop.f32.mrb[177].mxu1 }
 0x453   : > { %v2902_v50 = vpop.f32.mrb[178].mxu1 }
 0x454   : > { %v5613_v54 = vadd.f32 %v5487_v44, %v2902_v50  ;;  %v2904_v59 = vpop.f32.mrb[179].mxu1  ;;  %3098 = vmax.xlane.f32.xlu0 %v5610_v51 }
 0x456   : > { %3100 = vmax.xlane.f32.xlu1 %v5613_v54 }
 0x459   : > { %v2907_v62 = vpop.f32.mrb[180].mxu1 }
 0x45a   : > { %v5618_v2 = vadd.f32 %v5487_v44, %v2907_v62  ;;  %v2909_v3 = vpop.f32.mrb[181].mxu1 }
 0x45b   : > { %v2910_v4 = vpop.f32.mrb[182].mxu1 }
 0x45c   : > { %v5621_v60 = vadd.f32 %v5487_v44, %v2910_v4  ;;  %v2912_v5 = vpop.f32.mrb[183].mxu1  ;;  %3102 = vmax.xlane.f32.xlu0 %v5618_v2 }
 0x45e   : > { %3104 = vmax.xlane.f32.xlu1 %v5621_v60 }
 0x461   : > { %v2915_v8 = vpop.f32.mrb[184].mxu1 }
 0x462   : > { %v5626_v24 = vadd.f32 %v5487_v44, %v2915_v8  ;;  %v2917_v26 = vpop.f32.mrb[185].mxu1 }
 0x463   : > { %v2918_v12 = vpop.f32.mrb[186].mxu1 }
 0x464   : > { %v5629_v13 = vadd.f32 %v5487_v44, %v2918_v12  ;;  %v2920_v14 = vpop.f32.mrb[187].mxu1  ;;  %3106 = vmax.xlane.f32.xlu0 %v5626_v24 }
 0x466   : > { %3108 = vmax.xlane.f32.xlu1 %v5629_v13 }
 0x469   : > { %v2923_v29 = vpop.f32.mrb[188].mxu1 }
 0x46a   : > { %v5634_v18 = vadd.f32 %v5487_v44, %v2923_v29  ;;  %v2925_v10 = vpop.f32.mrb[189].mxu1 }
 0x46b   : > { %v2926_v20 = vpop.f32.mrb[190].mxu1 }
 0x46c   : > { %v5637_v21 = vadd.f32 %v5487_v44, %v2926_v20  ;;  %v2928_v23 = vpop.f32.mrb[191].mxu1  ;;  %3110 = vmax.xlane.f32.xlu0 %v5634_v18 }
 0x46e   : > { %3112 = vmax.xlane.f32.xlu1 %v5637_v21 }
 0x471   : > { %v2931_v25 = vpop.f32.mrb[192].mxu1 }
 0x472   : > { %v5642_v0 = vadd.f32 %v5487_v44, %v2931_v25  ;;  %v2933_v30 = vpop.f32.mrb[193].mxu1 }
 0x473   : > { %v2934_v22 = vpop.f32.mrb[194].mxu1 }
 0x474   : > { %v5645_v33 = vadd.f32 %v5487_v44, %v2934_v22  ;;  %v2936_v55 = vpop.f32.mrb[195].mxu1  ;;  %3114 = vmax.xlane.f32.xlu0 %v5642_v0 }
 0x476   : > { %3116 = vmax.xlane.f32.xlu1 %v5645_v33 }
 0x479   : > { %v2939_v35 = vpop.f32.mrb[196].mxu1 }
 0x47a   : > { %v5650_v37 = vadd.f32 %v5487_v44, %v2939_v35  ;;  %v2941_v39 = vpop.f32.mrb[197].mxu1 }
 0x47b   : > { %v2942_v41 = vpop.f32.mrb[198].mxu1 }
 0x47c   : > { %v5653_v45 = vadd.f32 %v5487_v44, %v2942_v41  ;;  %v2944_v47 = vpop.f32.mrb[199].mxu1  ;;  %3118 = vmax.xlane.f32.xlu0 %v5650_v37 }
 0x47e   : > { %3120 = vmax.xlane.f32.xlu1 %v5653_v45 }
 0x481   : > { %v2947_v48 = vpop.f32.mrb[200].mxu1  ;;  %v3051_v50 = vpop.xlane.xlu0 %3050 }
 0x482   : > { %v5658_v59 = vadd.f32 %v5487_v44, %v2947_v48  ;;  %v5661_v62 = vsub.f32 %v5490_v53, %v3051_v50  ;;  %v2949_v3 = vpop.f32.mrb[201].mxu1 }
 0x483   : > { %v2950_v4 = vpop.f32.mrb[202].mxu1  ;;  %v3053_v5 = vpop.xlane.xlu1 %3052 }
 0x484   : > { %v3242_v8 = vmul.f32 1.442695, %v5661_v62  ;;  %v5665_v26 = vadd.f32 %v5487_v44, %v2950_v4  ;;  %v5668_v12 = vsub.f32 %v5494_v7, %v3053_v5  ;;  %v2952_v14 = vpop.f32.mrb[203].mxu1  ;;  %3122 = vmax.xlane.f32.xlu0 %v5658_v59 }
 0x486   : > { %4157 = vpow2.f32 %v3242_v8  ;;  %v3244_v29 = vmul.f32 1.442695, %v5668_v12  ;;  %3124 = vmax.xlane.f32.xlu1 %v5665_v26 }
 0x488   : > { %4159 = vpow2.f32 %v3244_v29 }
 0x489   : > { %v2955_v53 = vpop.f32.mrb[204].mxu1  ;;  %v3055_v10 = vpop.xlane.xlu0 %3054 }
 0x48a   : > { %v5674_v20 = vadd.f32 %v5487_v44, %v2955_v53  ;;  %v5677_v23 = vsub.f32 %v5502_v11, %v3055_v10  ;;  %v2957_v25 = vpop.f32.mrb[205].mxu1 }
 0x48b   : > { %v2958_v7 = vpop.f32.mrb[206].mxu1  ;;  %v3057_v30 = vpop.xlane.xlu1 %3056 }
 0x48c   : > { %v3246_v22 = vmul.f32 1.442695, %v5677_v23  ;;  %v5681_v55 = vadd.f32 %v5487_v44, %v2958_v7  ;;  %v5684_v35 = vsub.f32 %v5506_v16, %v3057_v30  ;;  %v2960_v39 = vpop.f32.mrb[207].mxu1  ;;  %3126 = vmax.xlane.f32.xlu0 %v5674_v20 }
 0x48e   : > { %4161 = vpow2.f32 %v3246_v22  ;;  %v3248_v41 = vmul.f32 1.442695, %v5684_v35  ;;  %3128 = vmax.xlane.f32.xlu1 %v5681_v55 }
 0x490   : > { %v4158_v11 = vpop.eup %4157  ;;  %4163 = vpow2.f32 %v3248_v41 }
 0x491   : > { %v2963_v47 = vpop.f32.mrb[208].mxu1  ;;  %v3059_v48 = vpop.xlane.xlu0 %3058  ;;  %3370 = vadd.xlane.f32.xlu0 %v4158_v11 }
 0x492   : > { %v4160_v50 = vpop.eup %4159  ;;  %v5690_v3 = vadd.f32 %v5487_v44, %v2963_v47  ;;  %v5693_v16 = vsub.f32 %v5514_v28, %v3059_v48  ;;  %v2965_v4 = vpop.f32.mrb[209].mxu1 }
 0x493   : > { %v2966_v5 = vpop.f32.mrb[210].mxu1  ;;  %v3061_v8 = vpop.xlane.xlu1 %3060  ;;  %3372 = vadd.xlane.f32.xlu1 %v4160_v50 }
 0x494   : > { %v3250_v14 = vmul.f32 1.442695, %v5693_v16  ;;  %v5697_v29 = vadd.f32 %v5487_v44, %v2966_v5  ;;  %v5700_v53 = vsub.f32 %v5517_v58, %v3061_v8  ;;  %v2968_v10 = vpop.f32.mrb[211].mxu1 }
 0x495   : > { %3130 = vmax.xlane.f32.xlu0 %v5690_v3  ;;  %v3043_v25 = vpop.xlane.xlu0 %3042 }
 0x496   : > { %4165 = vpow2.f32 %v3250_v14  ;;  %v3252_v28 = vmul.f32 1.442695, %v5700_v53  ;;  %v5705_v7 = vsub.f32 %v5521_v36, %v3043_v25 }
 0x497   : > { %3132 = vmax.xlane.f32.xlu1 %v5697_v29 }
 0x498   : > { %v4162_v30 = vpop.eup %4161  ;;  %4167 = vpow2.f32 %v3252_v28  ;;  %v3234_v22 = vmul.f32 1.442695, %v5705_v7 }
 0x499   : > { %v2971_v39 = vpop.f32.mrb[212].mxu1  ;;  %3374 = vadd.xlane.f32.xlu0 %v4162_v30  ;;  %v3045_v58 = vpop.xlane.xlu0 %3044 }
 0x49a   : > { %v4164_v41 = vpop.eup %4163  ;;  %4169 = vpow2.f32 %v3234_v22  ;;  %v5710_v11 = vadd.f32 %v5487_v44, %v2971_v39  ;;  %v5713_v47 = vsub.f32 %v5526_v38, %v3045_v58  ;;  %v2973_v48 = vpop.f32.mrb[213].mxu1 }
 0x49b   : > { %v2974_v36 = vpop.f32.mrb[214].mxu1  ;;  %3376 = vadd.xlane.f32.xlu1 %v4164_v41  ;;  %v3047_v50 = vpop.xlane.xlu1 %3046 }
 0x49c   : > { %v3236_v4 = vmul.f32 1.442695, %v5713_v47  ;;  %v5717_v5 = vadd.f32 %v5487_v44, %v2974_v36  ;;  %v2976_v8 = vpop.f32.mrb[215].mxu1  ;;  %v5720_v14 = vsub.f32 %v5529_v43, %v3047_v50 }
 0x49d   : > { %3134 = vmax.xlane.f32.xlu0 %v5710_v11  ;;  %v3063_v10 = vpop.xlane.xlu0 %3062 }
 0x49e   : > { %4171 = vpow2.f32 %v3236_v4  ;;  %v5724_v38 = vsub.f32 %v5533_v40, %v3063_v10  ;;  %v3238_v39 = vmul.f32 1.442695, %v5720_v14 }
 0x49f   : > { %3136 = vmax.xlane.f32.xlu1 %v5717_v5  ;;  %v3065_v25 = vpop.xlane.xlu1 %3064 }
 0x4a0   : > { %v4166_v28 = vpop.eup %4165  ;;  %v3254_v30 = vmul.f32 1.442695, %v5724_v38  ;;  %v5729_v22 = vsub.f32 %v5537_v49, %v3065_v25 }
 0x4a1   : > { %v2979_v43 = vpop.f32.mrb[216].mxu1  ;;  %3378 = vadd.xlane.f32.xlu0 %v4166_v28  ;;  %v3067_v48 = vpop.xlane.xlu0 %3066 }
 0x4a2   : > { %v4168_v58 = vpop.eup %4167  ;;  %4173 = vpow2.f32 %v3254_v30  ;;  %v3256_v41 = vmul.f32 1.442695, %v5729_v22  ;;  %v2981_v40 = vpop.f32.mrb[217].mxu1  ;;  %v5737_v49 = vsub.f32 %v5541_v52, %v3067_v48  ;;  %v5741_v28 = vadd.f32 %v5487_v44, %v2979_v43 }
 0x4a3   : > { %v2982_v36 = vpop.f32.mrb[218].mxu1  ;;  %3380 = vadd.xlane.f32.xlu1 %v4168_v58  ;;  %v3049_v50 = vpop.xlane.xlu1 %3048  ;;  %4175 = vpow2.f32 %v3238_v39 }
 0x4a4   : > { %v4170_v4 = vpop.eup %4169  ;;  %v5734_v8 = vsub.f32 %v5545_v56, %v3049_v50  ;;  %v2984_v10 = vpop.f32.mrb[219].mxu1  ;;  %4177 = vpow2.f32 %v3256_v41  ;;  %6194 = vst [vmem:[#allocation8_spill] sm:$0xff] %v5737_v49  ;;  %v3258_v56 = vmul.f32 1.442695, %v5737_v49  ;;  %v5749_v52 = vadd.f32 %v5487_v44, %v2982_v36 }
 0x4a5   : > { %3362 = vadd.xlane.f32.xlu0 %v4170_v4 }
 0x4a6   : > { %v3240_v25 = vmul.f32 1.442695, %v5734_v8 }
 0x4a7   : > { %v3069_v30 = vpop.xlane.xlu1 %3068 }
 0x4a8   : > { %v4172_v40 = vpop.eup %4171  ;;  %4179 = vpow2.f32 %v3240_v25  ;;  %v5746_v39 = vsub.f32 %v5550_v63, %v3069_v30 }
 0x4a9   : > { %v2987_v58 = vpop.f32.mrb[220].mxu1  ;;  %3138 = vmax.xlane.f32.xlu0 %v5741_v28  ;;  %3364 = vadd.xlane.f32.xlu1 %v4172_v40  ;;  %v3071_v48 = vpop.xlane.xlu0 %3070  ;;  %4181 = vpow2.f32 %v3258_v56 }
 0x4aa   : > { %6195 = vst [vmem:[#allocation9_spill] sm:$0xff] %v5746_v39  ;;  %v2989_v41 = vpop.f32.mrb[221].mxu1  ;;  %v3260_v10 = vmul.f32 1.442695, %v5746_v39  ;;  %v5754_v40 = vsub.f32 %v5553_v57, %v3071_v48  ;;  %v5761_v56 = vadd.f32 %v5487_v44, %v2987_v58 }
 0x4ab   : > { %v2990_v50 = vpop.f32.mrb[222].mxu1  ;;  %v3073_v63 = vpop.xlane.xlu1 %3072 }
 0x4ac   : > { %v4174_v43 = vpop.eup %4173  ;;  %v2992_v4 = vpop.f32.mrb[223].mxu1  ;;  %6196 = vst [vmem:[#allocation10_spill] sm:$0xff] %v5754_v40  ;;  %4183 = vpow2.f32 %v3260_v10  ;;  %v3262_v36 = vmul.f32 1.442695, %v5754_v40 }
 0x4ad   : > { %3140 = vmax.xlane.f32.xlu1 %v5749_v52  ;;  %3382 = vadd.xlane.f32.xlu0 %v4174_v43  ;;  %v4176_v25 = vpop.eup %4175  ;;  %v5758_v4 = vsub.f32 %v5557_v34, %v3073_v63  ;;  %v5769_v34 = vadd.f32 %v5487_v44, %v2990_v50 }
 0x4ae   : > { %v4178_v30 = vpop.eup %4177  ;;  %4185 = vpow2.f32 %v3262_v36 }
 0x4af   : > { %6197 = vst [vmem:[#allocation11_spill] sm:$0xff] %v5758_v4 }
 0x4b1   : > { %v2995_v41 = vpop.f32.mrb[224].mxu1  ;;  %3384 = vadd.xlane.f32.xlu1 %v4178_v30  ;;  %3366 = vadd.xlane.f32.xlu0 %v4176_v25  ;;  %v3075_v43 = vpop.xlane.xlu0 %3074  ;;  %v3264_v25 = vmul.f32 1.442695, %v5758_v4 }
 0x4b2   : > { %v2997_v49 = vpop.f32.mrb[225].mxu1  ;;  %v4180_v57 = vpop.eup %4179  ;;  %v5766_v10 = vsub.f32 %v5562_v1, %v3075_v43 }
 0x4b3   : > { %v2998_v39 = vpop.f32.mrb[226].mxu1  ;;  %v3077_v49 = vpop.xlane.xlu1 %3076  ;;  %4187 = vpow2.f32 %v3264_v25 }
 0x4b4   : > { %v3000_v48 = vpop.f32.mrb[227].mxu1  ;;  %6198 = vst [vmem:[#allocation12_spill] sm:$0xff] %v5766_v10  ;;  %v4182_v63 = vpop.eup %4181  ;;  %v3266_v30 = vmul.f32 1.442695, %v5766_v10 }
 0x4b5   : > { %3368 = vadd.xlane.f32.xlu1 %v4180_v57  ;;  %3142 = vmax.xlane.f32.xlu0 %v5761_v56  ;;  %v5774_v57 = vsub.f32 %v5565_v9, %v3077_v49  ;;  %v5777_v48 = vadd.f32 %v5487_v44, %v2995_v41  ;;  %v5785_v9 = vadd.f32 %v5487_v44, %v2998_v39 }
 0x4b6   : > { %v4184_v50 = vpop.eup %4183  ;;  %4189 = vpow2.f32 %v3266_v30 }
 0x4b7   : > { %6199 = vst [vmem:[#allocation13_spill] sm:$0xff] %v5774_v57 }
 0x4b9   : > { %v3003_v58 = vpop.f32.mrb[228].mxu1  ;;  %3144 = vmax.xlane.f32.xlu1 %v5769_v34  ;;  %3386 = vadd.xlane.f32.xlu0 %v4182_v63  ;;  %v3079_v1 = vpop.xlane.xlu0 %3078  ;;  %v3268_v63 = vmul.f32 1.442695, %v5774_v57 }
 0x4ba   : > { %v3005_v36 = vpop.f32.mrb[229].mxu1  ;;  %v5782_v25 = vsub.f32 %v5570_v42, %v3079_v1  ;;  %v5793_v57 = vadd.f32 %v5487_v44, %v3003_v58 }
 0x4bb   : > { %v3006_v43 = vpop.f32.mrb[230].mxu1  ;;  %v3081_v49 = vpop.xlane.xlu1 %3080  ;;  %4191 = vpow2.f32 %v3268_v63 }
 0x4bc   : > { %v3008_v4 = vpop.f32.mrb[231].mxu1  ;;  %6200 = vst [vmem:[#allocation14_spill] sm:$0xff] %v5782_v25  ;;  %v4186_v36 = vpop.eup %4185  ;;  %6202 = vst [vmem:[#allocation16_spill] sm:$0xff] %v5793_v57  ;;  %v5798_v63 = vadd.f32 %v5487_v44, %v3006_v43 }
 0x4bd   : > { %3388 = vadd.xlane.f32.xlu1 %v4184_v50  ;;  %3146 = vmax.xlane.f32.xlu0 %v5777_v48  ;;  %v3270_v4 = vmul.f32 1.442695, %v5782_v25  ;;  %v5790_v50 = vsub.f32 %v5573_v17, %v3081_v49  ;;  %v4188_v1 = vpop.eup %4187 }
 0x4be   : > { %6203 = vst [vmem:[#allocation17_spill] sm:$0xff] %v5798_v63 }
 0x4bf   : > { %6201 = vst [vmem:[#allocation15_spill] sm:$0xff] %v5790_v50  ;;  %4193 = vpow2.f32 %v3270_v4  ;;  %v3272_v10 = vmul.f32 1.442695, %v5790_v50 }
 0x4c1   : > { %v3011_v41 = vpop.f32.mrb[232].mxu1  ;;  %3148 = vmax.xlane.f32.xlu1 %v5785_v9  ;;  %3390 = vadd.xlane.f32.xlu0 %v4186_v36  ;;  %v4190_v36 = vpop.eup %4189  ;;  %4195 = vpow2.f32 %v3272_v10 }
 0x4c2   : > { %v3013_v30 = vpop.f32.mrb[233].mxu1  ;;  %v5802_v58 = vadd.f32 %v5487_v44, %v3011_v41  ;;  %v3083_v49 = vpop.xlane.xlu0 %3082 }
 0x4c3   : > { %v3014_v42 = vpop.f32.mrb[234].mxu1  ;;  %v5806_v43 = vsub.f32 %v5578_v19, %v3083_v49  ;;  %v3085_v4 = vpop.xlane.xlu1 %3084 }
 0x4c4   : > { %v3016_v39 = vpop.f32.mrb[235].mxu1  ;;  %6204 = vst [vmem:[#allocation18_spill] sm:$0xff] %v5802_v58  ;;  %v5809_v50 = vadd.f32 %v5487_v44, %v3014_v42 }
 0x4c5   : > { %3392 = vadd.xlane.f32.xlu1 %v4188_v1  ;;  %3150 = vmax.xlane.f32.xlu0 %v5793_v57  ;;  %v4192_v1 = vpop.eup %4191 }
 0x4c9   : > { %v3019_v25 = vpop.f32.mrb[236].mxu1  ;;  %3152 = vmax.xlane.f32.xlu1 %v5798_v63  ;;  %3394 = vadd.xlane.f32.xlu0 %v4190_v36  ;;  %v3087_v36 = vpop.xlane.xlu0 %3086 }
 0x4ca   : > { %v3021_v17 = vpop.f32.mrb[237].mxu1  ;;  %v4194_v10 = vpop.eup %4193  ;;  %v5820_v40 = vadd.f32 %v5487_v44, %v3019_v25 }
 0x4cb   : > { %v3022_v30 = vpop.f32.mrb[238].mxu1  ;;  %v5812_v17 = vsub.f32 %v5581_v32, %v3085_v4  ;;  %v3089_v19 = vpop.xlane.xlu1 %3088 }
 0x4cc   : > { %v3024_v39 = vpop.f32.mrb[239].mxu1  ;;  %v4196_v63 = vpop.eup %4195  ;;  %v5824_v4 = vsub.f32 %v5589_v27, %v3089_v19 }
 0x4cd   : > { %3396 = vadd.xlane.f32.xlu1 %v4192_v1  ;;  %3154 = vmax.xlane.f32.xlu0 %v5802_v58  ;;  %v3274_v1 = vmul.f32 1.442695, %v5806_v43  ;;  %v5817_v39 = vsub.f32 %v5586_v6, %v3087_v36  ;;  %v3276_v32 = vmul.f32 1.442695, %v5812_v17 }
 0x4ce   : > { %6205 = vst [vmem:[#allocation19_spill] sm:$0xff] %v5824_v4  ;;  %v3280_v27 = vmul.f32 1.442695, %v5824_v4 }
 0x4cf   : > { %4197 = vpow2.f32 %v3274_v1  ;;  %v3278_v6 = vmul.f32 1.442695, %v5817_v39 }
 0x4d0   : > { %4199 = vpow2.f32 %v3276_v32 }
 0x4d1   : > { %v3027_v41 = vpop.f32.mrb[240].mxu1  ;;  %3156 = vmax.xlane.f32.xlu1 %v5809_v50  ;;  %3398 = vadd.xlane.f32.xlu0 %v4194_v10  ;;  %v3091_v42 = vpop.xlane.xlu0 %3090  ;;  %v5832_v10 = vadd.f32 %v5487_v44, %v3022_v30  ;;  %4201 = vpow2.f32 %v3278_v6 }
 0x4d2   : > { %v3029_v49 = vpop.f32.mrb[241].mxu1  ;;  %v5829_v36 = vsub.f32 %v5594_v31, %v3091_v42  ;;  %4203 = vpow2.f32 %v3280_v27 }
 0x4d3   : > { %v3030_v58 = vpop.f32.mrb[242].mxu1  ;;  %v3093_v25 = vpop.xlane.xlu1 %3092 }
 0x4d4   : > { %v3032_v57 = vpop.f32.mrb[243].mxu1  ;;  %v3282_v1 = vmul.f32 1.442695, %v5829_v36  ;;  %v5851_v42 = vadd.f32 %v5487_v44, %v3030_v58 }
 0x4d5   : > { %3400 = vadd.xlane.f32.xlu1 %v4196_v63  ;;  %3158 = vmax.xlane.f32.xlu0 %v5820_v40  ;;  %v5835_v57 = vadd.f32 %v5487_v44, %v3027_v41  ;;  %v5839_v63 = vsub.f32 %v5597_v61, %v3093_v25 }
 0x4d6   : > { %4205 = vpow2.f32 %v3282_v1 }
 0x4d7   : > { %v3284_v4 = vmul.f32 1.442695, %v5839_v63 }
 0x4d9   : > { %v3035_v19 = vpop.f32.mrb[244].mxu1  ;;  %3160 = vmax.xlane.f32.xlu1 %v5832_v10  ;;  %3162 = vmax.xlane.f32.xlu0 %v5835_v57  ;;  %v3095_v31 = vpop.xlane.xlu0 %3094  ;;  %4207 = vpow2.f32 %v3284_v4 }
 0x4da   : > { %v5845_v30 = vadd.f32 %v5487_v44, %v3035_v19  ;;  %v5848_v41 = vsub.f32 %v5602_v46, %v3095_v31  ;;  %v3037_v49 = vpop.f32.mrb[245].mxu1  ;;  %v4198_v58 = vpop.eup %4197 }
 0x4db   : > { %v3038_v61 = vpop.f32.mrb[246].mxu1  ;;  %v3097_v32 = vpop.xlane.xlu1 %3096 }
 0x4dc   : > { %v3040_v25 = vpop.f32.mrb[247].mxu1  ;;  %v5855_v6 = vsub.f32 %v5605_v15, %v3097_v32  ;;  %v3286_v46 = vmul.f32 1.442695, %v5848_v41  ;;  %v5861_v19 = vadd.f32 %v5487_v44, %v3038_v61  ;;  %v4200_v49 = vpop.eup %4199 }
 0x4dd   : > { %3164 = vmax.xlane.f32.xlu1 %v5851_v42  ;;  %3166 = vmax.xlane.f32.xlu0 %v5845_v30  ;;  %v4202_v1 = vpop.eup %4201 }
 0x4de   : > { %6206 = vst [vmem:[#allocation20_spill] sm:$0xff] %v5855_v6  ;;  %v3288_v31 = vmul.f32 1.442695, %v5855_v6  ;;  %4209 = vpow2.f32 %v3286_v46  ;;  %v4204_v61 = vpop.eup %4203 }
 0x4e0   : > { %4211 = vpow2.f32 %v3288_v31 }
 0x4e1   : > { %3168 = vmax.xlane.f32.xlu1 %v5861_v19  ;;  %3402 = vadd.xlane.f32.xlu0 %v4198_v58  ;;  %v3099_v27 = vpop.xlane.xlu0 %3098  ;;  %v4206_v58 = vpop.eup %4205 }
 0x4e2   : > { %v5866_v15 = vsub.f32 %v5610_v51, %v3099_v27 }
 0x4e3   : > { %v3101_v32 = vpop.xlane.xlu1 %3100  ;;  %v4208_v27 = vpop.eup %4207 }
 0x4e4   : > { %6207 = vst [vmem:[#allocation21_spill] sm:$0xff] %v5866_v15  ;;  %v3290_v25 = vmul.f32 1.442695, %v5866_v15  ;;  %v5870_v44 = vsub.f32 %v5613_v54, %v3101_v32 }
 0x4e5   : > { %3404 = vadd.xlane.f32.xlu1 %v4200_v49  ;;  %3406 = vadd.xlane.f32.xlu0 %v4202_v1 }
 0x4e6   : > { %4213 = vpow2.f32 %v3290_v25  ;;  %v3292_v4 = vmul.f32 1.442695, %v5870_v44 }
 0x4e8   : > { %4215 = vpow2.f32 %v3292_v4  ;;  %v4210_v6 = vpop.eup %4209 }
 0x4e9   : > { %3408 = vadd.xlane.f32.xlu1 %v4204_v61  ;;  %3410 = vadd.xlane.f32.xlu0 %v4206_v58  ;;  %v3103_v51 = vpop.xlane.xlu0 %3102 }
 0x4ea   : > { %v5874_v46 = vsub.f32 %v5618_v2, %v3103_v51  ;;  %v4212_v32 = vpop.eup %4211 }
 0x4eb   : > { %v3105_v15 = vpop.xlane.xlu1 %3104 }
 0x4ec   : > { %v3294_v54 = vmul.f32 1.442695, %v5874_v46  ;;  %v5878_v31 = vsub.f32 %v5621_v60, %v3105_v15 }
 0x4ed   : > { %3412 = vadd.xlane.f32.xlu1 %v4208_v27  ;;  %3414 = vadd.xlane.f32.xlu0 %v4210_v6 }
 0x4ee   : > { %4217 = vpow2.f32 %v3294_v54  ;;  %v3296_v49 = vmul.f32 1.442695, %v5878_v31 }
 0x4f0   : > { %v4214_v1 = vpop.eup %4213  ;;  %4219 = vpow2.f32 %v3296_v49 }
 0x4f1   : > { %3416 = vadd.xlane.f32.xlu1 %v4212_v32  ;;  %3418 = vadd.xlane.f32.xlu0 %v4214_v1  ;;  %v3107_v2 = vpop.xlane.xlu0 %3106 }
 0x4f2   : > { %v5882_v25 = vsub.f32 %v5626_v24, %v3107_v2  ;;  %v4216_v61 = vpop.eup %4215 }
 0x4f3   : > { %v3109_v4 = vpop.xlane.xlu1 %3108 }
 0x4f4   : > { %v3298_v58 = vmul.f32 1.442695, %v5882_v25  ;;  %v5886_v60 = vsub.f32 %v5629_v13, %v3109_v4 }
 0x4f5   : > { %3420 = vadd.xlane.f32.xlu1 %v4216_v61 }
 0x4f6   : > { %4221 = vpow2.f32 %v3298_v58  ;;  %v3300_v6 = vmul.f32 1.442695, %v5886_v60 }
 0x4f8   : > { %v4218_v15 = vpop.eup %4217  ;;  %4223 = vpow2.f32 %v3300_v6 }
 0x4f9   : > { %3422 = vadd.xlane.f32.xlu0 %v4218_v15  ;;  %v3111_v51 = vpop.xlane.xlu0 %3110 }
 0x4fa   : > { %v4220_v27 = vpop.eup %4219  ;;  %v5890_v54 = vsub.f32 %v5634_v18, %v3111_v51 }
 0x4fb   : > { %v3113_v24 = vpop.xlane.xlu1 %3112  ;;  %3424 = vadd.xlane.f32.xlu1 %v4220_v27 }
 0x4fc   : > { %v3302_v49 = vmul.f32 1.442695, %v5890_v54  ;;  %v5894_v32 = vsub.f32 %v5637_v21, %v3113_v24 }
 0x4fe   : > { %4225 = vpow2.f32 %v3302_v49  ;;  %v3304_v13 = vmul.f32 1.442695, %v5894_v32 }
 0x500   : > { %v4222_v1 = vpop.eup %4221  ;;  %4227 = vpow2.f32 %v3304_v13 }
 0x501   : > { %3426 = vadd.xlane.f32.xlu0 %v4222_v1  ;;  %v3115_v2 = vpop.xlane.xlu0 %3114 }
 0x502   : > { %v4224_v4 = vpop.eup %4223  ;;  %v5898_v61 = vsub.f32 %v5642_v0, %v3115_v2 }
 0x503   : > { %v3117_v18 = vpop.xlane.xlu1 %3116  ;;  %3428 = vadd.xlane.f32.xlu1 %v4224_v4 }
 0x504   : > { %v3306_v58 = vmul.f32 1.442695, %v5898_v61  ;;  %v5902_v6 = vsub.f32 %v5645_v33, %v3117_v18 }
 0x506   : > { %4229 = vpow2.f32 %v3306_v58  ;;  %v3308_v21 = vmul.f32 1.442695, %v5902_v6 }
 0x508   : > { %v4226_v15 = vpop.eup %4225  ;;  %4231 = vpow2.f32 %v3308_v21 }
 0x509   : > { %3430 = vadd.xlane.f32.xlu0 %v4226_v15  ;;  %v3119_v51 = vpop.xlane.xlu0 %3118 }
 0x50a   : > { %v4228_v27 = vpop.eup %4227  ;;  %v5906_v24 = vsub.f32 %v5650_v37, %v3119_v51 }
 0x50b   : > { %v3121_v0 = vpop.xlane.xlu1 %3120  ;;  %3432 = vadd.xlane.f32.xlu1 %v4228_v27 }
 0x50c   : > { %v3310_v49 = vmul.f32 1.442695, %v5906_v24  ;;  %v5910_v13 = vsub.f32 %v5653_v45, %v3121_v0 }
 0x50e   : > { %4233 = vpow2.f32 %v3310_v49  ;;  %v3312_v33 = vmul.f32 1.442695, %v5910_v13 }
 0x510   : > { %v4230_v1 = vpop.eup %4229  ;;  %4235 = vpow2.f32 %v3312_v33 }
 0x511   : > { %3434 = vadd.xlane.f32.xlu0 %v4230_v1  ;;  %v3123_v2 = vpop.xlane.xlu0 %3122 }
 0x512   : > { %v4232_v4 = vpop.eup %4231  ;;  %v5914_v18 = vsub.f32 %v5658_v59, %v3123_v2 }
 0x513   : > { %v3125_v37 = vpop.xlane.xlu1 %3124  ;;  %3436 = vadd.xlane.f32.xlu1 %v4232_v4 }
 0x514   : > { %v3314_v58 = vmul.f32 1.442695, %v5914_v18  ;;  %v5918_v21 = vsub.f32 %v5665_v26, %v3125_v37 }
 0x516   : > { %4237 = vpow2.f32 %v3314_v58  ;;  %v3316_v45 = vmul.f32 1.442695, %v5918_v21 }
 0x518   : > { %v4234_v15 = vpop.eup %4233  ;;  %4239 = vpow2.f32 %v3316_v45 }
 0x519   : > { %3438 = vadd.xlane.f32.xlu0 %v4234_v15  ;;  %v3127_v51 = vpop.xlane.xlu0 %3126 }
 0x51a   : > { %v4236_v27 = vpop.eup %4235  ;;  %v5922_v0 = vsub.f32 %v5674_v20, %v3127_v51 }
 0x51b   : > { %v3129_v59 = vpop.xlane.xlu1 %3128  ;;  %3440 = vadd.xlane.f32.xlu1 %v4236_v27 }
 0x51c   : > { %v3318_v49 = vmul.f32 1.442695, %v5922_v0  ;;  %v5926_v33 = vsub.f32 %v5681_v55, %v3129_v59 }
 0x51e   : > { %4241 = vpow2.f32 %v3318_v49  ;;  %v3320_v26 = vmul.f32 1.442695, %v5926_v33  ;;  %v3371_v1 = vpop.xlane.xlu0 %3370 }
 0x51f   : > { %4243 = vlog2.f32 %v3371_v1 }
 0x520   : > { %v4238_v2 = vpop.eup %4237  ;;  %4245 = vpow2.f32 %v3320_v26  ;;  %v3373_v4 = vpop.xlane.xlu1 %3372 }
 0x521   : > { %4247 = vlog2.f32 %v3373_v4  ;;  %3442 = vadd.xlane.f32.xlu0 %v4238_v2 }
 0x522   : > { %v4240_v20 = vpop.eup %4239  ;;  %v3131_v37 = vpop.xlane.xlu0 %3130 }
 0x523   : > { %v5932_v58 = vsub.f32 %v5690_v3, %v3131_v37  ;;  %3444 = vadd.xlane.f32.xlu1 %v4240_v20 }
 0x524   : > { %v3133_v55 = vpop.xlane.xlu1 %3132 }
 0x525   : > { %v3322_v45 = vmul.f32 1.442695, %v5932_v58  ;;  %v5936_v15 = vsub.f32 %v5697_v29, %v3133_v55 }
 0x526   : > { %v3375_v51 = vpop.xlane.xlu0 %3374 }
 0x527   : > { %4249 = vpow2.f32 %v3322_v45  ;;  %v3324_v27 = vmul.f32 1.442695, %v5936_v15 }
 0x528   : > { %v4242_v59 = vpop.eup %4241  ;;  %4251 = vlog2.f32 %v3375_v51  ;;  %v3377_v49 = vpop.xlane.xlu1 %3376 }
 0x529   : > { %v4244_v26 = vpop.eup %4243  ;;  %4253 = vpow2.f32 %v3324_v27  ;;  %3446 = vadd.xlane.f32.xlu0 %v4242_v59 }
 0x52a   : > { %v4246_v3 = vpop.eup %4245  ;;  %v3499_v1 = vmul.f32 0.6931472, %v4244_v26  ;;  %4255 = vlog2.f32 %v3377_v49  ;;  %v3135_v2 = vpop.xlane.xlu0 %3134 }
 0x52b   : > { %v4248_v4 = vpop.eup %4247  ;;  %v5945_v29 = vsub.f32 %v5710_v11, %v3135_v2  ;;  %3448 = vadd.xlane.f32.xlu1 %v4246_v3 }
 0x52c   : > { %v3622_v20 = vsub.f32 %v5661_v62, %v3499_v1  ;;  %v3501_v37 = vmul.f32 0.6931472, %v4248_v4  ;;  %v3137_v55 = vpop.xlane.xlu1 %3136 }
 0x52d   : > { %v3326_v45 = vmul.f32 1.442695, %v5945_v29  ;;  %v5950_v51 = vsub.f32 %v5717_v5, %v3137_v55 }
 0x52e   : > { %3686 = vst [vmem:[%s5942_s23 + $0x20] sm:$0xff] %v3622_v20  ;;  %v3623_v27 = vsub.f32 %v5668_v12, %v3501_v37  ;;  %v3379_v59 = vpop.xlane.xlu0 %3378 }
 0x52f   : > { %4257 = vpow2.f32 %v3326_v45  ;;  %v3328_v49 = vmul.f32 1.442695, %v5950_v51 }
 0x530   : > { %3687 = vst [vmem:[%s5942_s23 + $0x28] sm:$0xff] %v3623_v27  ;;  %4259 = vlog2.f32 %v3379_v59  ;;  %v3381_v11 = vpop.xlane.xlu1 %3380 }
 0x531   : > { %v4250_v26 = vpop.eup %4249  ;;  %4261 = vpow2.f32 %v3328_v49 }
 0x532   : > { %v4252_v62 = vpop.eup %4251  ;;  %4263 = vlog2.f32 %v3381_v11  ;;  %3450 = vadd.xlane.f32.xlu0 %v4250_v26  ;;  %v3363_v3 = vpop.xlane.xlu0 %3362 }
 0x533   : > { %v4254_v5 = vpop.eup %4253  ;;  %v3503_v1 = vmul.f32 0.6931472, %v4252_v62  ;;  %4265 = vlog2.f32 %v3363_v3 }
 0x534   : > { %v4256_v2 = vpop.eup %4255  ;;  %3452 = vadd.xlane.f32.xlu1 %v4254_v5 }
 0x535   : > { %v3624_v12 = vsub.f32 %v5677_v23, %v3503_v1  ;;  %v3505_v4 = vmul.f32 0.6931472, %v4256_v2 }
 0x536   : > { %v3365_v20 = vpop.xlane.xlu1 %3364  ;;  %v3139_v37 = vpop.xlane.xlu0 %3138 }
 0x537   : > { %3688 = vst [vmem:[%s5942_s23 + $0x30] sm:$0xff] %v3624_v12  ;;  %v3625_v55 = vsub.f32 %v5684_v35, %v3505_v4  ;;  %4267 = vlog2.f32 %v3365_v20  ;;  %v5960_v45 = vsub.f32 %v5741_v28, %v3139_v37 }
 0x539   : > { %v4258_v27 = vpop.eup %4257  ;;  %3689 = vst [vmem:[%s5942_s23 + $0x38] sm:$0xff] %v3625_v55  ;;  %v3330_v59 = vmul.f32 1.442695, %v5960_v45 }
 0x53a   : > { %v4260_v49 = vpop.eup %4259  ;;  %v3141_v11 = vpop.xlane.xlu1 %3140  ;;  %3454 = vadd.xlane.f32.xlu0 %v4258_v27 }
 0x53b   : > { %v3383_v26 = vpop.xlane.xlu0 %3382  ;;  %v4262_v23 = vpop.eup %4261  ;;  %v3507_v62 = vmul.f32 0.6931472, %v4260_v49  ;;  %4269 = vpow2.f32 %v3330_v59  ;;  %v5965_v3 = vsub.f32 %v5749_v52, %v3141_v11 }
 0x53c   : > { %v4264_v35 = vpop.eup %4263  ;;  %4271 = vlog2.f32 %v3383_v26  ;;  %3456 = vadd.xlane.f32.xlu1 %v4262_v23 }
 0x53d   : > { %v4266_v28 = vpop.eup %4265  ;;  %v3626_v5 = vsub.f32 %v5693_v16, %v3507_v62  ;;  %v3509_v1 = vmul.f32 0.6931472, %v4264_v35  ;;  %v3332_v2 = vmul.f32 1.442695, %v5965_v3 }
 0x53e   : > { %v3491_v12 = vmul.f32 0.6931472, %v4266_v28  ;;  %v3385_v4 = vpop.xlane.xlu1 %3384 }
 0x53f   : > { %v3367_v20 = vpop.xlane.xlu0 %3366  ;;  %3690 = vst [vmem:[%s5942_s23 + $0x40] sm:$0xff] %v3626_v5  ;;  %v3627_v37 = vsub.f32 %v5700_v53, %v3509_v1  ;;  %4273 = vpow2.f32 %v3332_v2 }
 0x540   : > { %v3618_v52 = vsub.f32 %v5705_v7, %v3491_v12  ;;  %4275 = vlog2.f32 %v3385_v4 }
 0x541   : > { %v4268_v55 = vpop.eup %4267  ;;  %3691 = vst [vmem:[%s5942_s23 + $0x48] sm:$0xff] %v3627_v37  ;;  %4277 = vlog2.f32 %v3367_v20 }
 0x542   : > { %3682 = vst [vmem:[%s5942_s23] sm:$0xff] %v3618_v52  ;;  %v3493_v27 = vmul.f32 0.6931472, %v4268_v55  ;;  %v3369_v16 = vpop.xlane.xlu1 %3368 }
 0x543   : > { %v3143_v59 = vpop.xlane.xlu0 %3142  ;;  %4279 = vlog2.f32 %v3369_v16 }
 0x544   : > { %v5975_v49 = vsub.f32 %v5761_v56, %v3143_v59  ;;  %v3619_v11 = vsub.f32 %v5713_v47, %v3493_v27 }
 0x545   : > { %v4270_v26 = vpop.eup %4269 }
 0x546   : > { %v3334_v53 = vmul.f32 1.442695, %v5975_v49  ;;  %v4272_v23 = vpop.eup %4271  ;;  %3683 = vst [vmem:[%s5942_s23 + $0x8] sm:$0xff] %v3619_v11  ;;  %v3145_v7 = vpop.xlane.xlu1 %3144  ;;  %3458 = vadd.xlane.f32.xlu0 %v4270_v26 }
 0x547   : > { %v3387_v62 = vpop.xlane.xlu0 %3386  ;;  %v3511_v35 = vmul.f32 0.6931472, %v4272_v23  ;;  %v5981_v28 = vsub.f32 %v5769_v34, %v3145_v7 }
 0x548   : > { %4281 = vpow2.f32 %v3334_v53 }
 0x549   : > { %4283 = vlog2.f32 %v3387_v62  ;;  %v4274_v5 = vpop.eup %4273  ;;  %v3628_v56 = vsub.f32 %v5724_v38, %v3511_v35  ;;  %v3336_v47 = vmul.f32 1.442695, %v5981_v28  ;;  %v6209_v35 = vld [vmem:[#allocation16_spill] sm:$0xff] }
 0x54a   : > { %v4276_v1 = vpop.eup %4275  ;;  %3460 = vadd.xlane.f32.xlu1 %v4274_v5  ;;  %v3389_v2 = vpop.xlane.xlu1 %3388 }
 0x54b   : > { %v3147_v12 = vpop.xlane.xlu0 %3146  ;;  %v4278_v4 = vpop.eup %4277  ;;  %3692 = vst [vmem:[%s5942_s23 + $0x50] sm:$0xff] %v3628_v56  ;;  %v3513_v20 = vmul.f32 0.6931472, %v4276_v1  ;;  %4285 = vpow2.f32 %v3336_v47  ;;  %v6210_v56 = vld [vmem:[#allocation8_spill] sm:$0xff] }
 0x54c   : > { %v5987_v37 = vsub.f32 %v5777_v48, %v3147_v12  ;;  %v3495_v34 = vmul.f32 0.6931472, %v4278_v4  ;;  %4287 = vlog2.f32 %v3389_v2 }
 0x54d   : > { %v4280_v52 = vpop.eup %4279  ;;  %v3629_v38 = vsub.f32 %v5729_v22, %v3513_v20  ;;  %v6211_v20 = vld [vmem:[#allocation17_spill] sm:$0xff] }
 0x54e   : > { %v3338_v55 = vmul.f32 1.442695, %v5987_v37  ;;  %v3620_v27 = vsub.f32 %v5720_v14, %v3495_v34  ;;  %v3497_v16 = vmul.f32 0.6931472, %v4280_v52  ;;  %v3149_v59 = vpop.xlane.xlu1 %3148 }
 0x54f   : > { %v3391_v11 = vpop.xlane.xlu0 %3390  ;;  %3693 = vst [vmem:[%s5942_s23 + $0x58] sm:$0xff] %v3629_v38  ;;  %v5994_v26 = vsub.f32 %v5785_v9, %v3149_v59  ;;  %v6212_v38 = vld [vmem:[#allocation9_spill] sm:$0xff] }
 0x550   : > { %4289 = vpow2.f32 %v3338_v55  ;;  %3684 = vst [vmem:[%s5942_s23 + $0x10] sm:$0xff] %v3620_v27  ;;  %v3621_v48 = vsub.f32 %v5734_v8, %v3497_v16 }
 0x551   : > { %4291 = vlog2.f32 %v3391_v11  ;;  %v3340_v23 = vmul.f32 1.442695, %v5994_v26 }
 0x552   : > { %v4282_v53 = vpop.eup %4281  ;;  %3685 = vst [vmem:[%s5942_s23 + $0x18] sm:$0xff] %v3621_v48  ;;  %v3393_v7 = vpop.xlane.xlu1 %3392 }
 0x553   : > { %v4284_v22 = vpop.eup %4283  ;;  %3462 = vadd.xlane.f32.xlu0 %v4282_v53  ;;  %v3151_v14 = vpop.xlane.xlu0 %3150  ;;  %4293 = vpow2.f32 %v3340_v23  ;;  %v6213_v53 = vld [vmem:[#allocation18_spill] sm:$0xff] }
 0x554   : > { %v3515_v62 = vmul.f32 0.6931472, %v4284_v22  ;;  %v6001_v5 = vsub.f32 %v6209_v35, %v3151_v14  ;;  %4295 = vlog2.f32 %v3393_v7  ;;  %v6214_v7 = vld [vmem:[#allocation10_spill] sm:$0xff] }
 0x555   : > { %v4286_v9 = vpop.eup %4285 }
 0x556   : > { %v3630_v47 = vsub.f32 %v6210_v56, %v3515_v62  ;;  %v3342_v8 = vmul.f32 1.442695, %v6001_v5  ;;  %v4288_v1 = vpop.eup %4287  ;;  %3464 = vadd.xlane.f32.xlu1 %v4286_v9  ;;  %v3153_v2 = vpop.xlane.xlu1 %3152 }
 0x557   : > { %v3395_v12 = vpop.xlane.xlu0 %3394  ;;  %v3517_v4 = vmul.f32 0.6931472, %v4288_v1  ;;  %v6007_v34 = vsub.f32 %v6211_v20, %v3153_v2  ;;  %v6215_v2 = vld [vmem:[#allocation11_spill] sm:$0xff] }
 0x558   : > { %3694 = vst [vmem:[%s5942_s23 + $0x60] sm:$0xff] %v3630_v47  ;;  %4297 = vpow2.f32 %v3342_v8 }
 0x559   : > { %4299 = vlog2.f32 %v3395_v12  ;;  %v3631_v55 = vsub.f32 %v6212_v38, %v3517_v4  ;;  %v3344_v27 = vmul.f32 1.442695, %v6007_v34 }
 0x55a   : > { %v4290_v52 = vpop.eup %4289  ;;  %v3397_v59 = vpop.xlane.xlu1 %3396 }
 0x55b   : > { %v4292_v16 = vpop.eup %4291  ;;  %3466 = vadd.xlane.f32.xlu0 %v4290_v52  ;;  %v3155_v11 = vpop.xlane.xlu0 %3154  ;;  %3695 = vst [vmem:[%s5942_s23 + $0x68] sm:$0xff] %v3631_v55  ;;  %4301 = vpow2.f32 %v3344_v27 }
 0x55c   : > { %v3519_v48 = vmul.f32 0.6931472, %v4292_v16  ;;  %v6013_v23 = vsub.f32 %v6213_v53, %v3155_v11  ;;  %4303 = vlog2.f32 %v3397_v59  ;;  %v6216_v16 = vld [vmem:[#allocation12_spill] sm:$0xff] }
 0x55d   : > { %v4294_v22 = vpop.eup %4293 }
 0x55e   : > { %v3632_v14 = vsub.f32 %v6214_v7, %v3519_v48  ;;  %v3346_v62 = vmul.f32 1.442695, %v6013_v23  ;;  %v4296_v35 = vpop.eup %4295  ;;  %3468 = vadd.xlane.f32.xlu1 %v4294_v22  ;;  %v3157_v9 = vpop.xlane.xlu1 %3156 }
 0x55f   : > { %v3399_v56 = vpop.xlane.xlu0 %3398  ;;  %v3521_v47 = vmul.f32 0.6931472, %v4296_v35  ;;  %v6019_v8 = vsub.f32 %v5809_v50, %v3157_v9  ;;  %v6217_v35 = vld [vmem:[#allocation13_spill] sm:$0xff] }
 0x560   : > { %3696 = vst [vmem:[%s5942_s23 + $0x70] sm:$0xff] %v3632_v14  ;;  %4305 = vpow2.f32 %v3346_v62 }
 0x561   : > { %4307 = vlog2.f32 %v3399_v56  ;;  %v3633_v12 = vsub.f32 %v6215_v2, %v3521_v47  ;;  %v3348_v4 = vmul.f32 1.442695, %v6019_v8 }
 0x562   : > { %v4298_v1 = vpop.eup %4297  ;;  %v3401_v52 = vpop.xlane.xlu1 %3400 }
 0x563   : > { %v4300_v20 = vpop.eup %4299  ;;  %3470 = vadd.xlane.f32.xlu0 %v4298_v1  ;;  %v3159_v38 = vpop.xlane.xlu0 %3158  ;;  %3697 = vst [vmem:[%s5942_s23 + $0x78] sm:$0xff] %v3633_v12  ;;  %4309 = vpow2.f32 %v3348_v4 }
 0x564   : > { %v3523_v55 = vmul.f32 0.6931472, %v4300_v20  ;;  %v6025_v27 = vsub.f32 %v5820_v40, %v3159_v38  ;;  %4311 = vlog2.f32 %v3401_v52  ;;  %v6218_v52 = vld [vmem:[#allocation14_spill] sm:$0xff] }
 0x565   : > { %v4302_v50 = vpop.eup %4301 }
 0x566   : > { %v3634_v59 = vsub.f32 %v6216_v16, %v3523_v55  ;;  %v3350_v11 = vmul.f32 1.442695, %v6025_v27  ;;  %v4304_v48 = vpop.eup %4303  ;;  %3472 = vadd.xlane.f32.xlu1 %v4302_v50  ;;  %v3161_v53 = vpop.xlane.xlu1 %3160 }
 0x567   : > { %v3163_v22 = vpop.xlane.xlu0 %3162  ;;  %v3525_v7 = vmul.f32 0.6931472, %v4304_v48  ;;  %v6031_v14 = vsub.f32 %v5832_v10, %v3161_v53  ;;  %v6219_v53 = vld [vmem:[#allocation15_spill] sm:$0xff] }
 0x568   : > { %3698 = vst [vmem:[%s5942_s23 + $0x80] sm:$0xff] %v3634_v59  ;;  %4313 = vpow2.f32 %v3350_v11  ;;  %v6034_v40 = vsub.f32 %v5835_v57, %v3163_v22 }
 0x569   : > { %v3635_v9 = vsub.f32 %v6217_v35, %v3525_v7  ;;  %v3352_v56 = vmul.f32 1.442695, %v6031_v14 }
 0x56a   : > { %v4306_v62 = vpop.eup %4305  ;;  %v3354_v47 = vmul.f32 1.442695, %v6034_v40  ;;  %v3165_v2 = vpop.xlane.xlu1 %3164 }
 0x56b   : > { %v4308_v1 = vpop.eup %4307  ;;  %3474 = vadd.xlane.f32.xlu0 %v4306_v62  ;;  %v3167_v12 = vpop.xlane.xlu0 %3166  ;;  %3699 = vst [vmem:[%s5942_s23 + $0x88] sm:$0xff] %v3635_v9  ;;  %4315 = vpow2.f32 %v3352_v56  ;;  %v6041_v10 = vsub.f32 %v5851_v42, %v3165_v2 }
 0x56c   : > { %v3527_v4 = vmul.f32 0.6931472, %v4308_v1  ;;  %v6044_v57 = vsub.f32 %v5845_v30, %v3167_v12  ;;  %4317 = vpow2.f32 %v3354_v47 }
 0x56d   : > { %v4310_v20 = vpop.eup %4309  ;;  %v3356_v55 = vmul.f32 1.442695, %v6041_v10 }
 0x56e   : > { %v3636_v38 = vsub.f32 %v6218_v52, %v3527_v4  ;;  %v3358_v50 = vmul.f32 1.442695, %v6044_v57  ;;  %v4312_v16 = vpop.eup %4311  ;;  %3476 = vadd.xlane.f32.xlu1 %v4310_v20  ;;  %v3169_v59 = vpop.xlane.xlu1 %3168 }
 0x56f   : > { %v3403_v11 = vpop.xlane.xlu0 %3402  ;;  %v3529_v48 = vmul.f32 0.6931472, %v4312_v16  ;;  %4319 = vpow2.f32 %v3356_v55  ;;  %v6051_v42 = vsub.f32 %v5861_v19, %v3169_v59 }
 0x570   : > { %3700 = vst [vmem:[%s5942_s23 + $0x90] sm:$0xff] %v3636_v38  ;;  %4321 = vpow2.f32 %v3358_v50 }
 0x571   : > { %v3637_v22 = vsub.f32 %v6219_v53, %v3529_v48  ;;  %v3360_v7 = vmul.f32 1.442695, %v6051_v42  ;;  %4323 = vlog2.f32 %v3403_v11 }
 0x572   : > { %v4314_v30 = vpop.eup %4313  ;;  %v3405_v62 = vpop.xlane.xlu1 %3404 }
 0x573   : > { %3478 = vadd.xlane.f32.xlu0 %v4314_v30  ;;  %v3407_v35 = vpop.xlane.xlu0 %3406  ;;  %3701 = vst [vmem:[%s5942_s23 + $0x98] sm:$0xff] %v3637_v22  ;;  %4325 = vpow2.f32 %v3360_v7 }
 0x574   : > { %4327 = vlog2.f32 %v3405_v62 }
 0x575   : > { %v4316_v9 = vpop.eup %4315  ;;  %4329 = vlog2.f32 %v3407_v35 }
 0x576   : > { %v4318_v56 = vpop.eup %4317  ;;  %3480 = vadd.xlane.f32.xlu1 %v4316_v9  ;;  %v3409_v47 = vpop.xlane.xlu1 %3408 }
 0x577   : > { %v3411_v19 = vpop.xlane.xlu0 %3410  ;;  %4331 = vlog2.f32 %v3409_v47  ;;  %3482 = vadd.xlane.f32.xlu0 %v4318_v56  ;;  %v6220_v56 = vld [vmem:[#allocation19_spill] sm:$0xff] }
 0x578   : > { %4333 = vlog2.f32 %v3411_v19 }
 0x579   : > { %v4320_v1 = vpop.eup %4319 }
 0x57a   : > { %v4322_v2 = vpop.eup %4321  ;;  %3484 = vadd.xlane.f32.xlu1 %v4320_v1  ;;  %v3413_v12 = vpop.xlane.xlu1 %3412 }
 0x57b   : > { %v3415_v4 = vpop.xlane.xlu0 %3414  ;;  %v4324_v20 = vpop.eup %4323  ;;  %4335 = vlog2.f32 %v3413_v12  ;;  %3486 = vadd.xlane.f32.xlu0 %v4322_v2 }
 0x57c   : > { %v3531_v52 = vmul.f32 0.6931472, %v4324_v20  ;;  %4337 = vlog2.f32 %v3415_v4 }
 0x57d   : > { %v4326_v38 = vpop.eup %4325 }
 0x57e   : > { %v4328_v55 = vpop.eup %4327  ;;  %v3638_v50 = vsub.f32 %v5806_v43, %v3531_v52  ;;  %3488 = vadd.xlane.f32.xlu1 %v4326_v38  ;;  %v3417_v16 = vpop.xlane.xlu1 %3416 }
 0x57f   : > { %v3419_v59 = vpop.xlane.xlu0 %3418  ;;  %v4330_v11 = vpop.eup %4329  ;;  %v3533_v48 = vmul.f32 0.6931472, %v4328_v55  ;;  %4339 = vlog2.f32 %v3417_v16  ;;  %v6221_v16 = vld [vmem:[#allocation20_spill] sm:$0xff] }
 0x580   : > { %3702 = vst [vmem:[%s5942_s23 + $0xa0] sm:$0xff] %v3638_v50  ;;  %v3535_v30 = vmul.f32 0.6931472, %v4330_v11  ;;  %4341 = vlog2.f32 %v3419_v59 }
 0x581   : > { %v4332_v53 = vpop.eup %4331  ;;  %v3639_v22 = vsub.f32 %v5812_v17, %v3533_v48  ;;  %v6222_v48 = vld [vmem:[#allocation21_spill] sm:$0xff] }
 0x582   : > { %v4334_v7 = vpop.eup %4333  ;;  %v3640_v62 = vsub.f32 %v5817_v39, %v3535_v30  ;;  %v3537_v43 = vmul.f32 0.6931472, %v4332_v53  ;;  %v3421_v35 = vpop.xlane.xlu1 %3420 }
 0x583   : > { %3703 = vst [vmem:[%s5942_s23 + $0xa8] sm:$0xff] %v3639_v22  ;;  %v3539_v9 = vmul.f32 0.6931472, %v4334_v7  ;;  %4343 = vlog2.f32 %v3421_v35 }
 0x584   : > { %3704 = vst [vmem:[%s5942_s23 + $0xb0] sm:$0xff] %v3640_v62  ;;  %v3641_v47 = vsub.f32 %v6220_v56, %v3537_v43 }
 0x585   : > { %v4336_v19 = vpop.eup %4335  ;;  %v3642_v1 = vsub.f32 %v5829_v36, %v3539_v9 }
 0x586   : > { %v4338_v2 = vpop.eup %4337  ;;  %3705 = vst [vmem:[%s5942_s23 + $0xb8] sm:$0xff] %v3641_v47  ;;  %v3541_v17 = vmul.f32 0.6931472, %v4336_v19  ;;  %v3423_v12 = vpop.xlane.xlu0 %3422 }
 0x587   : > { %3706 = vst [vmem:[%s5942_s23 + $0xc0] sm:$0xff] %v3642_v1  ;;  %v3543_v39 = vmul.f32 0.6931472, %v4338_v2  ;;  %4345 = vlog2.f32 %v3423_v12 }
 0x588   : > { %v3643_v4 = vsub.f32 %v5839_v63, %v3541_v17  ;;  %v3425_v20 = vpop.xlane.xlu1 %3424 }
 0x589   : > { %v4340_v52 = vpop.eup %4339  ;;  %v3644_v38 = vsub.f32 %v5848_v41, %v3543_v39  ;;  %4347 = vlog2.f32 %v3425_v20 }
 0x58a   : > { %v4342_v55 = vpop.eup %4341  ;;  %3707 = vst [vmem:[%s5942_s23 + $0xc8] sm:$0xff] %v3643_v4  ;;  %v3545_v36 = vmul.f32 0.6931472, %v4340_v52 }
 0x58b   : > { %3708 = vst [vmem:[%s5942_s23 + $0xd0] sm:$0xff] %v3644_v38  ;;  %v3547_v50 = vmul.f32 0.6931472, %v4342_v55 }
 0x58c   : > { %v3645_v59 = vsub.f32 %v6221_v16, %v3545_v36 }
 0x58d   : > { %v4344_v11 = vpop.eup %4343  ;;  %v3646_v30 = vsub.f32 %v6222_v48, %v3547_v50 }
 0x58e   : > { %3709 = vst [vmem:[%s5942_s23 + $0xd8] sm:$0xff] %v3645_v59  ;;  %v3549_v63 = vmul.f32 0.6931472, %v4344_v11  ;;  %v3427_v53 = vpop.xlane.xlu0 %3426 }
 0x58f   : > { %3710 = vst [vmem:[%s5942_s23 + $0xe0] sm:$0xff] %v3646_v30  ;;  %4349 = vlog2.f32 %v3427_v53 }
 0x590   : > { %v3647_v41 = vsub.f32 %v5870_v44, %v3549_v63  ;;  %v3429_v22 = vpop.xlane.xlu1 %3428 }
 0x591   : > { %v4346_v7 = vpop.eup %4345  ;;  %4351 = vlog2.f32 %v3429_v22 }
 0x592   : > { %3711 = vst [vmem:[%s5942_s23 + $0xe8] sm:$0xff] %v3647_v41  ;;  %v3551_v62 = vmul.f32 0.6931472, %v4346_v7 }
 0x593   : > { %v4348_v43 = vpop.eup %4347 }
 0x594   : > { %v3648_v35 = vsub.f32 %v5874_v46, %v3551_v62  ;;  %v3553_v9 = vmul.f32 0.6931472, %v4348_v43 }
 0x596   : > { %3712 = vst [vmem:[%s5942_s23 + $0xf0] sm:$0xff] %v3648_v35  ;;  %v3649_v56 = vsub.f32 %v5878_v31, %v3553_v9  ;;  %v3431_v47 = vpop.xlane.xlu0 %3430 }
 0x597   : > { %4353 = vlog2.f32 %v3431_v47 }
 0x598   : > { %3713 = vst [vmem:[%s5942_s23 + $0xf8] sm:$0xff] %v3649_v56  ;;  %v3433_v19 = vpop.xlane.xlu1 %3432 }
 0x599   : > { %v4350_v1 = vpop.eup %4349  ;;  %4355 = vlog2.f32 %v3433_v19 }
 0x59a   : > { %v3555_v44 = vmul.f32 0.6931472, %v4350_v1 }
 0x59b   : > { %v4352_v2 = vpop.eup %4351 }
 0x59c   : > { %v3650_v17 = vsub.f32 %v5882_v25, %v3555_v44  ;;  %v3557_v12 = vmul.f32 0.6931472, %v4352_v2 }
 0x59e   : > { %3714 = vst [vmem:[%s5942_s23 + $0x100] sm:$0xff] %v3650_v17  ;;  %v3651_v46 = vsub.f32 %v5886_v60, %v3557_v12  ;;  %v3435_v39 = vpop.xlane.xlu0 %3434 }
 0x59f   : > { %4357 = vlog2.f32 %v3435_v39 }
 0x5a0   : > { %3715 = vst [vmem:[%s5942_s23 + $0x108] sm:$0xff] %v3651_v46  ;;  %v3437_v31 = vpop.xlane.xlu1 %3436 }
 0x5a1   : > { %v4354_v4 = vpop.eup %4353  ;;  %4359 = vlog2.f32 %v3437_v31 }
 0x5a2   : > { %v3559_v20 = vmul.f32 0.6931472, %v4354_v4 }
 0x5a3   : > { %v4356_v52 = vpop.eup %4355 }
 0x5a4   : > { %v3652_v38 = vsub.f32 %v5890_v54, %v3559_v20  ;;  %v3561_v55 = vmul.f32 0.6931472, %v4356_v52 }
 0x5a6   : > { %3716 = vst [vmem:[%s5942_s23 + $0x110] sm:$0xff] %v3652_v38  ;;  %v3653_v25 = vsub.f32 %v5894_v32, %v3561_v55  ;;  %v3439_v36 = vpop.xlane.xlu0 %3438 }
 0x5a7   : > { %4361 = vlog2.f32 %v3439_v36 }
 0x5a8   : > { %3717 = vst [vmem:[%s5942_s23 + $0x118] sm:$0xff] %v3653_v25  ;;  %v3441_v60 = vpop.xlane.xlu1 %3440 }
 0x5a9   : > { %v4358_v50 = vpop.eup %4357  ;;  %4363 = vlog2.f32 %v3441_v60 }
 0x5aa   : > { %v3563_v16 = vmul.f32 0.6931472, %v4358_v50 }
 0x5ab   : > { %v4360_v59 = vpop.eup %4359 }
 0x5ac   : > { %v3654_v11 = vsub.f32 %v5898_v61, %v3563_v16  ;;  %v3565_v48 = vmul.f32 0.6931472, %v4360_v59 }
 0x5ae   : > { %3718 = vst [vmem:[%s5942_s23 + $0x120] sm:$0xff] %v3654_v11  ;;  %v3655_v54 = vsub.f32 %v5902_v6, %v3565_v48  ;;  %v3443_v30 = vpop.xlane.xlu0 %3442 }
 0x5af   : > { %4365 = vlog2.f32 %v3443_v30 }
 0x5b0   : > { %3719 = vst [vmem:[%s5942_s23 + $0x128] sm:$0xff] %v3655_v54  ;;  %v3445_v32 = vpop.xlane.xlu1 %3444 }
 0x5b1   : > { %v4362_v63 = vpop.eup %4361  ;;  %4367 = vlog2.f32 %v3445_v32 }
 0x5b2   : > { %v3567_v53 = vmul.f32 0.6931472, %v4362_v63 }
 0x5b3   : > { %v4364_v41 = vpop.eup %4363 }
 0x5b4   : > { %v3656_v22 = vsub.f32 %v5906_v24, %v3567_v53  ;;  %v3569_v7 = vmul.f32 0.6931472, %v4364_v41 }
 0x5b6   : > { %3720 = vst [vmem:[%s5942_s23 + $0x130] sm:$0xff] %v3656_v22  ;;  %v3657_v61 = vsub.f32 %v5910_v13, %v3569_v7  ;;  %v3447_v62 = vpop.xlane.xlu0 %3446 }
 0x5b7   : > { %4369 = vlog2.f32 %v3447_v62 }
 0x5b8   : > { %3721 = vst [vmem:[%s5942_s23 + $0x138] sm:$0xff] %v3657_v61  ;;  %v3449_v6 = vpop.xlane.xlu1 %3448 }
 0x5b9   : > { %v4366_v43 = vpop.eup %4365  ;;  %4371 = vlog2.f32 %v3449_v6 }
 0x5ba   : > { %v3571_v35 = vmul.f32 0.6931472, %v4366_v43 }
 0x5bb   : > { %v4368_v9 = vpop.eup %4367 }
 0x5bc   : > { %v3658_v56 = vsub.f32 %v5914_v18, %v3571_v35  ;;  %v3573_v47 = vmul.f32 0.6931472, %v4368_v9 }
 0x5be   : > { %3722 = vst [vmem:[%s5942_s23 + $0x140] sm:$0xff] %v3658_v56  ;;  %v3659_v24 = vsub.f32 %v5918_v21, %v3573_v47 }
 0x5bf   : > { %v3451_v19 = vpop.xlane.xlu0 %3450 }
 0x5c0   : > { %3723 = vst [vmem:[%s5942_s23 + $0x148] sm:$0xff] %v3659_v24  ;;  %4373 = vlog2.f32 %v3451_v19 }
 0x5c1   : > { %v4370_v13 = vpop.eup %4369  ;;  %v3453_v1 = vpop.xlane.xlu1 %3452 }
 0x5c2   : > { %v3575_v44 = vmul.f32 0.6931472, %v4370_v13  ;;  %4375 = vlog2.f32 %v3453_v1 }
 0x5c3   : > { %v4372_v2 = vpop.eup %4371 }
 0x5c4   : > { %v3660_v17 = vsub.f32 %v5922_v0, %v3575_v44  ;;  %v3577_v12 = vmul.f32 0.6931472, %v4372_v2 }
 0x5c6   : > { %3724 = vst [vmem:[%s5942_s23 + $0x150] sm:$0xff] %v3660_v17  ;;  %v3661_v18 = vsub.f32 %v5926_v33, %v3577_v12 }
 0x5c7   : > { %v3455_v46 = vpop.xlane.xlu0 %3454 }
 0x5c8   : > { %3725 = vst [vmem:[%s5942_s23 + $0x158] sm:$0xff] %v3661_v18  ;;  %4377 = vlog2.f32 %v3455_v46 }
 0x5c9   : > { %v3457_v21 = vpop.xlane.xlu1 %3456 }
 0x5ca   : > { %v4374_v39 = vpop.eup %4373  ;;  %4379 = vlog2.f32 %v3457_v21 }
 0x5cb   : > { %v3579_v31 = vmul.f32 0.6931472, %v4374_v39 }
 0x5cc   : > { %v4376_v4 = vpop.eup %4375 }
 0x5cd   : > { %v3662_v20 = vsub.f32 %v5932_v58, %v3579_v31  ;;  %v3581_v52 = vmul.f32 0.6931472, %v4376_v4 }
 0x5cf   : > { %3726 = vst [vmem:[%s5942_s23 + $0x160] sm:$0xff] %v3662_v20  ;;  %v3663_v0 = vsub.f32 %v5936_v15, %v3581_v52 }
 0x5d1   : > { %3727 = vst [vmem:[%s5942_s23 + $0x168] sm:$0xff] %v3663_v0 }
 0x5d2   : > { %v4378_v38 = vpop.eup %4377 }
 0x5d3   : > { %v3583_v55 = vmul.f32 0.6931472, %v4378_v38  ;;  %v3459_v33 = vpop.xlane.xlu0 %3458 }
 0x5d4   : > { %v4380_v25 = vpop.eup %4379  ;;  %4381 = vlog2.f32 %v3459_v33 }
 0x5d5   : > { %v3664_v36 = vsub.f32 %v5945_v29, %v3583_v55  ;;  %v3585_v60 = vmul.f32 0.6931472, %v4380_v25 }
 0x5d7   : > { %3728 = vst [vmem:[%s5942_s23 + $0x170] sm:$0xff] %v3664_v36  ;;  %v3665_v50 = vsub.f32 %v5950_v51, %v3585_v60  ;;  %v3461_v58 = vpop.xlane.xlu1 %3460 }
 0x5d8   : > { %4383 = vlog2.f32 %v3461_v58 }
 0x5d9   : > { %3729 = vst [vmem:[%s5942_s23 + $0x178] sm:$0xff] %v3665_v50 }
 0x5de   : > { %v4382_v16 = vpop.eup %4381 }
 0x5df   : > { %v3587_v59 = vmul.f32 0.6931472, %v4382_v16 }
 0x5e0   : > { %v3463_v15 = vpop.xlane.xlu0 %3462 }
 0x5e1   : > { %4385 = vlog2.f32 %v3463_v15  ;;  %v3666_v11 = vsub.f32 %v5960_v45, %v3587_v59 }
 0x5e2   : > { %v4384_v48 = vpop.eup %4383 }
 0x5e3   : > { %3730 = vst [vmem:[%s5942_s23 + $0x180] sm:$0xff] %v3666_v11  ;;  %v3589_v54 = vmul.f32 0.6931472, %v4384_v48  ;;  %v3465_v30 = vpop.xlane.xlu1 %3464 }
 0x5e4   : > { %4387 = vlog2.f32 %v3465_v30 }
 0x5e5   : > { %v3667_v29 = vsub.f32 %v5965_v3, %v3589_v54 }
 0x5e7   : > { %3731 = vst [vmem:[%s5942_s23 + $0x188] sm:$0xff] %v3667_v29 }
 0x5e8   : > { %v3467_v51 = vpop.xlane.xlu0 %3466 }
 0x5e9   : > { %4389 = vlog2.f32 %v3467_v51 }
 0x5eb   : > { %v4386_v32 = vpop.eup %4385  ;;  %v3469_v53 = vpop.xlane.xlu1 %3468 }
 0x5ec   : > { %v3591_v63 = vmul.f32 0.6931472, %v4386_v32  ;;  %4391 = vlog2.f32 %v3469_v53 }
 0x5ee   : > { %v3668_v41 = vsub.f32 %v5975_v49, %v3591_v63  ;;  %v4388_v45 = vpop.eup %4387 }
 0x5ef   : > { %v3593_v22 = vmul.f32 0.6931472, %v4388_v45 }
 0x5f0   : > { %3732 = vst [vmem:[%s5942_s23 + $0x190] sm:$0xff] %v3668_v41  ;;  %v3471_v7 = vpop.xlane.xlu0 %3470 }
 0x5f1   : > { %4393 = vlog2.f32 %v3471_v7  ;;  %v3669_v61 = vsub.f32 %v5981_v28, %v3593_v22 }
 0x5f3   : > { %v4390_v3 = vpop.eup %4389  ;;  %3733 = vst [vmem:[%s5942_s23 + $0x198] sm:$0xff] %v3669_v61  ;;  %v3473_v6 = vpop.xlane.xlu1 %3472 }
 0x5f4   : > { %v3595_v62 = vmul.f32 0.6931472, %v4390_v3  ;;  %4395 = vlog2.f32 %v3473_v6 }
 0x5f6   : > { %v3670_v43 = vsub.f32 %v5987_v37, %v3595_v62  ;;  %v4392_v35 = vpop.eup %4391 }
 0x5f7   : > { %v3597_v9 = vmul.f32 0.6931472, %v4392_v35 }
 0x5f8   : > { %3734 = vst [vmem:[%s5942_s23 + $0x1a0] sm:$0xff] %v3670_v43  ;;  %v3475_v49 = vpop.xlane.xlu0 %3474 }
 0x5f9   : > { %4397 = vlog2.f32 %v3475_v49  ;;  %v3671_v56 = vsub.f32 %v5994_v26, %v3597_v9 }
 0x5fb   : > { %v4394_v47 = vpop.eup %4393  ;;  %3735 = vst [vmem:[%s5942_s23 + $0x1a8] sm:$0xff] %v3671_v56  ;;  %v3477_v28 = vpop.xlane.xlu1 %3476 }
 0x5fc   : > { %v3599_v24 = vmul.f32 0.6931472, %v4394_v47  ;;  %4399 = vlog2.f32 %v3477_v28 }
 0x5fe   : > { %v3672_v19 = vsub.f32 %v6001_v5, %v3599_v24  ;;  %v4396_v13 = vpop.eup %4395 }
 0x5ff   : > { %v3601_v1 = vmul.f32 0.6931472, %v4396_v13 }
 0x600   : > { %3736 = vst [vmem:[%s5942_s23 + $0x1b0] sm:$0xff] %v3672_v19  ;;  %v3479_v37 = vpop.xlane.xlu0 %3478 }
 0x601   : > { %4401 = vlog2.f32 %v3479_v37  ;;  %v3673_v44 = vsub.f32 %v6007_v34, %v3601_v1 }
 0x603   : > { %v4398_v2 = vpop.eup %4397  ;;  %3737 = vst [vmem:[%s5942_s23 + $0x1b8] sm:$0xff] %v3673_v44  ;;  %v3481_v26 = vpop.xlane.xlu1 %3480 }
 0x604   : > { %v3603_v17 = vmul.f32 0.6931472, %v4398_v2  ;;  %4403 = vlog2.f32 %v3481_v26  ;;  %v3483_v12 = vpop.xlane.xlu0 %3482 }
 0x605   : > { %4405 = vlog2.f32 %v3483_v12 }
 0x606   : > { %v3674_v18 = vsub.f32 %v6013_v23, %v3603_v17  ;;  %v4400_v46 = vpop.eup %4399 }
 0x607   : > { %v3605_v5 = vmul.f32 0.6931472, %v4400_v46  ;;  %v3485_v21 = vpop.xlane.xlu1 %3484 }
 0x608   : > { %3738 = vst [vmem:[%s5942_s23 + $0x1c0] sm:$0xff] %v3674_v18  ;;  %4407 = vlog2.f32 %v3485_v21  ;;  %v3487_v39 = vpop.xlane.xlu0 %3486 }
 0x609   : > { %v3675_v31 = vsub.f32 %v6019_v8, %v3605_v5  ;;  %4409 = vlog2.f32 %v3487_v39 }
 0x60b   : > { %v4402_v34 = vpop.eup %4401  ;;  %3739 = vst [vmem:[%s5942_s23 + $0x1c8] sm:$0xff] %v3675_v31  ;;  %v3489_v20 = vpop.xlane.xlu1 %3488 }
 0x60c   : > { %v3607_v4 = vmul.f32 0.6931472, %v4402_v34  ;;  %4411 = vlog2.f32 %v3489_v20 }
 0x60e   : > { %v3676_v23 = vsub.f32 %v6025_v27, %v3607_v4  ;;  %v4404_v52 = vpop.eup %4403 }
 0x60f   : > { %v4406_v0 = vpop.eup %4405  ;;  %v3609_v38 = vmul.f32 0.6931472, %v4404_v52 }
 0x610   : > { %3740 = vst [vmem:[%s5942_s23 + $0x1d0] sm:$0xff] %v3676_v23  ;;  %v3611_v55 = vmul.f32 0.6931472, %v4406_v0 }
 0x611   : > { %v3677_v8 = vsub.f32 %v6031_v14, %v3609_v38 }
 0x612   : > { %v4408_v33 = vpop.eup %4407  ;;  %v3678_v25 = vsub.f32 %v6034_v40, %v3611_v55 }
 0x613   : > { %v4410_v36 = vpop.eup %4409  ;;  %3741 = vst [vmem:[%s5942_s23 + $0x1d8] sm:$0xff] %v3677_v8  ;;  %v3613_v60 = vmul.f32 0.6931472, %v4408_v33 }
 0x614   : > { %3742 = vst [vmem:[%s5942_s23 + $0x1e0] sm:$0xff] %v3678_v25  ;;  %v3615_v50 = vmul.f32 0.6931472, %v4410_v36 }
 0x615   : > { %v3679_v27 = vsub.f32 %v6041_v10, %v3613_v60 }
 0x616   : > { %v4412_v58 = vpop.eup %4411  ;;  %v3680_v16 = vsub.f32 %v6044_v57, %v3615_v50 }
 0x617   : > { %3743 = vst [vmem:[%s5942_s23 + $0x1e8] sm:$0xff] %v3679_v27  ;;  %v3617_v59 = vmul.f32 0.6931472, %v4412_v58 }
 0x618   : > { %3744 = vst [vmem:[%s5942_s23 + $0x1f0] sm:$0xff] %v3680_v16 }
 0x619   : > { %v3681_v15 = vsub.f32 %v6051_v42, %v3617_v59 }
 0x61b   : > { %3745 = vst [vmem:[%s5942_s23 + $0x1f8] sm:$0xff] %v3681_v15 }
 0x61c PF: > { %p20_p6 = scmp.ge.s32.totalorder %s4613_s20, 4   ;;  %s6223_s30 = smov %s4501_s10 }
 0x61d   : > { %s6224_s10 = smov %s4505_s11  ;;  %s6225_s11 = smov %s4642_s26 }
 0x61e   : > { %s6226_s12 = smov %s4613_s20  ;;  %22 = sbr.rel (!%p20_p6) target bundleno = 4 (0x4), region = 100 }
 0x625   :  { %3768 = vsyncpa [#allocation3], 1 }
 0x626   :  { %3770 = vsyncpa [#allocation3 + $0x1], 1 }
 0x627   :  { %3771 = vsyncpa [#allocation5], 1 }

</bundles_post_ra>
